<compile_context>
chip_gen: v7x
topology: tpu7x:2x2x1
jax: 0.10.0
libtpu: 0.0.40
codegen_flags: <defaults>
</compile_context>

<pallas_src>
from functools import partial

import jax
import jax.numpy as jnp
from jax import lax
from jax.experimental import pallas as pl
from jax.experimental.pallas import tpu as pltpu


_MASK_VALUE = -0.7 * float(jnp.finfo(jnp.float32).max)   # safe in fp32 and bf16


def _mha_flash_kernel(x_ref, kv_ref, wq_ref, bq_ref, wm_ref, bm_ref, out_ref,
                      q_s, m_s, l_s, acc_s, *,
                      num_heads, head_dim, m_valid, tile_m, mask_m,
                      compute_dtype, bf16_exp):
    """One (batch, N-tile, M-tile) grid step.

    x_ref:   (d_model, TN)        query points (compute dtype)
    kv_ref:  (2*d_model, TM)      precomputed [K;V] projections, head-major rows
    wq_ref:  (d_model, d_model)   head-major rows, 1/sqrt(hd) folded in
    bq_ref:  (d_model, 1)         fp32, scale folded in
    wm_ref:  (d_model, d_model)   merge conv, head-major columns
    bm_ref:  (d_model, 1)         fp32
    out_ref: (d_model, TN)        output (written only on the last M tile)
    q_s:     (H, hd, TN)          Q scratch (compute dtype), filled at m == 0
    m_s/l_s: (H, TN) fp32         online-softmax running max / sum
    acc_s:   (H, hd, TN) fp32     online-softmax accumulator
    """
    d_model = num_heads * head_dim
    m_idx = pl.program_id(2)

    @pl.when(m_idx == 0)
    def _init():
        # Full-width Q projection once per (batch, N-tile); scale pre-folded.
        q_all = (jnp.dot(wq_ref[...], x_ref[...],
                         preferred_element_type=jnp.float32) + bq_ref[...])
        q_s[...] = q_all.reshape(num_heads, head_dim, -1).astype(compute_dtype)
        m_s[...] = jnp.full_like(m_s, _MASK_VALUE)
        l_s[...] = jnp.zeros_like(l_s)
        acc_s[...] = jnp.zeros_like(acc_s)

    kv = kv_ref[...]                                               # (2*d_model, TM)
    k = kv[:d_model, :].reshape(num_heads, head_dim, -1)           # (H, hd, TM)
    v = kv[d_model:, :].reshape(num_heads, head_dim, -1)           # (H, hd, TM)
    q = q_s[...]                                                   # (H, hd, TN)

    # scores[h, n, m] = sum_d q[h, d, n] * k[h, d, m]   (heads batched on MXU)
    scores = lax.dot_general(q, k, (((1,), (1,)), ((0,), (0,))),
                             preferred_element_type=jnp.float32)   # (H, TN, TM)
    if mask_m:
        col = m_idx * tile_m + lax.broadcasted_iota(jnp.int32, (1, tile_m), 1)
        scores = jnp.where(col < m_valid, scores, _MASK_VALUE)

    # Online (flash) softmax update, fp32 statistics.
    m_prev = m_s[...]
    m_new = jnp.maximum(m_prev, jnp.max(scores, axis=-1))          # (H, TN)
    alpha = jnp.exp(m_prev - m_new)                                # (H, TN)
    shifted = scores - m_new[:, :, None]
    if bf16_exp:
        p = jnp.exp(shifted.astype(jnp.bfloat16))                  # bf16 EUP (v6e/v7x)
    else:
        p = jnp.exp(shifted)
    l_s[...] = alpha * l_s[...] + jnp.sum(p.astype(jnp.float32), axis=-1)

    # acc[h, d, n] += sum_m v[h, d, m] * p[h, n, m]
    pv = lax.dot_general(v, p.astype(compute_dtype),
                         (((2,), (2,)), ((0,), (0,))),
                         preferred_element_type=jnp.float32)       # (H, hd, TN)
    acc_s[...] = alpha[:, None, :] * acc_s[...] + pv
    m_s[...] = m_new

    @pl.when(m_idx == pl.num_programs(2) - 1)
    def _finalize():
        inv_l = pl.reciprocal(l_s[...], approx=True)               # (H, TN)
        o = (acc_s[...] * inv_l[:, None, :]).astype(compute_dtype) # (H, hd, TN)
        merged = jnp.dot(wm_ref[...], o.reshape(d_model, -1),
                         preferred_element_type=jnp.float32) + bm_ref[...]
        out_ref[...] = merged.astype(out_ref.dtype)


def _round_up(v, m):
    return (v + m - 1) // m * m


def multi_headed_attention(x, source, params, num_heads, k=None, *,
                           use_bf16=True, bf16_exp=None, out_dtype=None,
                           tile_n=None, tile_m=None):
    """Pallas implementation of MultiHeadedAttention.forward (k=None path)."""
    assert k is None  # TODO(synk): dynamic_attention path not implemented
    B, d_model, N = x.shape
    M = source.shape[2]
    assert d_model % num_heads == 0
    head_dim = d_model // num_heads
    (wq, bq), (wk, bk), (wv, bv), (wm, bm) = params

    compute_dtype = jnp.bfloat16 if use_bf16 else jnp.float32
    if out_dtype is None:
        out_dtype = x.dtype
    if bf16_exp is None:
        kind = jax.devices()[0].device_kind.lower()
        old_gen = any(g in kind for g in ("v2", "v3", "v4", "v5"))
        bf16_exp = use_bf16 and not old_gen          # bf16 EUP only on v6e/v7x
    # Keep head slabs aligned to the sublane packing (avoids repack / masked vst).
    if use_bf16:
        assert head_dim % 16 == 0, "bf16 path requires head_dim % 16 == 0"
    else:
        assert head_dim % 8 == 0, "fp32 path requires head_dim % 8 == 0"

    scale = 1.0 / (head_dim ** 0.5)

    # ---- host-side weight permutations (one-time parameter transform) ------
    # `.view(B, head_dim, heads, -1)` splits channel c = d*heads + h; re-order
    # projection ROWS (and merge COLUMNS) so head h occupies a contiguous
    # [h*head_dim, (h+1)*head_dim) slab.
    def head_major_rows(w, b):
        w_p = w.reshape(head_dim, num_heads, d_model).transpose(1, 0, 2)
        w_p = w_p.reshape(d_model, d_model)
        b_p = b.reshape(head_dim, num_heads).T.reshape(d_model, 1)
        return w_p, b_p

    wq_p, bq_p = head_major_rows(wq, bq)
    wq_p = (wq_p * scale).astype(compute_dtype)   # fold 1/sqrt(head_dim)
    bq_p = bq_p * scale                           # keep biases fp32
    wk_p, bk_p = head_major_rows(wk, bk)
    wv_p, bv_p = head_major_rows(wv, bv)
    wm_p = wm.reshape(d_model, head_dim, num_heads).transpose(0, 2, 1)
    wm_p = wm_p.reshape(d_model, d_model).astype(compute_dtype)
    bm_p = bm.reshape(d_model, 1)

    # ---- KV projection hoisted out of the kernel (one XLA matmul per batch) --
    wkv = jnp.concatenate([wk_p, wv_p], axis=0)               # (2*d_model, d_model)
    bkv = jnp.concatenate([bk_p, bv_p], axis=0)               # (2*d_model, 1)
    kv = jnp.einsum('oi,bim->bom', wkv, source) + bkv[None]   # fp32 accumulate
    kv = kv.astype(compute_dtype)                             # (B, 2*d_model, M)

    # ---- generation-aware tiling / scoped VMEM limit ------------------------
    LANE = 128
    try:
        vmem_cap = pltpu.get_tpu_info().vmem_capacity_bytes
    except Exception:
        vmem_cap = 64 * 1024 * 1024
    if tile_n is None:
        tile_n = 512 if vmem_cap >= 96 * 1024 * 1024 else 256   # smaller on v7x
    if tile_m is None:
        tile_m = 1024
    assert tile_n % LANE == 0 and tile_m % LANE == 0

    TN = min(tile_n, _round_up(N, LANE))
    TM = min(tile_m, _round_up(M, LANE))
    N_pad = _round_up(N, TN)
    # Megacore balance (v7x has 2 TensorCores): want >= 2 parallel grid points.
    while B * (N_pad // TN) < 2 and TN > LANE:
        TN = max(LANE, TN // 2)
        N_pad = _round_up(N, TN)
    M_pad = _round_up(M, TM)
    vmem_limit = max(min(int(vmem_cap * 0.85), 112 * 1024 * 1024),
                     16 * 1024 * 1024)

    x_p = x.astype(compute_dtype)
    if N_pad != N:
        x_p = jnp.pad(x_p, ((0, 0), (0, 0), (0, N_pad - N)))
    kv_p = kv
    if M_pad != M:
        kv_p = jnp.pad(kv_p, ((0, 0), (0, 0), (0, M_pad - M)))

    kernel = partial(_mha_flash_kernel, num_heads=num_heads, head_dim=head_dim,
                     m_valid=M, tile_m=TM, mask_m=(M_pad != M),
                     compute_dtype=compute_dtype, bf16_exp=bf16_exp)

    rep2 = lambda b, n, m: (0, 0)
    out = pl.pallas_call(
        kernel,
        out_shape=jax.ShapeDtypeStruct((B, d_model, N_pad), out_dtype),
        grid=(B, N_pad // TN, M_pad // TM),
        in_specs=[
            pl.BlockSpec((pl.Squeezed(), d_model, TN), lambda b, n, m: (b, 0, n)),
            pl.BlockSpec((pl.Squeezed(), 2 * d_model, TM),
                         lambda b, n, m: (b, 0, m)),
            pl.BlockSpec((d_model, d_model), rep2),
            pl.BlockSpec((d_model, 1), rep2),
            pl.BlockSpec((d_model, d_model), rep2),
            pl.BlockSpec((d_model, 1), rep2),
        ],
        out_specs=pl.BlockSpec((pl.Squeezed(), d_model, TN),
                               lambda b, n, m: (b, 0, n)),
        scratch_shapes=[
            pltpu.VMEM((num_heads, head_dim, TN), compute_dtype),   # Q
            pltpu.VMEM((num_heads, TN), jnp.float32),               # running max
            pltpu.VMEM((num_heads, TN), jnp.float32),               # running sum
            pltpu.VMEM((num_heads, head_dim, TN), jnp.float32),     # accumulator
        ],
        compiler_params=pltpu.CompilerParams(
            dimension_semantics=("parallel", "parallel", "arbitrary"),
            vmem_limit_bytes=vmem_limit),
    )(x_p, kv_p, wq_p, bq_p, wm_p, bm_p)

    return out[:, :, :N] if N_pad != N else out


def reference(x, source, params, num_heads):
    """Pure-JAX reference matching the PyTorch forward (k=None)."""
    B, d_model, _ = x.shape
    head_dim = d_model // num_heads
    (wq, bq), (wk, bk), (wv, bv), (wm, bm) = params

    def conv1(w, b, inp):  # Conv1d kernel_size=1
        return jnp.einsum('oi,bin->bon', w, inp) + b[None, :, None]

    q = conv1(wq, bq, x).reshape(B, head_dim, num_heads, -1)
    key = conv1(wk, bk, source).reshape(B, head_dim, num_heads, -1)
    val = conv1(wv, bv, source).reshape(B, head_dim, num_heads, -1)
    scores = jnp.einsum('bdhn,bdhm->bhnm', q, key) / (head_dim ** 0.5)
    prob = jax.nn.softmax(scores.astype(jnp.float32), axis=-1)
    o = jnp.einsum('bhnm,bdhm->bdhn', prob, val)
    o = o.reshape(B, d_model, -1)
    return conv1(wm, bm, o)


if __name__ == "__main__":
    # head_dim = 32 (multiple of 16 -> clean bf16 sublane packing).
    B, d_model, num_heads, N, M = 2, 128, 4, 200, 300

    key = jax.random.PRNGKey(0)
    keys = jax.random.split(key, 10)

    def init_conv1d(kw, kb, out_c, in_c):
        # Deterministic init, PyTorch-Conv1d-style uniform bounds.
        bound = 1.0 / (in_c ** 0.5)
        w = jax.random.uniform(kw, (out_c, in_c), jnp.float32, -bound, bound)
        b = jax.random.uniform(kb, (out_c,), jnp.float32, -bound, bound)
        return w, b

    # proj[0] (q), proj[1] (k), proj[2] (v), merge
    params = [init_conv1d(keys[2 * i], keys[2 * i + 1], d_model, d_model)
              for i in range(4)]

    x = jax.random.normal(keys[8], (B, d_model, N), jnp.float32)
    source = jax.random.normal(keys[9], (B, d_model, M), jnp.float32)

    ref = reference(x, source, params, num_heads)

    # fp32 operand path, small tiles -> multiple N and M tiles (exercises the
    # online-softmax accumulation across M tiles and the padded-key masking).
    out_f32 = multi_headed_attention(x, source, params, num_heads, k=None,
                                     use_bf16=False, tile_n=128, tile_m=128)
    out_f32 = jax.block_until_ready(out_f32)
    assert out_f32.shape == (B, d_model, N) and out_f32.dtype == jnp.float32
    err32 = float(jnp.max(jnp.abs(out_f32 - ref)))
    assert jnp.allclose(out_f32, ref, atol=5e-3, rtol=5e-3), err32

    # bf16 MXU-operand path (fp32 accumulation / statistics), same small tiles.
    out_bf16 = multi_headed_attention(x, source, params, num_heads, k=None,
                                      use_bf16=True, tile_n=128, tile_m=128)
    out_bf16 = jax.block_until_ready(out_bf16)
    assert out_bf16.shape == (B, d_model, N) and out_bf16.dtype == jnp.float32
    errbf = float(jnp.max(jnp.abs(out_bf16 - ref)))
    assert jnp.allclose(out_bf16, ref, atol=5e-2, rtol=5e-2), errbf

    # bf16 path with generation-aware default tiles (single N/M tile here).
    out_def = multi_headed_attention(x, source, params, num_heads, k=None)
    out_def = jax.block_until_ready(out_def)
    errdef = float(jnp.max(jnp.abs(out_def - ref)))
    assert jnp.allclose(out_def, ref, atol=5e-2, rtol=5e-2), errdef

    print("KERNEL_OK")
</pallas_src>

<mosaic_0001>
module attributes {stable_mosaic.version = 11 : i64} {
  func.func @_mha_flash_kernel(%arg0: i32, %arg1: i32, %arg2: i32, %arg3: memref<1x128x128xf32, #tpu.memory_space<vmem>>, %arg4: memref<1x256x128xf32, #tpu.memory_space<vmem>>, %arg5: memref<128x128xf32, #tpu.memory_space<vmem>>, %arg6: memref<128x1xf32, #tpu.memory_space<vmem>>, %arg7: memref<128x128xf32, #tpu.memory_space<vmem>>, %arg8: memref<128x1xf32, #tpu.memory_space<vmem>>, %arg9: memref<1x128x128xf32, #tpu.memory_space<vmem>>, %arg10: memref<4x32x128xf32, #tpu.memory_space<vmem>>, %arg11: memref<4x128xf32, #tpu.memory_space<vmem>>, %arg12: memref<4x128xf32, #tpu.memory_space<vmem>>, %arg13: memref<4x32x128xf32, #tpu.memory_space<vmem>>) attributes {dimension_semantics = [#tpu.dimension_semantics<parallel>, #tpu.dimension_semantics<parallel>, #tpu.dimension_semantics<arbitrary>], iteration_bounds = array<i64: 2, 2, 3>, scalar_prefetch = 0 : i64, scratch_operands = 4 : i64, tpu.core_type = #tpu.core_type<tc>, window_params = [{transform_indices = @transform_0, window_bounds = array<i64: 1, 128, 128>}, {transform_indices = @transform_1, window_bounds = array<i64: 1, 256, 128>}, {pipeline_mode = #tpu.pipeline_mode<synchronous>, transform_indices = @transform_2, window_bounds = array<i64: 128, 128>}, {pipeline_mode = #tpu.pipeline_mode<synchronous>, transform_indices = @transform_3, window_bounds = array<i64: 128, 1>}, {pipeline_mode = #tpu.pipeline_mode<synchronous>, transform_indices = @transform_4, window_bounds = array<i64: 128, 128>}, {pipeline_mode = #tpu.pipeline_mode<synchronous>, transform_indices = @transform_5, window_bounds = array<i64: 128, 1>}, {transform_indices = @transform_6, window_bounds = array<i64: 1, 128, 128>}]} {
    %c0_i32 = arith.constant 0 : i32
    %0 = arith.cmpi eq, %arg2, %c0_i32 : i32
    %1 = arith.extui %0 : i1 to i32
    %c0_i32_0 = arith.constant 0 : i32
    %2 = arith.cmpi ne, %1, %c0_i32_0 : i32
    scf.if %2 {
      %c0_25 = arith.constant 0 : index
      %c0_26 = arith.constant 0 : index
      %46 = vector.load %arg5[%c0_25, %c0_26] : memref<128x128xf32, #tpu.memory_space<vmem>>, vector<128x128xf32>
      %c0_27 = arith.constant 0 : index
      %c0_28 = arith.constant 0 : index
      %c0_29 = arith.constant 0 : index
      %47 = vector.load %arg3[%c0_27, %c0_28, %c0_29] : memref<1x128x128xf32, #tpu.memory_space<vmem>>, vector<1x128x128xf32>
      %48 = vector.shape_cast %47 : vector<1x128x128xf32> to vector<128x128xf32>
      %cst_30 = arith.constant dense<0.000000e+00> : vector<128x128xf32>
      %49 = tpu.matmul %46, %48, %cst_30 {dimension_numbers = #tpu.dot_dimension_numbers<[1], [0], [0], [1], [0, 0, 1, 1], [], []>} : vector<128x128xf32>, vector<128x128xf32>, vector<128x128xf32> -> vector<128x128xf32>
      %c0_31 = arith.constant 0 : index
      %c0_32 = arith.constant 0 : index
      %50 = vector.load %arg6[%c0_31, %c0_32] : memref<128x1xf32, #tpu.memory_space<vmem>>, vector<128x1xf32>
      %51 = vector.broadcast %50 : vector<128x1xf32> to vector<128x128xf32>
      %52 = arith.addf %49, %51 : vector<128x128xf32>
      %53 = vector.shape_cast %52 : vector<128x128xf32> to vector<4x32x128xf32>
      %c0_33 = arith.constant 0 : index
      %c0_34 = arith.constant 0 : index
      %c0_35 = arith.constant 0 : index
      %54 = vector.load %arg10[%c0_33, %c0_34, %c0_35] : memref<4x32x128xf32, #tpu.memory_space<vmem>>, vector<4x32x128xf32>
      tpu.vector_store %arg10[%c0_33, %c0_34, %c0_35], %53 {strides = array<i32>} : memref<4x32x128xf32, #tpu.memory_space<vmem>>, vector<4x32x128xf32>,
      %cst_36 = arith.constant -2.38197633E+38 : f32
      %55 = vector.broadcast %cst_36 : f32 to vector<4x128xf32>
      %c0_37 = arith.constant 0 : index
      %c0_38 = arith.constant 0 : index
      %56 = vector.load %arg11[%c0_37, %c0_38] : memref<4x128xf32, #tpu.memory_space<vmem>>, vector<4x128xf32>
      tpu.vector_store %arg11[%c0_37, %c0_38], %55 {strides = array<i32>} : memref<4x128xf32, #tpu.memory_space<vmem>>, vector<4x128xf32>,
      %cst_39 = arith.constant 0.000000e+00 : f32
      %57 = vector.broadcast %cst_39 : f32 to vector<4x128xf32>
      %c0_40 = arith.constant 0 : index
      %c0_41 = arith.constant 0 : index
      %58 = vector.load %arg12[%c0_40, %c0_41] : memref<4x128xf32, #tpu.memory_space<vmem>>, vector<4x128xf32>
      tpu.vector_store %arg12[%c0_40, %c0_41], %57 {strides = array<i32>} : memref<4x128xf32, #tpu.memory_space<vmem>>, vector<4x128xf32>,
      %cst_42 = arith.constant 0.000000e+00 : f32
      %59 = vector.broadcast %cst_42 : f32 to vector<4x32x128xf32>
      %c0_43 = arith.constant 0 : index
      %c0_44 = arith.constant 0 : index
      %c0_45 = arith.constant 0 : index
      %60 = vector.load %arg13[%c0_43, %c0_44, %c0_45] : memref<4x32x128xf32, #tpu.memory_space<vmem>>, vector<4x32x128xf32>
      tpu.vector_store %arg13[%c0_43, %c0_44, %c0_45], %59 {strides = array<i32>} : memref<4x32x128xf32, #tpu.memory_space<vmem>>, vector<4x32x128xf32>,
    } else {
    }
    %c0 = arith.constant 0 : index
    %c0_1 = arith.constant 0 : index
    %c0_2 = arith.constant 0 : index
    %3 = vector.load %arg4[%c0, %c0_1, %c0_2] : memref<1x256x128xf32, #tpu.memory_space<vmem>>, vector<1x256x128xf32>
    %4 = vector.shape_cast %3 : vector<1x256x128xf32> to vector<256x128xf32>
    %5 = vector.extract_strided_slice %4 {offsets = [0, 0], sizes = [128, 128], strides = [1, 1]} : vector<256x128xf32> to vector<128x128xf32>
    %6 = vector.shape_cast %5 : vector<128x128xf32> to vector<4x32x128xf32>
    %7 = vector.extract_strided_slice %4 {offsets = [128, 0], sizes = [128, 128], strides = [1, 1]} : vector<256x128xf32> to vector<128x128xf32>
    %8 = vector.shape_cast %7 : vector<128x128xf32> to vector<4x32x128xf32>
    %c0_3 = arith.constant 0 : index
    %c0_4 = arith.constant 0 : index
    %c0_5 = arith.constant 0 : index
    %9 = vector.load %arg10[%c0_3, %c0_4, %c0_5] : memref<4x32x128xf32, #tpu.memory_space<vmem>>, vector<4x32x128xf32>
    %cst = arith.constant dense<0.000000e+00> : vector<4x128x128xf32>
    %10 = tpu.matmul %9, %6, %cst {dimension_numbers = #tpu.dot_dimension_numbers<[1], [1], [2], [2], [0, 0, 0, 2, 1, 2], [0], [0]>} : vector<4x32x128xf32>, vector<4x32x128xf32>, vector<4x128x128xf32> -> vector<4x128x128xf32>
    %c128_i32 = arith.constant 128 : i32
    %11 = arith.muli %arg2, %c128_i32 : i32
    %12 = tpu.iota {dimensions = array<i32: 1>} : vector<1x128xi32>
    %13 = vector.broadcast %11 : i32 to vector<1x128xi32>
    %14 = arith.addi %13, %12 : vector<1x128xi32>
    %c300_i32 = arith.constant 300 : i32
    %15 = vector.broadcast %c300_i32 : i32 to vector<1x128xi32>
    %16 = arith.cmpi slt, %14, %15 : vector<1x128xi32>
    %cst_6 = arith.constant -2.38197633E+38 : f32
    %17 = vector.shape_cast %16 : vector<1x128xi1> to vector<1x1x128xi1>
    %18 = vector.broadcast %17 : vector<1x1x128xi1> to vector<4x128x128xi1>
    %19 = vector.broadcast %cst_6 : f32 to vector<4x128x128xf32>
    %20 = arith.select %18, %10, %19 : vector<4x128x128xi1>, vector<4x128x128xf32>
    %c0_7 = arith.constant 0 : index
    %c0_8 = arith.constant 0 : index
    %21 = vector.load %arg11[%c0_7, %c0_8] : memref<4x128xf32, #tpu.memory_space<vmem>>, vector<4x128xf32>
    %cst_9 = arith.constant dense<0xFF800000> : vector<4x128xf32>
    %22 = vector.multi_reduction <maximumf>, %20, %cst_9 [2] : vector<4x128x128xf32> to vector<4x128xf32>
    %23 = arith.maximumf %21, %22 : vector<4x128xf32>
    %24 = arith.subf %21, %23 : vector<4x128xf32>
    %25 = math.exp %24 : vector<4x128xf32>
    %26 = vector.shape_cast %23 : vector<4x128xf32> to vector<4x128x1xf32>
    %27 = vector.broadcast %26 : vector<4x128x1xf32> to vector<4x128x128xf32>
    %28 = arith.subf %20, %27 : vector<4x128x128xf32>
    %29 = math.exp %28 : vector<4x128x128xf32>
    %c0_10 = arith.constant 0 : index
    %c0_11 = arith.constant 0 : index
    %30 = vector.load %arg12[%c0_10, %c0_11] : memref<4x128xf32, #tpu.memory_space<vmem>>, vector<4x128xf32>
    %31 = arith.mulf %25, %30 : vector<4x128xf32>
    %cst_12 = arith.constant dense<0.000000e+00> : vector<4x128xf32>
    %32 = vector.multi_reduction <add>, %29, %cst_12 [2] : vector<4x128x128xf32> to vector<4x128xf32>
    %33 = arith.addf %31, %32 : vector<4x128xf32>
    %c0_13 = arith.constant 0 : index
    %c0_14 = arith.constant 0 : index
    %34 = vector.load %arg12[%c0_13, %c0_14] : memref<4x128xf32, #tpu.memory_space<vmem>>, vector<4x128xf32>
    tpu.vector_store %arg12[%c0_13, %c0_14], %33 {strides = array<i32>} : memref<4x128xf32, #tpu.memory_space<vmem>>, vector<4x128xf32>,
    %cst_15 = arith.constant dense<0.000000e+00> : vector<4x32x128xf32>
    %35 = tpu.matmul %8, %29, %cst_15 {dimension_numbers = #tpu.dot_dimension_numbers<[2], [2], [1], [1], [0, 0, 0, 1, 1, 1], [0], [0]>} : vector<4x32x128xf32>, vector<4x128x128xf32>, vector<4x32x128xf32> -> vector<4x32x128xf32>
    %36 = vector.shape_cast %25 : vector<4x128xf32> to vector<4x1x128xf32>
    %c0_16 = arith.constant 0 : index
    %c0_17 = arith.constant 0 : index
    %c0_18 = arith.constant 0 : index
    %37 = vector.load %arg13[%c0_16, %c0_17, %c0_18] : memref<4x32x128xf32, #tpu.memory_space<vmem>>, vector<4x32x128xf32>
    %38 = vector.broadcast %36 : vector<4x1x128xf32> to vector<4x32x128xf32>
    %39 = arith.mulf %38, %37 : vector<4x32x128xf32>
    %40 = arith.addf %39, %35 : vector<4x32x128xf32>
    %c0_19 = arith.constant 0 : index
    %c0_20 = arith.constant 0 : index
    %c0_21 = arith.constant 0 : index
    %41 = vector.load %arg13[%c0_19, %c0_20, %c0_21] : memref<4x32x128xf32, #tpu.memory_space<vmem>>, vector<4x32x128xf32>
    tpu.vector_store %arg13[%c0_19, %c0_20, %c0_21], %40 {strides = array<i32>} : memref<4x32x128xf32, #tpu.memory_space<vmem>>, vector<4x32x128xf32>,
    %c0_22 = arith.constant 0 : index
    %c0_23 = arith.constant 0 : index
    %42 = vector.load %arg11[%c0_22, %c0_23] : memref<4x128xf32, #tpu.memory_space<vmem>>, vector<4x128xf32>
    tpu.vector_store %arg11[%c0_22, %c0_23], %23 {strides = array<i32>} : memref<4x128xf32, #tpu.memory_space<vmem>>, vector<4x128xf32>,
    %c2_i32 = arith.constant 2 : i32
    %43 = arith.cmpi eq, %arg2, %c2_i32 : i32
    %44 = arith.extui %43 : i1 to i32
    %c0_i32_24 = arith.constant 0 : i32
    %45 = arith.cmpi ne, %44, %c0_i32_24 : i32
    scf.if %45 {
      %c0_25 = arith.constant 0 : index
      %c0_26 = arith.constant 0 : index
      %46 = vector.load %arg12[%c0_25, %c0_26] : memref<4x128xf32, #tpu.memory_space<vmem>>, vector<4x128xf32>
      %47 = tpu.reciprocal %46 {approx = true} : vector<4x128xf32> -> vector<4x128xf32>
      %c0_27 = arith.constant 0 : index
      %c0_28 = arith.constant 0 : index
      %c0_29 = arith.constant 0 : index
      %48 = vector.load %arg13[%c0_27, %c0_28, %c0_29] : memref<4x32x128xf32, #tpu.memory_space<vmem>>, vector<4x32x128xf32>
      %49 = vector.shape_cast %47 : vector<4x128xf32> to vector<4x1x128xf32>
      %50 = vector.broadcast %49 : vector<4x1x128xf32> to vector<4x32x128xf32>
      %51 = arith.mulf %48, %50 : vector<4x32x128xf32>
      %c0_30 = arith.constant 0 : index
      %c0_31 = arith.constant 0 : index
      %52 = vector.load %arg7[%c0_30, %c0_31] : memref<128x128xf32, #tpu.memory_space<vmem>>, vector<128x128xf32>
      %53 = vector.shape_cast %51 : vector<4x32x128xf32> to vector<128x128xf32>
      %cst_32 = arith.constant dense<0.000000e+00> : vector<128x128xf32>
      %54 = tpu.matmul %52, %53, %cst_32 {dimension_numbers = #tpu.dot_dimension_numbers<[1], [0], [0], [1], [0, 0, 1, 1], [], []>} : vector<128x128xf32>, vector<128x128xf32>, vector<128x128xf32> -> vector<128x128xf32>
      %c0_33 = arith.constant 0 : index
      %c0_34 = arith.constant 0 : index
      %55 = vector.load %arg8[%c0_33, %c0_34] : memref<128x1xf32, #tpu.memory_space<vmem>>, vector<128x1xf32>
      %56 = vector.broadcast %55 : vector<128x1xf32> to vector<128x128xf32>
      %57 = arith.addf %54, %56 : vector<128x128xf32>
      %c0_35 = arith.constant 0 : index
      %c0_36 = arith.constant 0 : index
      %c0_37 = arith.constant 0 : index
      %58 = vector.load %arg9[%c0_35, %c0_36, %c0_37] : memref<1x128x128xf32, #tpu.memory_space<vmem>>, vector<1x128x128xf32>
      %59 = vector.shape_cast %58 : vector<1x128x128xf32> to vector<128x128xf32>
      %60 = vector.shape_cast %57 : vector<128x128xf32> to vector<1x128x128xf32>
      tpu.vector_store %arg9[%c0_35, %c0_36, %c0_37], %60 {strides = array<i32>} : memref<1x128x128xf32, #tpu.memory_space<vmem>>, vector<1x128x128xf32>,
    } else {
    }
    return
  }
  func.func @transform_0(%arg0: i32, %arg1: i32, %arg2: i32) -> (i32, i32, i32) {
    %c0_i32 = arith.constant 0 : i32
    %c0_i32_0 = arith.constant 0 : i32
    return %arg0, %c0_i32, %arg1 : i32, i32, i32
  }
  func.func @transform_1(%arg0: i32, %arg1: i32, %arg2: i32) -> (i32, i32, i32) {
    %c0_i32 = arith.constant 0 : i32
    %c0_i32_0 = arith.constant 0 : i32
    return %arg0, %c0_i32, %arg2 : i32, i32, i32
  }
  func.func @transform_2(%arg0: i32, %arg1: i32, %arg2: i32) -> (i32, i32) {
    %c0_i32 = arith.constant 0 : i32
    %c0_i32_0 = arith.constant 0 : i32
    %c0_i32_1 = arith.constant 0 : i32
    return %c0_i32, %c0_i32_0 : i32, i32
  }
  func.func @transform_3(%arg0: i32, %arg1: i32, %arg2: i32) -> (i32, i32) {
    %c0_i32 = arith.constant 0 : i32
    %c0_i32_0 = arith.constant 0 : i32
    %c0_i32_1 = arith.constant 0 : i32
    return %c0_i32, %c0_i32_0 : i32, i32
  }
  func.func @transform_4(%arg0: i32, %arg1: i32, %arg2: i32) -> (i32, i32) {
    %c0_i32 = arith.constant 0 : i32
    %c0_i32_0 = arith.constant 0 : i32
    %c0_i32_1 = arith.constant 0 : i32
    return %c0_i32, %c0_i32_0 : i32, i32
  }
  func.func @transform_5(%arg0: i32, %arg1: i32, %arg2: i32) -> (i32, i32) {
    %c0_i32 = arith.constant 0 : i32
    %c0_i32_0 = arith.constant 0 : i32
    %c0_i32_1 = arith.constant 0 : i32
    return %c0_i32, %c0_i32_0 : i32, i32
  }
  func.func @transform_6(%arg0: i32, %arg1: i32, %arg2: i32) -> (i32, i32, i32) {
    %c0_i32 = arith.constant 0 : i32
    %c0_i32_0 = arith.constant 0 : i32
    return %arg0, %c0_i32, %arg1 : i32, i32, i32
  }
}

</mosaic_0001>

<bundles_post_ra>
// kernel: tpu_custom_call.1
= control target key start
LH: loop header
LB: loop body
LE: loop exit
PB: predicated region body
PF: predicated region fallthrough
CT: control target
= control target key end

     0   :  { %s7412_s0 = inlined_call_operand.hbm [shape: f32[2,128,256], index: 0, kind: input, shape index: {}]   ;;  %s7413_s1 = inlined_call_operand.hbm [shape: f32[2,256,384], index: 1, kind: input, shape index: {}]   ;;  %s7414_s2 = inlined_call_operand.vmem [shape: f32[128,128], index: 2, kind: input, shape index: {}]   ;;  %s7415_s3 = inlined_call_operand.vmem [shape: f32[128,1], index: 3, kind: input, shape index: {}]   ;;  %s7416_s4 = inlined_call_operand.vmem [shape: f32[128,128], index: 4, kind: input, shape index: {}]   ;;  %s7417_s5 = inlined_call_operand.vmem [shape: f32[128,1], index: 5, kind: input, shape index: {}]   ;;  %s7418_s6 = inlined_call_operand.hbm [shape: f32[2,128,256], index: 6, kind: output, shape index: {}]  }
   0x1   :  { %7514 = sst [smem:[#allocation98_spill]] %s7412_s0 }
   0x2   :  { %7515 = sst [smem:[#allocation99_spill]] %s7416_s4 }
   0x3   :  { %7516 = sst [smem:[#allocation100_spill]] %s7417_s5 }
   0x4   :  { %7517 = sst [smem:[#allocation101_spill]] %s7418_s6 }
   0x5   :  { %11 = vsyncpa [#allocation7], 0 }
   0x6   :  { %13 = vsyncpa [#allocation7 + $0x1], 0 }
   0x7   :  { %14 = vsyncpa [#allocation10], 0 }
   0x8   :  { %16 = vsyncpa [#allocation10 + $0x1], 0 }
   0x9   :  { %17 = vsyncpa [#allocation8], 0 }
   0xa   :  { %19 = vsyncpa [#allocation8 + $0x1], 0  ;;  %s5619_s21 = smov 0   ;;  %s5621_s22 = smov 0  }
   0xb   :  { %s5623_s23 = smov 0   ;;  %s5625_s24 = smov 0  }
   0xc   :  { %s5627_s25 = smov 0   ;;  %s5629_s26 = smov 0  }
   0xd   :  { %s5631_s27 = smov 0   ;;  %s5633_s28 = smov 0  }
   0xe   :  { %s5635_s29 = smov 0   ;;  %s5637_s30 = smov 0  }
   0xf   :  { %s5639_s7 = smov 0   ;;  %s5641_s8 = smov 0  }
  0x10   :  { %s5643_s9 = smov 0  }
  0x11 LB: > { %7518 = sst [smem:[#allocation15_spill]] %s5531_s24  ;;  %s4135_s10 = sadd.s32 4294967295, %s5567_s9   ;;  %s5567_s9 = sphi %s5643_s9, %s25_s9   ;;  %s5563_s8 = sphi %s5641_s8, %s7746_s8   ;;  %s5559_s7 = sphi %s5639_s7, %s7736_s7   ;;  %s5555_s30 = sphi %s5637_s30, %s7745_s30   ;;  %s5551_s29 = sphi %s5635_s29, %s7744_s29   ;;  %s5547_s28 = sphi %s5633_s28, %s7734_s28   ;;  %s5543_s27 = sphi %s5631_s27, %s7743_s27   ;;  %s5539_s26 = sphi %s5629_s26, %s7742_s26   ;;  %s5535_s25 = sphi %s5627_s25, %s7741_s25   ;;  %s5531_s24 = sphi %s5625_s24, %s7740_s24   ;;  %s5527_s23 = sphi %s5623_s23, %s7739_s23   ;;  %s5523_s22 = sphi %s5621_s22, %s7738_s22   ;;  %s5519_s21 = sphi %s5619_s21, %s7737_s21  }
  0x12   : > { %7519 = sst [smem:[#allocation16_spill]] %s5547_s28  ;;  %s4136_s11 = sadd.s32 4294967294, %s5567_s9  }
  0x13   : > { %7520 = sst [smem:[#allocation17_spill]] %s5551_s29  ;;  %p60_p0 = scmp.ne.s32.totalorder %s5539_s26, %s5535_s25 }
  0x14   : > { %7521 = sst [smem:[#allocation18_spill]] %s5559_s7  ;;  %p7423_p1 = scmp.eq.s32.totalorder %s5567_s9, 0 }
  0x15   : > { %p66_p2 = scmp.ne.s32.totalorder %s5535_s25, %s5531_s24  ;;  %p5693_p3 = scmp.eq.s32.totalorder %s4135_s10, 0 }
  0x16   : > { %p5699_p4 = por %p7423_p1, %p60_p0  ;;  %p204_p5 = scmp.eq.s32.totalorder %s4135_s10, 11 }
  0x17   : > { %p5705_p6 = por %p5693_p3, %p66_p2  ;;  %p210_p7 = scmp.eq.s32.totalorder %s4136_s11, 11 }
  0x18   : > { %p5709_p8 = por %p204_p5, %p60_p0  ;;  %p7422_p10 = scmp.lt.s32.totalorder %s5567_s9, 12 }
  0x19   : > { %s7524_s16 = scalar_select %p5705_p6, 1, 0 }
  0x1a   : > { %s7525_s17 = scalar_select %p5709_p8, 1, 0 }
  0x1b   : > { %p5713_p9 = por %p210_p7, %p66_p2  ;;  %s242_s19 = sand.u32 1, %s5539_s26  }
  0x1c   : > { %7526 = sst [smem:[#allocation19_spill]] %s7525_s17  ;;  %s4140_s20 = sshll.u32 %s5563_s8, 5 }
  0x1d   : > { %s7527_s18 = scalar_select %p5713_p9, 1, 0 }
  0x1e   : > { %s4139_s13 = sshll.u32 %s242_s19, 7  ;;  %s251_s10 = sadd.s32 %s5559_s7, %s4140_s20 }
  0x1f   : > { %7528 = sst [smem:[#allocation20_spill]] %s7527_s18  ;;  %s4141_s12 = sshll.u32 %s251_s10, 7 }
  0x20   : > { %s246_s24 = scalar_lea.vmem [#allocation6], %s4139_s13  ;;  %s7529_s0 = sld [smem:[#allocation98_spill]] }
  0x21   : > { %s254_s6 = sshll.u32 %s246_s24, 4  ;;  %p5732_p11 = pnand %p7422_p10, %p5699_p4  ;;  %s5726_s6 = int_to_ptr.vmem [resolvable:$true] %s254_s6 }
  0x22   : > { %s5737_s24 = scalar_lea.sflag [#allocation7], %s242_s19 }
  0x23   : > { %p5367_p0 = pneg %p5732_p11 }
  0x26   : > { %s5724_s11 = scalar_lea.hbm %s7529_s0, %s4141_s12  ;;  %s5370_s13 = scalar_lea.hbm %s7529_s0, 8192 }
  0x27   : > { %s5365_s28 = scalar_lea.hbm %s5724_s11, 2048  ;;  %p5371_p4 = scmp.lt.u32.totalorder %s5724_s11, %s7529_s0 }
  0x28   : > { %p5366_p13 = scmp.ne.s32.totalorder %s5724_s11, %s5365_s28  ;;  %p5372_p7 = scmp.lt.u32.totalorder %s5370_s13, %s5365_s28 }
  0x29   : > { %p5374_p1 = scmp.lt.u32.totalorder %s5365_s28, %s5724_s11 }
  0x2a   : > { %p5368_p2 = pnand %p5367_p0, %p5366_p13  ;;  %p5373_p10 = por %p5372_p7, %p5371_p4 }
  0x2c   : > { %p5369_p5 = pneg %p5368_p2  ;;  %p5375_p12 = por %p5374_p1, %p5373_p10 }
  0x2e   : > { %p5376_p9 = pnand %p5375_p12, %p5369_p5 }
  0x30   : > { %5379 = shalt.err (!%p5376_p9)
}
  0x31   : > { %s5380_s19 = scalar_lea.vmem %s5726_s6, 2048  ;;  %s5569_s10 = smov [#allocation6]  }
  0x32   : > { %p5381_p13 = scmp.ne.s32.totalorder %s5726_s6, %s5380_s19  ;;  %s5385_s29 = sshll.u32 %s5569_s10, 4  ;;  %s5386_s29 = int_to_ptr.vmem [resolvable:$false] %s5385_s29 }
  0x33   : > { %s5387_s12 = scalar_lea.vmem %s5386_s29, 4096  ;;  %p5388_p6 = scmp.lt.s32.totalorder %s5726_s6, %s5386_s29 }
  0x34   : > { %p5383_p2 = pnand %p5381_p13, %p5367_p0  ;;  %p5389_p4 = scmp.lt.s32.totalorder %s5387_s12, %s5380_s19 }
  0x36   : > { %p5384_p8 = pneg %p5383_p2  ;;  %p5390_p7 = por %p5389_p4, %p5388_p6 }
  0x38   : > { %p5391_p1 = pnand %p5390_p7, %p5384_p8 }
  0x3a   : > { %5394 = shalt.err (!%p5391_p1)
}
  0x3b   : > { %s5570_s28 = smov 256   ;;  %s7426_s13 = smov 128  }
  0x3c   : > { %s7427_s15 = smov 8   ;;  %p284_p6 = scmp.lt.s32.totalorder %s5567_s9, 13 }
  0x3d   : > { %5102 = dma.hbm_to_vmem [thread:$0]  (!%p5732_p11), %s5724_s11, 2048, %s5726_s6, %s5737_s24, %s5570_s28, %s7426_s13, %s7427_s15  }
  0x3e   : > { %p7531_p8 = scmp.ge.s32.totalorder %s5567_s9, 1  ;;  %s37_s19 = sadd.s32 1, %s5555_s30 }
  0x3f   : > { %s44_s10 = sadd.s32 1, %s5563_s8  ;;  %p38_p10 = scmp.ge.s32.totalorder %s37_s19, 3 }
  0x40   : > { %p5770_p9 = pnand %p7531_p8, %p284_p6  ;;  %p88_p12 = scmp.ne.s32.totalorder %s5527_s23, %s5523_s22 }
  0x41   : > { %p94_p0 = scmp.ne.s32.totalorder %s5523_s22, %s5519_s21  ;;  %s7748_s19 = smov (%p38_p10, %s37_s19), 0 }
  0x42   : > { %7533 = sst [smem:[#allocation21_spill]] %s7748_s19  ;;  %s7534_s18 = sadd.s32 1, %s5559_s7 }
  0x43   : > { %s7750_s18 = smov (!%p38_p10, %s7534_s18), %s5559_s7  ;;  %s77_s6 = ssub.s32 %s5555_s30, %s7748_s19 }
  0x44   : > { %p7535_p11 = scmp.eq.s32.totalorder %s5567_s9, 0  ;;  %p42_p13 = scmp.ge.s32.totalorder %s7750_s18, 2 }
  0x45   : > { %p5796_p2 = por %p94_p0, %p5693_p3  ;;  %s264_s12 = sand.u32 1, %s5527_s23  }
  0x46   : > { %p5790_p5 = por %p88_p12, %p7535_p11  ;;  %s5092_s21 = smul.u32 96, %s5563_s8 }
  0x47   : > { %s7537_s24 = scalar_select %p5796_p2, 1, 0 }
  0x48   : > { %s7752_s18 = smov (%p42_p13, %s7750_s18), 0  ;;  %s7754_s10 = smov (!%p42_p13, %s44_s10), %s5563_s8 }
  0x49   : > { %7538 = sst [smem:[#allocation22_spill]] %s7752_s18  ;;  %s49_s28 = ssub.s32 %s5559_s7, %s7752_s18 }
  0x4a   : > { %p46_p4 = scmp.ge.s32.totalorder %s7754_s10, 2  ;;  %s4142_s13 = sshll.u32 %s264_s12, 8 }
  0x4b   : > { %s273_s14 = sadd.s32 %s5555_s30, %s5092_s21  ;;  %s268_s29 = scalar_lea.vmem [#allocation9], %s4142_s13 }
  0x4c   : > { %s7756_s10 = smov (%p46_p4, %s7754_s10), 0  ;;  %s4143_s15 = sshll.u32 %s273_s14, 7 }
  0x4d   : > { %s276_s0 = sshll.u32 %s268_s29, 4  ;;  %s48_s19 = ssub.s32 %s5563_s8, %s7756_s10  ;;  %s5817_s0 = int_to_ptr.vmem [resolvable:$true] %s276_s0 }
  0x4e   : > { %s5815_s4 = scalar_lea.hbm %s7413_s1, %s4143_s15  ;;  %s50_s18 = sor.u32 %s49_s28, %s48_s19 }
  0x4f   : > { %s78_s7 = sor.u32 %s77_s6, %s48_s19  ;;  %p51_p3 = scmp.eq.s32.totalorder %s50_s18, 0 }
  0x50   : > { %p79_p7 = scmp.eq.s32.totalorder %s78_s7, 0  ;;  %p7539_p1 = scmp.lt.s32.totalorder %s5567_s9, 12 }
  0x51   : > { %s7541_s29 = sadd.s32 1, %s5539_s26  ;;  %s7542_s17 = sadd.s32 1, %s5527_s23 }
  0x52   : > { %p5823_p6 = pnand %p7539_p1, %p5790_p5  ;;  %s5837_s19 = scalar_lea.sflag [#allocation10], %s264_s12 }
  0x53   : > { %s5830_s5 = scalar_select %p51_p3, %s5539_s26, %s7541_s29  }
  0x54   : > { %s5835_s15 = scalar_select %p79_p7, %s5527_s23, %s7542_s17  }
  0x55   : > { %s5395_s18 = scalar_lea.hbm %s5815_s4, 4096  ;;  %p5397_p10 = pneg %p5823_p6 }
  0x56   : > { %p5396_p8 = scmp.ne.s32.totalorder %s5815_s4, %s5395_s18  ;;  %s5400_s11 = scalar_lea.hbm %s7413_s1, 24576 }
  0x57   : > { %p5401_p11 = scmp.lt.u32.totalorder %s5815_s4, %s7413_s1  ;;  %p5402_p5 = scmp.lt.u32.totalorder %s5400_s11, %s5395_s18 }
  0x58   : > { %p5398_p12 = pnand %p5397_p10, %p5396_p8  ;;  %p5404_p4 = scmp.lt.u32.totalorder %s5395_s18, %s5815_s4 }
  0x59   : > { %p5403_p13 = por %p5402_p5, %p5401_p11 }
  0x5a   : > { %p5399_p0 = pneg %p5398_p12 }
  0x5b   : > { %p5405_p3 = por %p5404_p4, %p5403_p13 }
  0x5d   : > { %p5406_p7 = pnand %p5405_p3, %p5399_p0 }
  0x5f   : > { %5409 = shalt.err (!%p5406_p7)
}
  0x60   : > { %s5410_s12 = scalar_lea.vmem %s5817_s0, 4096  ;;  %s5573_s14 = smov [#allocation9]  }
  0x61   : > { %p5411_p1 = scmp.ne.s32.totalorder %s5817_s0, %s5410_s12  ;;  %s5415_s29 = sshll.u32 %s5573_s14, 4  ;;  %s5416_s29 = int_to_ptr.vmem [resolvable:$false] %s5415_s29 }
  0x62   : > { %s5417_s17 = scalar_lea.vmem %s5416_s29, 8192  ;;  %p5418_p2 = scmp.lt.s32.totalorder %s5817_s0, %s5416_s29 }
  0x63   : > { %p5413_p8 = pnand %p5411_p1, %p5397_p10  ;;  %p5419_p11 = scmp.lt.s32.totalorder %s5417_s17, %s5410_s12 }
  0x65   : > { %p5414_p12 = pneg %p5413_p8  ;;  %p5420_p5 = por %p5419_p11, %p5418_p2 }
  0x67   : > { %p5421_p13 = pnand %p5420_p5, %p5414_p12 }
  0x69   : > { %5424 = shalt.err (!%p5421_p13)
}
  0x6a   : > { %s5574_s18 = smov 384   ;;  %s7543_s7 = smov 8  }
  0x6b   : > { %s7544_s6 = smov 128   ;;  %288 = sbr.rel (%p5770_p9) target bundleno = 1775 (0x6ef), region = 44 }
  0x6c   : > { %5105 = dma.hbm_to_vmem [thread:$0]  (!%p5823_p6), %s5815_s4, 4096, %s5817_s0, %s5837_s19, %s5574_s18, %s7544_s6, %s7543_s7  }
  0x72   : > { %s5870_s11 = sand.u32 1, %s5535_s25   ;;  %p7545_p2 = scmp.ne.s32.totalorder %s7524_s16, 0 }
  0x73   : > { %s4145_s21 = sshll.u32 %s5870_s11, 7  ;;  %s291_s28 = scalar_lea.sflag [#allocation7], %s5870_s11 }
  0x74   : > { %s5874_s12 = scalar_lea.vmem [#allocation6], %s4145_s21 }
  0x75   : > { %5506 = dma.done.wait (%p7545_p2), %s291_s28, 2048  }
  0x76   : > { %5508 = vsyncadd (%p7545_p2), %s291_s28, 4294965248  ;;  %s299_s0 = sand.u32 1, %s5523_s22   ;;  %p7546_p9 = scmp.ne.s32.totalorder %s7537_s24, 0 }
  0x77   : > { %s4146_s4 = sshll.u32 %s299_s0, 8  ;;  %s300_s20 = scalar_lea.sflag [#allocation10], %s299_s0 }
  0x78   : > { %s5881_s13 = scalar_lea.vmem [#allocation9], %s4146_s4 }
  0x79   : > { %5510 = dma.done.wait (%p7546_p9), %s300_s20, 4096  }
  0x7a   : > { %5512 = vsyncadd (%p7546_p9), %s300_s20, 4294963200  ;;  %s5887_s19 = scalar_lea.vmem [#allocation11], %s4145_s21  ;;  %p4148_p6 = scmp.ne.s32.totalorder %s5543_s27, 0 }
  0x7b   : > { %v357_v0 = vld [vmem:[%s5874_s12] sm:$0xff] (!%p4148_p6)  ;;  %v358_v1 = vld [vmem:[%s5874_s12 + $0x8] sm:$0xff] (!%p4148_p6)  ;;  %v359_v2 = vld [vmem:[%s5874_s12 + $0x10] sm:$0xff] (!%p4148_p6)  ;;  %v5575_v5 = vmov (!%p4148_p6), 0   ;;  %v5576_v57 = vmov (!%p4148_p6), -2.3819763e+38  }
  0x7c   : > { %340 = sbr.rel (%p4148_p6) target bundleno = 386 (0x182), region = 56  ;;  %v4836_v3 = vpack.c.bf16 (!%p4148_p6), %v358_v1, %v357_v0  ;;  %v360_v4 = vld [vmem:[%s5874_s12 + $0x18] sm:$0xff] (!%p4148_p6)  ;;  %5230 = vset.pattern.permute.xlu1 (!%p4148_p6), %v5575_v5  ;;  %5229 = vset.pattern.permute.xlu0 (!%p4148_p6), %v5575_v5  ;;  %v361_v7 = vld [vmem:[%s5874_s12 + $0x20] sm:$0xff] (!%p4148_p6)  ;;  %v362_v8 = vld [vmem:[%s5874_s12 + $0x28] sm:$0xff] (!%p4148_p6)  ;;  %630 = vst [vmem:[#allocation3] sm:$0xf] (!%p4148_p6), %v5576_v57 }
  0x7d   : > { %v4840_v6 = vpack.c.bf16 (!%p4148_p6), %v360_v4, %v359_v2  ;;  %v4844_v9 = vpack.c.bf16 (!%p4148_p6), %v362_v8, %v361_v7  ;;  %v341_v10 = vld [vmem:[%s7414_s2] sm:$0xff] (!%p4148_p6)  ;;  %v363_v12 = vld [vmem:[%s5874_s12 + $0x30] sm:$0xff] (!%p4148_p6)  ;;  %v365_v15 = vld [vmem:[%s5874_s12 + $0x40] sm:$0xff] (!%p4148_p6)  ;;  %v5577_v58 = vmov (!%p4148_p6), 0.0  }
  0x7e   : > { %4837 = vmatprep.subr.bf16.mxu0 (!%p4148_p6), %v4836_v3  ;;  %5060 = vmatprep.subr.bf16.mxu1 (!%p4148_p6), %v4836_v3  ;;  %v349_v11 = vld [vmem:[%s7414_s2 + $0x40] sm:$0xff] (!%p4148_p6)  ;;  %v366_v16 = vld [vmem:[%s5874_s12 + $0x48] sm:$0xff] (!%p4148_p6)  ;;  %v376_v19 = vld [vmem:[%s7415_s3 + $0x18] sm:$0xff] (!%p4148_p6)  ;;  %631 = vst [vmem:[#allocation4] sm:$0xf] (!%p4148_p6), %v5577_v58 }
  0x7f   : > { %4839 = vmatpush3.bf16.msra.mxu0 (!%p4148_p6), %v4836_v3  ;;  %5068 = vmatpush3.bf16.msra.mxu1 (!%p4148_p6), %v4836_v3  ;;  %v364_v13 = vld [vmem:[%s5874_s12 + $0x38] sm:$0xff] (!%p4148_p6)  ;;  %v375_v17 = vld [vmem:[%s7415_s3 + $0x10] sm:$0xff] (!%p4148_p6)  ;;  %v4852_v20 = vpack.c.bf16 (!%p4148_p6), %v366_v16, %v365_v15  ;;  %v367_v21 = vld [vmem:[%s5874_s12 + $0x50] sm:$0xff] (!%p4148_p6)  ;;  %632 = vst [vmem:[#allocation5] sm:$0xff] (!%p4148_p6), %v5577_v58 }
  0x80   : > { %4841 = vmatprep.subr.bf16.mxu0 (!%p4148_p6), %v4840_v6  ;;  %5061 = vmatprep.subr.bf16.mxu1 (!%p4148_p6), %v4840_v6  ;;  %v4848_v14 = vpack.c.bf16 (!%p4148_p6), %v364_v13, %v363_v12  ;;  %v373_v18 = vld [vmem:[%s7415_s3] sm:$0xff] (!%p4148_p6)  ;;  %v374_v23 = vld [vmem:[%s7415_s3 + $0x8] sm:$0xff] (!%p4148_p6)  ;;  %v370_v27 = vld [vmem:[%s5874_s12 + $0x68] sm:$0xff] (!%p4148_p6)  ;;  %633 = vst [vmem:[#allocation5 + $0x8] sm:$0xff] (!%p4148_p6), %v5577_v58 }
  0x81   : > { %4476 = vmatprep.mubr.f32.mxu0 (!%p4148_p6), %v341_v10  ;;  %4488 = vmatprep.mubr.f32.mxu1 (!%p4148_p6), %v349_v11  ;;  %v368_v22 = vld [vmem:[%s5874_s12 + $0x58] sm:$0xff] (!%p4148_p6)  ;;  %v378_v24 = vld [vmem:[%s7415_s3 + $0x28] sm:$0xff] (!%p4148_p6)  ;;  %v380_v29 = vld [vmem:[%s7415_s3 + $0x38] sm:$0xff] (!%p4148_p6)  ;;  %634 = vst [vmem:[#allocation5 + $0x10] sm:$0xff] (!%p4148_p6), %v5577_v58 }
  0x82   : > { %401 = vperm.xlu1 (!%p4148_p6), %5230, %v375_v17   ;;  %391 = vperm.xlu0 (!%p4148_p6), %5229, %v373_v18   ;;  %v4856_v25 = vpack.c.bf16 (!%p4148_p6), %v368_v22, %v367_v21  ;;  %v369_v26 = vld [vmem:[%s5874_s12 + $0x60] sm:$0xff] (!%p4148_p6)  ;;  %v377_v28 = vld [vmem:[%s7415_s3 + $0x20] sm:$0xff] (!%p4148_p6)  ;;  %v371_v31 = vld [vmem:[%s5874_s12 + $0x70] sm:$0xff] (!%p4148_p6)  ;;  %635 = vst [vmem:[#allocation5 + $0x18] sm:$0xff] (!%p4148_p6), %v5577_v58 }
  0x83   : > { %4843 = vmatpush3.bf16.msra.mxu0 %v4840_v6  ;;  %5069 = vmatpush3.bf16.msra.mxu1 %v4840_v6  ;;  %v4860_v30 = vpack.c.bf16 %v370_v27, %v369_v26  ;;  %v372_v32 = vld [vmem:[%s5874_s12 + $0x78] sm:$0xff]  ;;  %v379_v33 = vld [vmem:[%s7415_s3 + $0x30] sm:$0xff]  ;;  %v382_v34 = vld [vmem:[%s7415_s3 + $0x48] sm:$0xff]  ;;  %636 = vst [vmem:[#allocation5 + $0x20] sm:$0xff] %v5577_v58 }
  0x84   : > { %4845 = vmatprep.subr.bf16.mxu0 %v4844_v9  ;;  %5062 = vmatprep.subr.bf16.mxu1 %v4844_v9  ;;  %v4864_v35 = vpack.c.bf16 %v372_v32, %v371_v31  ;;  %v381_v36 = vld [vmem:[%s7415_s3 + $0x40] sm:$0xff]  ;;  %v384_v37 = vld [vmem:[%s7415_s3 + $0x58] sm:$0xff]  ;;  %v383_v38 = vld [vmem:[%s7415_s3 + $0x50] sm:$0xff]  ;;  %637 = vst [vmem:[#allocation5 + $0x28] sm:$0xff] %v5577_v58 }
  0x85   : > { %v342_v39 = vld [vmem:[%s7414_s2 + $0x8] sm:$0xff]  ;;  %v343_v41 = vld [vmem:[%s7414_s2 + $0x10] sm:$0xff]  ;;  %v385_v44 = vld [vmem:[%s7415_s3 + $0x60] sm:$0xff]  ;;  %638 = vst [vmem:[#allocation5 + $0x30] sm:$0xff] %v5577_v58 }
  0x86   : > { %406 = vperm.xlu1 %5230, %v376_v19   ;;  %396 = vperm.xlu0 %5229, %v374_v23   ;;  %v350_v40 = vld [vmem:[%s7414_s2 + $0x48] sm:$0xff]  ;;  %v351_v42 = vld [vmem:[%s7414_s2 + $0x50] sm:$0xff]  ;;  %v344_v45 = vld [vmem:[%s7414_s2 + $0x18] sm:$0xff]  ;;  %639 = vst [vmem:[#allocation5 + $0x38] sm:$0xff] %v5577_v58 }
  0x87   : > { %4847 = vmatpush3.bf16.msra.mxu0 %v4844_v9  ;;  %5070 = vmatpush3.bf16.msra.mxu1 %v4844_v9  ;;  %v386_v43 = vld [vmem:[%s7415_s3 + $0x68] sm:$0xff]  ;;  %v352_v46 = vld [vmem:[%s7414_s2 + $0x58] sm:$0xff]  ;;  %v345_v47 = vld [vmem:[%s7414_s2 + $0x20] sm:$0xff]  ;;  %640 = vst [vmem:[#allocation5 + $0x40] sm:$0xff] %v5577_v58 }
  0x88   : > { %4849 = vmatprep.subr.bf16.mxu0 %v4848_v14  ;;  %5063 = vmatprep.subr.bf16.mxu1 %v4848_v14  ;;  %v353_v48 = vld [vmem:[%s7414_s2 + $0x60] sm:$0xff]  ;;  %v388_v49 = vld [vmem:[%s7415_s3 + $0x78] sm:$0xff]  ;;  %v387_v50 = vld [vmem:[%s7415_s3 + $0x70] sm:$0xff]  ;;  %641 = vst [vmem:[#allocation5 + $0x48] sm:$0xff] %v5577_v58 }
  0x89   : > { %v346_v51 = vld [vmem:[%s7414_s2 + $0x28] sm:$0xff]  ;;  %v347_v53 = vld [vmem:[%s7414_s2 + $0x30] sm:$0xff]  ;;  %v348_v55 = vld [vmem:[%s7414_s2 + $0x38] sm:$0xff]  ;;  %642 = vst [vmem:[#allocation5 + $0x50] sm:$0xff] %v5577_v58 }
  0x8a   : > { %416 = vperm.xlu1 %5230, %v378_v24   ;;  %411 = vperm.xlu0 %5229, %v377_v28   ;;  %v354_v52 = vld [vmem:[%s7414_s2 + $0x68] sm:$0xff]  ;;  %v355_v54 = vld [vmem:[%s7414_s2 + $0x70] sm:$0xff]  ;;  %v356_v56 = vld [vmem:[%s7414_s2 + $0x78] sm:$0xff]  ;;  %643 = vst [vmem:[#allocation5 + $0x58] sm:$0xff] %v5577_v58 }
  0x8b   : > { %4851 = vmatpush3.bf16.msra.mxu0 %v4848_v14  ;;  %5071 = vmatpush3.bf16.msra.mxu1 %v4848_v14  ;;  %644 = vst [vmem:[#allocation5 + $0x60] sm:$0xff] %v5577_v58  ;;  %645 = vst [vmem:[#allocation5 + $0x68] sm:$0xff] %v5577_v58 }
  0x8c   : > { %4853 = vmatprep.subr.bf16.mxu0 %v4852_v20  ;;  %5064 = vmatprep.subr.bf16.mxu1 %v4852_v20  ;;  %646 = vst [vmem:[#allocation5 + $0x70] sm:$0xff] %v5577_v58  ;;  %647 = vst [vmem:[#allocation5 + $0x78] sm:$0xff] %v5577_v58 }
  0x8e   : > { %426 = vperm.xlu1 %5230, %v380_v29   ;;  %421 = vperm.xlu0 %5229, %v379_v33  }
  0x8f   : > { %4855 = vmatpush3.bf16.msra.mxu0 %v4852_v20  ;;  %5072 = vmatpush3.bf16.msra.mxu1 %v4852_v20 }
  0x90   : > { %4857 = vmatprep.subr.bf16.mxu0 %v4856_v25  ;;  %5065 = vmatprep.subr.bf16.mxu1 %v4856_v25 }
  0x92   : > { %436 = vperm.xlu1 %5230, %v382_v34   ;;  %431 = vperm.xlu0 %5229, %v381_v36  }
  0x93   : > { %4859 = vmatpush3.bf16.msra.mxu0 %v4856_v25  ;;  %5073 = vmatpush3.bf16.msra.mxu1 %v4856_v25 }
  0x94   : > { %4861 = vmatprep.subr.bf16.mxu0 %v4860_v30  ;;  %5066 = vmatprep.subr.bf16.mxu1 %v4860_v30 }
  0x96   : > { %446 = vperm.xlu1 %5230, %v384_v37   ;;  %441 = vperm.xlu0 %5229, %v383_v38  }
  0x97   : > { %4863 = vmatpush3.bf16.msra.mxu0 %v4860_v30  ;;  %5074 = vmatpush3.bf16.msra.mxu1 %v4860_v30 }
  0x98   : > { %4865 = vmatprep.subr.bf16.mxu0 %v4864_v35  ;;  %5067 = vmatprep.subr.bf16.mxu1 %v4864_v35 }
  0x9a   : > { %456 = vperm.xlu1 %5230, %v386_v43   ;;  %451 = vperm.xlu0 %5229, %v385_v44  }
  0x9b   : > { %4867 = vmatpush3.bf16.msra.mxu0 %v4864_v35  ;;  %5075 = vmatpush3.bf16.msra.mxu1 %v4864_v35 }
  0x9e   : > { %4477 = vmatmul.mubr.f32.vlgmr.msra.gmra.mrb[0].mxu0 %v342_v39  ;;  %4489 = vmatmul.mubr.f32.vlgmr.msra.gmra.mrb[0].mxu1 %v350_v40 }
  0x9f   : > { %4479 = vmatprep.mubr.f32.mxu0 %v343_v41  ;;  %4491 = vmatprep.mubr.f32.mxu1 %v351_v42 }
  0xa0   : > { %466 = vperm.xlu1 %5230, %v388_v49   ;;  %461 = vperm.xlu0 %5229, %v387_v50  }
  0xa2   : > { %4480 = vmatmul.mubr.f32.gmra.mrb[2].mxu0 %v344_v45  ;;  %4492 = vmatmul.mubr.f32.gmra.mrb[2].mxu1 %v352_v46 }
  0xa3   : > { %4482 = vmatprep.mubr.f32.mxu0 %v345_v47  ;;  %4494 = vmatprep.mubr.f32.mxu1 %v353_v48 }
  0xa6   : > { %4483 = vmatmul.mubr.f32.gmra.mrb[4].mxu0 %v346_v51  ;;  %4495 = vmatmul.mubr.f32.gmra.mrb[4].mxu1 %v354_v52 }
  0xa7   : > { %4485 = vmatprep.mubr.f32.mxu0 %v347_v53  ;;  %4497 = vmatprep.mubr.f32.mxu1 %v355_v54 }
  0xaa   : > { %4486 = vmatmul.mubr.f32.gmra.mrb[6].mxu0 %v348_v55  ;;  %4498 = vmatmul.mubr.f32.gmra.mrb[6].mxu1 %v356_v56 }
 0x101   : > { %v402_v59 = vpop.permute.xlu1 %401  ;;  %v392_v60 = vpop.permute.xlu0 %391 }
 0x105   : > { %v407_v61 = vpop.permute.xlu1 %406  ;;  %v397_v62 = vpop.permute.xlu0 %396 }
 0x109   : > { %v417_v63 = vpop.permute.xlu1 %416  ;;  %v412_v0 = vpop.permute.xlu0 %411 }
 0x10d   : > { %v427_v1 = vpop.permute.xlu1 %426  ;;  %v422_v2 = vpop.permute.xlu0 %421 }
 0x111   : > { %v437_v3 = vpop.permute.xlu1 %436  ;;  %v432_v4 = vpop.permute.xlu0 %431 }
 0x115   : > { %v447_v5 = vpop.permute.xlu1 %446  ;;  %v442_v6 = vpop.permute.xlu0 %441 }
 0x119   : > { %v457_v15 = vpop.permute.xlu1 %456  ;;  %v452_v16 = vpop.permute.xlu0 %451 }
 0x11f   : > { %v467_v33 = vpop.permute.xlu1 %466  ;;  %v462_v34 = vpop.permute.xlu0 %461 }
 0x171   : > { %v4478_v7 = vpop.f32.mrb[0].mxu0  ;;  %v4490_v8 = vpop.f32.mrb[0].mxu1 }
 0x172   : > { %v541_v9 = vadd.f32 %v4478_v7, %v397_v62  ;;  %v581_v10 = vadd.f32 %v4490_v8, %v437_v3  ;;  %v535_v11 = vpop.f32.mrb[1].mxu0  ;;  %v575_v12 = vpop.f32.mrb[1].mxu1 }
 0x173   : > { %v536_v13 = vadd.f32 %v535_v11, %v392_v60  ;;  %v576_v14 = vadd.f32 %v575_v12, %v432_v4 }
 0x174   : > { %615 = vst [vmem:[#allocation2 + $0x8] sm:$0xff] %v541_v9  ;;  %623 = vst [vmem:[#allocation2 + $0x48] sm:$0xff] %v581_v10 }
 0x175   : > { %614 = vst [vmem:[#allocation2] sm:$0xff] %v536_v13  ;;  %622 = vst [vmem:[#allocation2 + $0x40] sm:$0xff] %v576_v14  ;;  %v4481_v17 = vpop.f32.mrb[2].mxu0  ;;  %v4493_v18 = vpop.f32.mrb[2].mxu1 }
 0x176   : > { %v551_v19 = vadd.f32 %v4481_v17, %v407_v61  ;;  %v591_v20 = vadd.f32 %v4493_v18, %v447_v5  ;;  %v545_v21 = vpop.f32.mrb[3].mxu0  ;;  %v585_v22 = vpop.f32.mrb[3].mxu1 }
 0x177   : > { %v546_v23 = vadd.f32 %v545_v21, %v402_v59  ;;  %v586_v24 = vadd.f32 %v585_v22, %v442_v6 }
 0x178   : > { %617 = vst [vmem:[#allocation2 + $0x18] sm:$0xff] %v551_v19  ;;  %625 = vst [vmem:[#allocation2 + $0x58] sm:$0xff] %v591_v20 }
 0x179   : > { %616 = vst [vmem:[#allocation2 + $0x10] sm:$0xff] %v546_v23  ;;  %624 = vst [vmem:[#allocation2 + $0x50] sm:$0xff] %v586_v24  ;;  %v4484_v25 = vpop.f32.mrb[4].mxu0  ;;  %v4496_v26 = vpop.f32.mrb[4].mxu1 }
 0x17a   : > { %v561_v27 = vadd.f32 %v4484_v25, %v417_v63  ;;  %v601_v28 = vadd.f32 %v4496_v26, %v457_v15  ;;  %v555_v29 = vpop.f32.mrb[5].mxu0  ;;  %v595_v30 = vpop.f32.mrb[5].mxu1 }
 0x17b   : > { %v556_v31 = vadd.f32 %v555_v29, %v412_v0  ;;  %v596_v32 = vadd.f32 %v595_v30, %v452_v16 }
 0x17c   : > { %619 = vst [vmem:[#allocation2 + $0x28] sm:$0xff] %v561_v27  ;;  %627 = vst [vmem:[#allocation2 + $0x68] sm:$0xff] %v601_v28 }
 0x17d   : > { %618 = vst [vmem:[#allocation2 + $0x20] sm:$0xff] %v556_v31  ;;  %626 = vst [vmem:[#allocation2 + $0x60] sm:$0xff] %v596_v32  ;;  %v4487_v35 = vpop.f32.mrb[6].mxu0  ;;  %v4499_v36 = vpop.f32.mrb[6].mxu1 }
 0x17e   : > { %v571_v37 = vadd.f32 %v4487_v35, %v427_v1  ;;  %v611_v38 = vadd.f32 %v4499_v36, %v467_v33  ;;  %v565_v39 = vpop.f32.mrb[7].mxu0  ;;  %v605_v40 = vpop.f32.mrb[7].mxu1 }
 0x17f   : > { %v566_v41 = vadd.f32 %v565_v39, %v422_v2  ;;  %v606_v42 = vadd.f32 %v605_v40, %v462_v34 }
 0x180   : > { %621 = vst [vmem:[#allocation2 + $0x38] sm:$0xff] %v571_v37  ;;  %629 = vst [vmem:[#allocation2 + $0x78] sm:$0xff] %v611_v38 }
 0x181   : > { %620 = vst [vmem:[#allocation2 + $0x30] sm:$0xff] %v566_v41  ;;  %628 = vst [vmem:[#allocation2 + $0x70] sm:$0xff] %v606_v42 }
 0x182 PF: > { %v680_v44 = vld [vmem:[#allocation2] sm:$0xff]  ;;  %v681_v46 = vld [vmem:[#allocation2 + $0x8] sm:$0xff]  ;;  %v682_v48 = vld [vmem:[#allocation2 + $0x10] sm:$0xff]  ;;  %vm728_vm0 = vcmask 261120   ;;  %s4213_s28 = sshll.u32 %s5543_s27, 7  ;;  %vm1871_vm2 = vcmask 130112  }
 0x183   : > { %696 = vxpose.xlu0.b32.start [1/4] (short) %v680_v44, 128  ;;  %v685_v45 = vld [vmem:[#allocation2 + $0x28] sm:$0xff]  ;;  %v649_v50 = vld [vmem:[%s5881_s13 + $0x8] sm:$0xff]  ;;  %v650_v54 = vld [vmem:[%s5881_s13 + $0x10] sm:$0xff]  ;;  %vm1878_vm3 = vcmask 195712   ;;  %vm1885_vm4 = vcmask 261312   ;;  %vm1892_vm5 = vcmask 326912  }
 0x184   : > { %v684_v43 = vld [vmem:[#allocation2 + $0x20] sm:$0xff]  ;;  %v648_v49 = vld [vmem:[%s5881_s13] sm:$0xff]  ;;  %v653_v53 = vld [vmem:[%s5881_s13 + $0x28] sm:$0xff]  ;;  %vm1899_vm6 = vcmask 392512   ;;  %vm1906_vm7 = vcmask 458112   ;;  %vm1913_vm8 = vcmask 523712  }
 0x185   : > { %922 = vxpose.xlu1.b32.start [1/4] (short) %v684_v43, 128  ;;  %v4868_v51 = vpack.c.bf16 %v649_v50, %v648_v49  ;;  %v652_v52 = vld [vmem:[%s5881_s13 + $0x20] sm:$0xff]  ;;  %v651_v56 = vld [vmem:[%s5881_s13 + $0x18] sm:$0xff]  ;;  %v654_v57 = vld [vmem:[%s5881_s13 + $0x30] sm:$0xff]  ;;  %vm1920_vm9 = vcmask 589312   ;;  %vm1927_vm10 = vcmask 654912   ;;  %vm1934_vm11 = vcmask 720512  }
 0x186   : > { %v4876_v55 = vpack.c.bf16 %v653_v53, %v652_v52  ;;  %v655_v58 = vld [vmem:[%s5881_s13 + $0x38] sm:$0xff]  ;;  %v4872_v59 = vpack.c.bf16 %v651_v56, %v650_v54  ;;  %v683_v62 = vld [vmem:[#allocation2 + $0x18] sm:$0xff]  ;;  %v660_v63 = vld [vmem:[%s5881_s13 + $0x60] sm:$0xff]  ;;  %vm7503_vm12 = vcmask 786112   ;;  %vm7504_vm13 = vcmask 851712   ;;  %p4214_p10 = scmp.ne.s32.totalorder %s5543_s27, 2 }
 0x187   : > { %697 = vxpose.xlu0.b32.cont [2/4] (short) %v681_v46, 128  ;;  %4869 = vmatprep.subr.bf16.mxu0 %v4868_v51  ;;  %v4880_v60 = vpack.c.bf16 %v655_v58, %v654_v57  ;;  %v687_v61 = vld [vmem:[#allocation2 + $0x38] sm:$0xff]  ;;  %v661_v0 = vld [vmem:[%s5881_s13 + $0x68] sm:$0xff]  ;;  %v656_v2 = vld [vmem:[%s5881_s13 + $0x40] sm:$0xff]  ;;  %vm1955_vm14 = vcmask 917312   ;;  %vm1962_vm15 = vcmask 982912   ;;  %s7720_s12 = sld [smem:[#allocation99_spill]] (!%p4214_p10) }
 0x188   : > { %v686_v47 = vld [vmem:[#allocation2 + $0x30] sm:$0xff]  ;;  %4871 = vmatpush3.bf16.msra.mxu0 %v4868_v51  ;;  %4877 = vmatprep.subr.bf16.mxu1 %v4876_v55  ;;  %v4892_v1 = vpack.c.bf16 %v661_v0, %v660_v63  ;;  %v692_v5 = vld [vmem:[#allocation2 + $0x60] sm:$0xff]  ;;  %v693_v7 = vld [vmem:[#allocation2 + $0x68] sm:$0xff]  ;;  %s7721_s27 = sld [smem:[#allocation100_spill]] (!%p4214_p10) }
 0x189   : > { %923 = vxpose.xlu1.b32.cont [2/4] (short) %v685_v45, 128  ;;  %4879 = vmatpush3.bf16.msra.mxu1 %v4876_v55  ;;  %v657_v3 = vld [vmem:[%s5881_s13 + $0x48] sm:$0xff]  ;;  %v688_v6 = vld [vmem:[#allocation2 + $0x40] sm:$0xff]  ;;  %v689_v8 = vld [vmem:[#allocation2 + $0x48] sm:$0xff] }
 0x18a   : > { %4873 = vmatprep.subr.bf16.mxu0 %v4872_v59  ;;  %4881 = vmatprep.subr.bf16.mxu1 %v4880_v60  ;;  %v4884_v4 = vpack.c.bf16 %v657_v3, %v656_v2  ;;  %v694_v9 = vld [vmem:[#allocation2 + $0x70] sm:$0xff]  ;;  %v695_v11 = vld [vmem:[#allocation2 + $0x78] sm:$0xff]  ;;  %v663_v16 = vld [vmem:[%s5881_s13 + $0x78] sm:$0xff] }
 0x18b   : > { %698 = vxpose.xlu0.b32.cont [3/4] (short) %v682_v48, 128  ;;  %v690_v10 = vld [vmem:[#allocation2 + $0x50] sm:$0xff]  ;;  %v691_v12 = vld [vmem:[#allocation2 + $0x58] sm:$0xff]  ;;  %v659_v18 = vld [vmem:[%s5881_s13 + $0x58] sm:$0xff] }
 0x18c   : > { %4875 = vmatpush3.bf16.msra.mxu0 %v4872_v59  ;;  %v662_v13 = vld [vmem:[%s5881_s13 + $0x70] sm:$0xff] }
 0x18d   : > { %924 = vxpose.xlu1.b32.cont [3/4] (short) %v686_v47, 128  ;;  %4883 = vmatpush3.bf16.msra.mxu1 %v4880_v60  ;;  %v658_v17 = vld [vmem:[%s5881_s13 + $0x50] sm:$0xff]  ;;  %v4896_v19 = vpack.c.bf16 %v663_v16, %v662_v13 }
 0x18e   : > { %4893 = vmatprep.subr.bf16.mxu1 %v4892_v1  ;;  %4885 = vmatprep.subr.bf16.mxu0 %v4884_v4  ;;  %v4888_v20 = vpack.c.bf16 %v659_v18, %v658_v17  ;;  %s7722_s14 = smov (!%p4214_p10), %s7721_s27 }
 0x18f   : > { %699 = vxpose.xlu0.b32.end [4/4] (short) %v683_v62, 128 }
 0x191   : > { %925 = vxpose.xlu1.b32.end [4/4] (short) %v687_v61, 128 }
 0x1c0   : > { %1147 = vxpose.xlu0.b32.start [1/4] (short) %v688_v6, 128 }
 0x1c2   : > { %1372 = vxpose.xlu1.b32.start [1/4] (short) %v692_v5, 128 }
 0x1c4   : > { %1148 = vxpose.xlu0.b32.cont [2/4] (short) %v689_v8, 128 }
 0x1c6   : > { %1373 = vxpose.xlu1.b32.cont [2/4] (short) %v693_v7, 128 }
 0x1c8   : > { %1149 = vxpose.xlu0.b32.cont [3/4] (short) %v690_v10, 128 }
 0x1ca   : > { %1374 = vxpose.xlu1.b32.cont [3/4] (short) %v694_v9, 128 }
 0x1cc   : > { %1150 = vxpose.xlu0.b32.end [4/4] (short) %v691_v12, 128 }
 0x1ce   : > { %1375 = vxpose.xlu1.b32.end [4/4] (short) %v695_v11, 128 }
 0x203   : > { %v712_v15 = vpop.trf.xlu0 }
 0x204   : > { %4508 = vmatprep.mubr.msk.f32.mxu0 %vm728_vm0, %v712_v15 }
 0x205   : > { %v938_v14 = vpop.trf.xlu1 }
 0x206   : > { %4540 = vmatprep.mubr.msk.f32.mxu1 %vm728_vm0, %v938_v14 }
 0x207   : > { %v713_v22 = vpop.trf.xlu0 }
 0x208   : > { %4509 = vmatmul.mubr.msk.f32.vlgmr.msra.gmra.mrb[0].mxu0 %vm728_vm0, %v713_v22 }
 0x209   : > { %v939_v21 = vpop.trf.xlu1  ;;  %4887 = vmatpush3.bf16.msra.mxu0 %v4884_v4 }
 0x20a   : > { %4541 = vmatmul.mubr.msk.f32.vlgmr.msra.gmra.mrb[0].mxu1 %vm728_vm0, %v939_v21  ;;  %4889 = vmatprep.subr.bf16.mxu0 %v4888_v20  ;;  %v1600_v21 = vstv %s4213_s28 }
 0x20b   : > { %4895 = vmatpush3.bf16.msra.mxu1 %v4892_v1  ;;  %v714_v24 = vpop.trf.xlu0 }
 0x20c   : > { %4897 = vmatprep.subr.bf16.mxu1 %v4896_v19  ;;  %4511 = vmatprep.mubr.msk.f32.mxu0 %vm728_vm0, %v714_v24 }
 0x20d   : > { %v940_v23 = vpop.trf.xlu1  ;;  %4891 = vmatpush3.bf16.msra.mxu0 %v4888_v20 }
 0x20e   : > { %4543 = vmatprep.mubr.msk.f32.mxu1 %vm728_vm0, %v940_v23 }
 0x20f   : > { %4899 = vmatpush3.bf16.msra.mxu1 %v4896_v19  ;;  %v715_v26 = vpop.trf.xlu0  ;;  %v7436_v19 = vlaneseq }
 0x210   : > { %4512 = vmatmul.mubr.msk.f32.gmra.mrb[2].mxu0 %vm728_vm0, %v715_v26 }
 0x211   : > { %v941_v25 = vpop.trf.xlu1  ;;  %v6084_v20 = vand.u32 127, %v7436_v19 }
 0x212   : > { %4544 = vmatmul.mubr.msk.f32.gmra.mrb[2].mxu1 %vm728_vm0, %v941_v25 }
 0x213   : > { %v716_v28 = vpop.trf.xlu0  ;;  %v6087_v22 = vadd.s32 %v1600_v21, %v6084_v20 }
 0x214   : > { %4514 = vmatprep.mubr.msk.f32.mxu0 %vm728_vm0, %v716_v28 }
 0x215   : > { %v942_v27 = vpop.trf.xlu1  ;;  %vm1602_vm1 = vcmp.lt.s32.totalorder %v6087_v22, 300 }
 0x216   : > { %4546 = vmatprep.mubr.msk.f32.mxu1 %vm728_vm0, %v942_v27 }
 0x217   : > { %v717_v30 = vpop.trf.xlu0 }
 0x218   : > { %4515 = vmatmul.mubr.msk.f32.gmra.mrb[4].mxu0 %vm728_vm0, %v717_v30 }
 0x219   : > { %v943_v29 = vpop.trf.xlu1 }
 0x21a   : > { %4547 = vmatmul.mubr.msk.f32.gmra.mrb[4].mxu1 %vm728_vm0, %v943_v29 }
 0x21b   : > { %v718_v32 = vpop.trf.xlu0 }
 0x21c   : > { %4517 = vmatprep.mubr.msk.f32.mxu0 %vm728_vm0, %v718_v32 }
 0x21d   : > { %v944_v31 = vpop.trf.xlu1 }
 0x21e   : > { %4549 = vmatprep.mubr.msk.f32.mxu1 %vm728_vm0, %v944_v31 }
 0x21f   : > { %v719_v34 = vpop.trf.xlu0 }
 0x220   : > { %4518 = vmatmul.mubr.msk.f32.gmra.mrb[6].mxu0 %vm728_vm0, %v719_v34 }
 0x221   : > { %v945_v33 = vpop.trf.xlu1 }
 0x222   : > { %4550 = vmatmul.mubr.msk.f32.gmra.mrb[6].mxu1 %vm728_vm0, %v945_v33 }
 0x223   : > { %v720_v36 = vpop.trf.xlu0 }
 0x224   : > { %4520 = vmatprep.mubr.msk.f32.mxu0 %vm728_vm0, %v720_v36 }
 0x225   : > { %v946_v35 = vpop.trf.xlu1 }
 0x226   : > { %4552 = vmatprep.mubr.msk.f32.mxu1 %vm728_vm0, %v946_v35 }
 0x227   : > { %v721_v38 = vpop.trf.xlu0 }
 0x228   : > { %4521 = vmatmul.mubr.msk.f32.gmra.mrb[8].mxu0 %vm728_vm0, %v721_v38 }
 0x229   : > { %v947_v37 = vpop.trf.xlu1 }
 0x22a   : > { %4553 = vmatmul.mubr.msk.f32.gmra.mrb[8].mxu1 %vm728_vm0, %v947_v37 }
 0x22b   : > { %v722_v40 = vpop.trf.xlu0 }
 0x22c   : > { %4523 = vmatprep.mubr.msk.f32.mxu0 %vm728_vm0, %v722_v40 }
 0x22d   : > { %v948_v39 = vpop.trf.xlu1 }
 0x22e   : > { %4555 = vmatprep.mubr.msk.f32.mxu1 %vm728_vm0, %v948_v39 }
 0x22f   : > { %v723_v42 = vpop.trf.xlu0 }
 0x230   : > { %4524 = vmatmul.mubr.msk.f32.gmra.mrb[10].mxu0 %vm728_vm0, %v723_v42 }
 0x231   : > { %v949_v41 = vpop.trf.xlu1 }
 0x232   : > { %4556 = vmatmul.mubr.msk.f32.gmra.mrb[10].mxu1 %vm728_vm0, %v949_v41 }
 0x233   : > { %v724_v44 = vpop.trf.xlu0 }
 0x234   : > { %4526 = vmatprep.mubr.msk.f32.mxu0 %vm728_vm0, %v724_v44 }
 0x235   : > { %v950_v43 = vpop.trf.xlu1 }
 0x236   : > { %4558 = vmatprep.mubr.msk.f32.mxu1 %vm728_vm0, %v950_v43 }
 0x237   : > { %v725_v46 = vpop.trf.xlu0 }
 0x238   : > { %4527 = vmatmul.mubr.msk.f32.gmra.mrb[12].mxu0 %vm728_vm0, %v725_v46 }
 0x239   : > { %v951_v45 = vpop.trf.xlu1 }
 0x23a   : > { %4559 = vmatmul.mubr.msk.f32.gmra.mrb[12].mxu1 %vm728_vm0, %v951_v45 }
 0x23b   : > { %v726_v48 = vpop.trf.xlu0 }
 0x23c   : > { %4529 = vmatprep.mubr.msk.f32.mxu0 %vm728_vm0, %v726_v48 }
 0x23d   : > { %v952_v47 = vpop.trf.xlu1 }
 0x23e   : > { %4561 = vmatprep.mubr.msk.f32.mxu1 %vm728_vm0, %v952_v47 }
 0x23f   : > { %v727_v50 = vpop.trf.xlu0 }
 0x240   : > { %4530 = vmatmul.mubr.msk.f32.gmra.mrb[14].mxu0 %vm728_vm0, %v727_v50 }
 0x241   : > { %v953_v49 = vpop.trf.xlu1 }
 0x242   : > { %4562 = vmatmul.mubr.msk.f32.gmra.mrb[14].mxu1 %vm728_vm0, %v953_v49 }
 0x243   : > { %v1163_v52 = vpop.trf.xlu0 }
 0x244   : > { %4572 = vmatprep.mubr.msk.f32.mxu0 %vm728_vm0, %v1163_v52 }
 0x245   : > { %v1388_v51 = vpop.trf.xlu1 }
 0x246   : > { %4604 = vmatprep.mubr.msk.f32.mxu1 %vm728_vm0, %v1388_v51 }
 0x247   : > { %v1164_v54 = vpop.trf.xlu0 }
 0x248   : > { %4573 = vmatmul.mubr.msk.f32.vlgmr.msra.gmra.mrb[16].mxu0 %vm728_vm0, %v1164_v54 }
 0x249   : > { %v1389_v53 = vpop.trf.xlu1 }
 0x24a   : > { %4605 = vmatmul.mubr.msk.f32.vlgmr.msra.gmra.mrb[16].mxu1 %vm728_vm0, %v1389_v53 }
 0x24b   : > { %v1165_v56 = vpop.trf.xlu0 }
 0x24c   : > { %4575 = vmatprep.mubr.msk.f32.mxu0 %vm728_vm0, %v1165_v56 }
 0x24d   : > { %v1390_v55 = vpop.trf.xlu1 }
 0x24e   : > { %4607 = vmatprep.mubr.msk.f32.mxu1 %vm728_vm0, %v1390_v55 }
 0x24f   : > { %v1166_v58 = vpop.trf.xlu0 }
 0x250   : > { %4576 = vmatmul.mubr.msk.f32.gmra.mrb[18].mxu0 %vm728_vm0, %v1166_v58 }
 0x251   : > { %v1391_v57 = vpop.trf.xlu1 }
 0x252   : > { %4608 = vmatmul.mubr.msk.f32.gmra.mrb[18].mxu1 %vm728_vm0, %v1391_v57 }
 0x253   : > { %v1167_v59 = vpop.trf.xlu0 }
 0x254   : > { %4578 = vmatprep.mubr.msk.f32.mxu0 %vm728_vm0, %v1167_v59 }
 0x255   : > { %v1392_v60 = vpop.trf.xlu1 }
 0x256   : > { %4610 = vmatprep.mubr.msk.f32.mxu1 %vm728_vm0, %v1392_v60 }
 0x257   : > { %v1168_v61 = vpop.trf.xlu0 }
 0x258   : > { %4579 = vmatmul.mubr.msk.f32.gmra.mrb[20].mxu0 %vm728_vm0, %v1168_v61 }
 0x259   : > { %v1393_v62 = vpop.trf.xlu1 }
 0x25a   : > { %4611 = vmatmul.mubr.msk.f32.gmra.mrb[20].mxu1 %vm728_vm0, %v1393_v62 }
 0x25b   : > { %v1169_v63 = vpop.trf.xlu0 }
 0x25c   : > { %4581 = vmatprep.mubr.msk.f32.mxu0 %vm728_vm0, %v1169_v63 }
 0x25d   : > { %v1394_v0 = vpop.trf.xlu1 }
 0x25e   : > { %4613 = vmatprep.mubr.msk.f32.mxu1 %vm728_vm0, %v1394_v0 }
 0x25f   : > { %v1170_v1 = vpop.trf.xlu0 }
 0x260   : > { %4582 = vmatmul.mubr.msk.f32.gmra.mrb[22].mxu0 %vm728_vm0, %v1170_v1 }
 0x261   : > { %v1395_v2 = vpop.trf.xlu1 }
 0x262   : > { %4614 = vmatmul.mubr.msk.f32.gmra.mrb[22].mxu1 %vm728_vm0, %v1395_v2 }
 0x263   : > { %v1171_v3 = vpop.trf.xlu0 }
 0x264   : > { %4584 = vmatprep.mubr.msk.f32.mxu0 %vm728_vm0, %v1171_v3 }
 0x265   : > { %v1396_v4 = vpop.trf.xlu1 }
 0x266   : > { %4616 = vmatprep.mubr.msk.f32.mxu1 %vm728_vm0, %v1396_v4 }
 0x267   : > { %v1172_v5 = vpop.trf.xlu0 }
 0x268   : > { %4585 = vmatmul.mubr.msk.f32.gmra.mrb[24].mxu0 %vm728_vm0, %v1172_v5 }
 0x269   : > { %v1397_v6 = vpop.trf.xlu1 }
 0x26a   : > { %4617 = vmatmul.mubr.msk.f32.gmra.mrb[24].mxu1 %vm728_vm0, %v1397_v6 }
 0x26b   : > { %v1173_v7 = vpop.trf.xlu0 }
 0x26c   : > { %4587 = vmatprep.mubr.msk.f32.mxu0 %vm728_vm0, %v1173_v7 }
 0x26d   : > { %v1398_v8 = vpop.trf.xlu1 }
 0x26e   : > { %4619 = vmatprep.mubr.msk.f32.mxu1 %vm728_vm0, %v1398_v8 }
 0x26f   : > { %v1174_v9 = vpop.trf.xlu0 }
 0x270   : > { %4588 = vmatmul.mubr.msk.f32.gmra.mrb[26].mxu0 %vm728_vm0, %v1174_v9 }
 0x271   : > { %v1399_v10 = vpop.trf.xlu1 }
 0x272   : > { %4620 = vmatmul.mubr.msk.f32.gmra.mrb[26].mxu1 %vm728_vm0, %v1399_v10 }
 0x273   : > { %v1175_v11 = vpop.trf.xlu0 }
 0x274   : > { %4590 = vmatprep.mubr.msk.f32.mxu0 %vm728_vm0, %v1175_v11 }
 0x275   : > { %v1400_v12 = vpop.trf.xlu1 }
 0x276   : > { %4622 = vmatprep.mubr.msk.f32.mxu1 %vm728_vm0, %v1400_v12 }
 0x277   : > { %v1176_v13 = vpop.trf.xlu0 }
 0x278   : > { %4591 = vmatmul.mubr.msk.f32.gmra.mrb[28].mxu0 %vm728_vm0, %v1176_v13 }
 0x279   : > { %v1401_v14 = vpop.trf.xlu1 }
 0x27a   : > { %4623 = vmatmul.mubr.msk.f32.gmra.mrb[28].mxu1 %vm728_vm0, %v1401_v14 }
 0x27b   : > { %v1177_v15 = vpop.trf.xlu0 }
 0x27c   : > { %4593 = vmatprep.mubr.msk.f32.mxu0 %vm728_vm0, %v1177_v15 }
 0x27d   : > { %v1402_v16 = vpop.trf.xlu1 }
 0x27e   : > { %4625 = vmatprep.mubr.msk.f32.mxu1 %vm728_vm0, %v1402_v16 }
 0x27f   : > { %v1178_v17 = vpop.trf.xlu0 }
 0x280   : > { %4594 = vmatmul.mubr.msk.f32.gmra.mrb[30].mxu0 %vm728_vm0, %v1178_v17 }
 0x281   : > { %v1403_v18 = vpop.trf.xlu1 }
 0x282   : > { %4626 = vmatmul.mubr.msk.f32.gmra.mrb[30].mxu1 %vm728_vm0, %v1403_v18  ;;  %vm1969_vm0 = vcmask 1048512  }
 0x2db   : > { %v4510_v23 = vpop.f32.mrb[0].mxu0 }
 0x2dc   : > { %v843_v25 = vpop.f32.mrb[1].mxu0  ;;  %v6092_v26 = vsel %vm1602_vm1, %v4510_v23, -2.3819763e+38 }
 0x2dd   : > { %v4542_v24 = vpop.f32.mrb[0].mxu1  ;;  %7547 = vst [vmem:[#allocation23_spill] sm:$0xff] %v6092_v26  ;;  %1672 = vmax.xlane.f32.xlu1 %v6092_v26  ;;  %v6097_v28 = vsel %vm1602_vm1, %v843_v25, -2.3819763e+38 }
 0x2de   : > { %v1068_v27 = vpop.f32.mrb[1].mxu1  ;;  %7548 = vst [vmem:[#allocation24_spill] sm:$0xff] %v6097_v28  ;;  %1670 = vmax.xlane.f32.xlu0 %v6097_v28  ;;  %v6102_v29 = vsel %vm1602_vm1, %v4542_v24, -2.3819763e+38 }
 0x2df   : > { %7549 = vst [vmem:[#allocation25_spill] sm:$0xff] %v6102_v29  ;;  %v6107_v33 = vsel %vm1602_vm1, %v1068_v27, -2.3819763e+38 }
 0x2e0   : > { %7550 = vst [vmem:[#allocation26_spill] sm:$0xff] %v6107_v33 }
 0x2e1   : > { %1704 = vmax.xlane.f32.xlu1 %v6102_v29 }
 0x2e3   : > { %v4513_v30 = vpop.f32.mrb[2].mxu0 }
 0x2e4   : > { %v853_v32 = vpop.f32.mrb[3].mxu0  ;;  %v6111_v34 = vsel %vm1602_vm1, %v4513_v30, -2.3819763e+38 }
 0x2e5   : > { %v4545_v31 = vpop.f32.mrb[2].mxu1  ;;  %7551 = vst [vmem:[#allocation27_spill] sm:$0xff] %v6111_v34  ;;  %1702 = vmax.xlane.f32.xlu1 %v6107_v33  ;;  %1676 = vmax.xlane.f32.xlu0 %v6111_v34  ;;  %v6121_v37 = vsel %vm1602_vm1, %v853_v32, -2.3819763e+38  ;;  %v1915_v33 = vadd.s32 4294967232, %v6084_v20 }
 0x2e6   : > { %v1078_v35 = vpop.f32.mrb[3].mxu1  ;;  %v6117_v36 = vsel %vm1602_vm1, %v4545_v31, -2.3819763e+38  ;;  %7553 = vst [vmem:[#allocation29_spill] sm:$0xff] %v6121_v37 }
 0x2e7   : > { %7552 = vst [vmem:[#allocation28_spill] sm:$0xff] %v6117_v36  ;;  %v6127_v41 = vsel %vm1602_vm1, %v1078_v35, -2.3819763e+38 }
 0x2e8   : > { %7554 = vst [vmem:[#allocation30_spill] sm:$0xff] %v6127_v41 }
 0x2e9   : > { %1708 = vmax.xlane.f32.xlu1 %v6117_v36  ;;  %1674 = vmax.xlane.f32.xlu0 %v6121_v37 }
 0x2eb   : > { %v4516_v38 = vpop.f32.mrb[4].mxu0 }
 0x2ec   : > { %v863_v40 = vpop.f32.mrb[5].mxu0  ;;  %v6141_v45 = vsel %vm1602_vm1, %v4516_v38, -2.3819763e+38 }
 0x2ed   : > { %v4548_v39 = vpop.f32.mrb[4].mxu1  ;;  %1706 = vmax.xlane.f32.xlu1 %v6127_v41  ;;  %7557 = vst [vmem:[#allocation33_spill] sm:$0xff] %v6141_v45  ;;  %v6151_v50 = vsel %vm1602_vm1, %v863_v40, -2.3819763e+38  ;;  %v1922_v41 = vadd.s32 4294967224, %v6084_v20 }
 0x2ee   : > { %v6131_v42 = vsel %vm1602_vm1, %v4548_v39, -2.3819763e+38  ;;  %v1088_v43 = vpop.f32.mrb[5].mxu1  ;;  %7559 = vst [vmem:[#allocation35_spill] sm:$0xff] %v6151_v50 }
 0x2ef   : > { %7555 = vst [vmem:[#allocation31_spill] sm:$0xff] %v6131_v42  ;;  %1712 = vmax.xlane.f32.xlu0 %v6131_v42  ;;  %v6137_v44 = vsel %vm1602_vm1, %v1088_v43, -2.3819763e+38 }
 0x2f0   : > { %7556 = vst [vmem:[#allocation32_spill] sm:$0xff] %v6137_v44 }
 0x2f1   : > { %1680 = vmax.xlane.f32.xlu1 %v6141_v45 }
 0x2f3   : > { %1710 = vmax.xlane.f32.xlu0 %v6137_v44  ;;  %v4519_v46 = vpop.f32.mrb[6].mxu0  ;;  %v1887_v44 = vadd.s32 4294967264, %v6084_v20 }
 0x2f4   : > { %v873_v48 = vpop.f32.mrb[7].mxu0  ;;  %v6161_v53 = vsel %vm1602_vm1, %v4519_v46, -2.3819763e+38 }
 0x2f5   : > { %v4551_v47 = vpop.f32.mrb[6].mxu1  ;;  %1678 = vmax.xlane.f32.xlu1 %v6151_v50  ;;  %7561 = vst [vmem:[#allocation37_spill] sm:$0xff] %v6161_v53  ;;  %v6171_v58 = vsel %vm1602_vm1, %v873_v48, -2.3819763e+38 }
 0x2f6   : > { %v6147_v49 = vsel %vm1602_vm1, %v4551_v47, -2.3819763e+38  ;;  %v1098_v51 = vpop.f32.mrb[7].mxu1  ;;  %7563 = vst [vmem:[#allocation39_spill] sm:$0xff] %v6171_v58 }
 0x2f7   : > { %7558 = vst [vmem:[#allocation34_spill] sm:$0xff] %v6147_v49  ;;  %1716 = vmax.xlane.f32.xlu0 %v6147_v49  ;;  %v6157_v52 = vsel %vm1602_vm1, %v1098_v51, -2.3819763e+38  ;;  %v1873_v49 = vadd.s32 4294967280, %v6084_v20 }
 0x2f8   : > { %7560 = vst [vmem:[#allocation36_spill] sm:$0xff] %v6157_v52 }
 0x2f9   : > { %1684 = vmax.xlane.f32.xlu1 %v6161_v53 }
 0x2fb   : > { %1714 = vmax.xlane.f32.xlu0 %v6157_v52  ;;  %v4522_v54 = vpop.f32.mrb[8].mxu0 }
 0x2fc   : > { %v883_v56 = vpop.f32.mrb[9].mxu0  ;;  %v6181_v61 = vsel %vm1602_vm1, %v4522_v54, -2.3819763e+38 }
 0x2fd   : > { %v4554_v55 = vpop.f32.mrb[8].mxu1  ;;  %1682 = vmax.xlane.f32.xlu1 %v6171_v58  ;;  %7565 = vst [vmem:[#allocation41_spill] sm:$0xff] %v6181_v61  ;;  %v6191_v2 = vsel %vm1602_vm1, %v883_v56, -2.3819763e+38  ;;  %v1894_v58 = vadd.s32 4294967256, %v6084_v20 }
 0x2fe   : > { %v6167_v57 = vsel %vm1602_vm1, %v4554_v55, -2.3819763e+38  ;;  %v1108_v59 = vpop.f32.mrb[9].mxu1  ;;  %7567 = vst [vmem:[#allocation43_spill] sm:$0xff] %v6191_v2 }
 0x2ff   : > { %7562 = vst [vmem:[#allocation38_spill] sm:$0xff] %v6167_v57  ;;  %1720 = vmax.xlane.f32.xlu0 %v6167_v57  ;;  %v6177_v60 = vsel %vm1602_vm1, %v1108_v59, -2.3819763e+38  ;;  %v7620_v57 = vlaneseq }
 0x300   : > { %7564 = vst [vmem:[#allocation40_spill] sm:$0xff] %v6177_v60 }
 0x301   : > { %1688 = vmax.xlane.f32.xlu1 %v6181_v61  ;;  %v1866_v61 = vadd.s32 4294967288, %v6084_v20 }
 0x303   : > { %1718 = vmax.xlane.f32.xlu0 %v6177_v60  ;;  %v4525_v62 = vpop.f32.mrb[10].mxu0  ;;  %v6497_v60 = vshrl.u32 %v7620_v57, 7  ;;  %v1908_v57 = vadd.s32 4294967240, %v6084_v20 }
 0x304   : > { %v893_v0 = vpop.f32.mrb[11].mxu0  ;;  %v6201_v5 = vsel %vm1602_vm1, %v4525_v62, -2.3819763e+38 }
 0x305   : > { %v4557_v63 = vpop.f32.mrb[10].mxu1  ;;  %1686 = vmax.xlane.f32.xlu1 %v6191_v2  ;;  %7569 = vst [vmem:[#allocation45_spill] sm:$0xff] %v6201_v5  ;;  %v6211_v10 = vsel %vm1602_vm1, %v893_v0, -2.3819763e+38  ;;  %v1880_v2 = vadd.s32 4294967272, %v6084_v20  ;;  %v6508_v42 = vsub.s32 %v1866_v61, %v6497_v60  ;;  %v6514_v45 = vsub.s32 %v6084_v20, %v6497_v60 }
 0x306   : > { %v6187_v1 = vsel %vm1602_vm1, %v4557_v63, -2.3819763e+38  ;;  %v1118_v3 = vpop.f32.mrb[11].mxu1  ;;  %7571 = vst [vmem:[#allocation47_spill] sm:$0xff] %v6211_v10  ;;  %v6520_v36 = vsub.s32 %v1873_v49, %v6497_v60  ;;  %v1901_v61 = vadd.s32 4294967248, %v6084_v20  ;;  %v6529_v29 = vsub.s32 %v1894_v58, %v6497_v60 }
 0x307   : > { %7566 = vst [vmem:[#allocation42_spill] sm:$0xff] %v6187_v1  ;;  %1724 = vmax.xlane.f32.xlu0 %v6187_v1  ;;  %v6197_v4 = vsel %vm1602_vm1, %v1118_v3, -2.3819763e+38  ;;  %v6517_v50 = vsub.s32 %v1880_v2, %v6497_v60  ;;  %v1936_v2 = vadd.s32 4294967208, %v6084_v20  ;;  %v1929_v49 = vadd.s32 4294967216, %v6084_v20 }
 0x308   : > { %7568 = vst [vmem:[#allocation44_spill] sm:$0xff] %v6197_v4  ;;  %v6535_v28 = vsub.s32 %v1887_v44, %v6497_v60  ;;  %v6538_v26 = vsub.s32 %v1908_v57, %v6497_v60  ;;  %v6552_v57 = vsub.s32 %v1901_v61, %v6497_v60 }
 0x309   : > { %1692 = vmax.xlane.f32.xlu1 %v6201_v5 }
 0x30b   : > { %1722 = vmax.xlane.f32.xlu0 %v6197_v4  ;;  %v4528_v6 = vpop.f32.mrb[12].mxu0 }
 0x30c   : > { %v903_v8 = vpop.f32.mrb[13].mxu0  ;;  %v6221_v13 = vsel %vm1602_vm1, %v4528_v6, -2.3819763e+38 }
 0x30d   : > { %v4560_v7 = vpop.f32.mrb[12].mxu1  ;;  %1690 = vmax.xlane.f32.xlu1 %v6211_v10  ;;  %7573 = vst [vmem:[#allocation49_spill] sm:$0xff] %v6221_v13  ;;  %v6231_v18 = vsel %vm1602_vm1, %v903_v8, -2.3819763e+38 }
 0x30e   : > { %v6207_v9 = vsel %vm1602_vm1, %v4560_v7, -2.3819763e+38  ;;  %v1128_v11 = vpop.f32.mrb[13].mxu1  ;;  %7575 = vst [vmem:[#allocation51_spill] sm:$0xff] %v6231_v18 }
 0x30f   : > { %7570 = vst [vmem:[#allocation46_spill] sm:$0xff] %v6207_v9  ;;  %1728 = vmax.xlane.f32.xlu0 %v6207_v9  ;;  %v6217_v12 = vsel %vm1602_vm1, %v1128_v11, -2.3819763e+38 }
 0x310   : > { %7572 = vst [vmem:[#allocation48_spill] sm:$0xff] %v6217_v12 }
 0x311   : > { %1696 = vmax.xlane.f32.xlu1 %v6221_v13 }
 0x313   : > { %1726 = vmax.xlane.f32.xlu0 %v6217_v12  ;;  %v4531_v14 = vpop.f32.mrb[14].mxu0 }
 0x314   : > { %v913_v16 = vpop.f32.mrb[15].mxu0  ;;  %v6241_v24 = vsel %vm1602_vm1, %v4531_v14, -2.3819763e+38 }
 0x315   : > { %v4563_v15 = vpop.f32.mrb[14].mxu1  ;;  %1694 = vmax.xlane.f32.xlu1 %v6231_v18  ;;  %7577 = vst [vmem:[#allocation53_spill] sm:$0xff] %v6241_v24  ;;  %v6251_v32 = vsel %vm1602_vm1, %v913_v16, -2.3819763e+38 }
 0x316   : > { %v6227_v17 = vsel %vm1602_vm1, %v4563_v15, -2.3819763e+38  ;;  %v1138_v21 = vpop.f32.mrb[15].mxu1  ;;  %7579 = vst [vmem:[#allocation55_spill] sm:$0xff] %v6251_v32 }
 0x317   : > { %7574 = vst [vmem:[#allocation50_spill] sm:$0xff] %v6227_v17  ;;  %1732 = vmax.xlane.f32.xlu0 %v6227_v17  ;;  %v6237_v23 = vsel %vm1602_vm1, %v1138_v21, -2.3819763e+38 }
 0x318   : > { %7576 = vst [vmem:[#allocation52_spill] sm:$0xff] %v6237_v23 }
 0x319   : > { %1700 = vmax.xlane.f32.xlu1 %v6241_v24 }
 0x31b   : > { %1730 = vmax.xlane.f32.xlu0 %v6237_v23  ;;  %v4574_v25 = vpop.f32.mrb[16].mxu0 }
 0x31c   : > { %v1293_v30 = vpop.f32.mrb[17].mxu0  ;;  %v6257_v38 = vsel %vm1602_vm1, %v4574_v25, -2.3819763e+38 }
 0x31d   : > { %v4606_v27 = vpop.f32.mrb[16].mxu1  ;;  %1698 = vmax.xlane.f32.xlu1 %v6251_v32  ;;  %7580 = vst [vmem:[#allocation56_spill] sm:$0xff] %v6257_v38  ;;  %v6261_v39 = vsel %vm1602_vm1, %v1293_v30, -2.3819763e+38 }
 0x31e   : > { %v6247_v31 = vsel %vm1602_vm1, %v4606_v27, -2.3819763e+38  ;;  %v1518_v35 = vpop.f32.mrb[17].mxu1  ;;  %7581 = vst [vmem:[#allocation57_spill] sm:$0xff] %v6261_v39 }
 0x31f   : > { %7578 = vst [vmem:[#allocation54_spill] sm:$0xff] %v6247_v31  ;;  %1768 = vmax.xlane.f32.xlu0 %v6247_v31  ;;  %v6267_v46 = vsel %vm1602_vm1, %v1518_v35, -2.3819763e+38 }
 0x320   : > { %7582 = vst [vmem:[#allocation58_spill] sm:$0xff] %v6267_v46 }
 0x321   : > { %1736 = vmax.xlane.f32.xlu1 %v6257_v38 }
 0x323   : > { %1734 = vmax.xlane.f32.xlu0 %v6261_v39  ;;  %v4577_v40 = vpop.f32.mrb[18].mxu0 }
 0x324   : > { %v1303_v48 = vpop.f32.mrb[19].mxu0  ;;  %v6277_v54 = vsel %vm1602_vm1, %v4577_v40, -2.3819763e+38 }
 0x325   : > { %v4609_v43 = vpop.f32.mrb[18].mxu1  ;;  %1766 = vmax.xlane.f32.xlu1 %v6267_v46  ;;  %7584 = vst [vmem:[#allocation60_spill] sm:$0xff] %v6277_v54  ;;  %v6281_v55 = vsel %vm1602_vm1, %v1303_v48, -2.3819763e+38 }
 0x326   : > { %v6271_v47 = vsel %vm1602_vm1, %v4609_v43, -2.3819763e+38  ;;  %v1528_v51 = vpop.f32.mrb[19].mxu1  ;;  %7585 = vst [vmem:[#allocation61_spill] sm:$0xff] %v6281_v55 }
 0x327   : > { %7583 = vst [vmem:[#allocation59_spill] sm:$0xff] %v6271_v47  ;;  %1772 = vmax.xlane.f32.xlu0 %v6271_v47  ;;  %v6287_v62 = vsel %vm1602_vm1, %v1528_v51, -2.3819763e+38 }
 0x328   : > { %7586 = vst [vmem:[#allocation62_spill] sm:$0xff] %v6287_v62 }
 0x329   : > { %1740 = vmax.xlane.f32.xlu1 %v6277_v54 }
 0x32b   : > { %1738 = vmax.xlane.f32.xlu0 %v6281_v55  ;;  %v4580_v56 = vpop.f32.mrb[20].mxu0 }
 0x32c   : > { %v6291_v63 = vsel %vm1602_vm1, %v4580_v56, -2.3819763e+38  ;;  %v1313_v0 = vpop.f32.mrb[21].mxu0 }
 0x32d   : > { %v4612_v59 = vpop.f32.mrb[20].mxu1  ;;  %7587 = vst [vmem:[#allocation63_spill] sm:$0xff] %v6291_v63  ;;  %1744 = vmax.xlane.f32.xlu1 %v6291_v63  ;;  %v6301_v7 = vsel %vm1602_vm1, %v1313_v0, -2.3819763e+38 }
 0x32e   : > { %v1538_v3 = vpop.f32.mrb[21].mxu1  ;;  %v6297_v6 = vsel %vm1602_vm1, %v4612_v59, -2.3819763e+38  ;;  %7589 = vst [vmem:[#allocation65_spill] sm:$0xff] %v6301_v7 }
 0x32f   : > { %1770 = vmax.xlane.f32.xlu0 %v6287_v62  ;;  %7588 = vst [vmem:[#allocation64_spill] sm:$0xff] %v6297_v6  ;;  %v6307_v14 = vsel %vm1602_vm1, %v1538_v3, -2.3819763e+38 }
 0x330   : > { %7590 = vst [vmem:[#allocation66_spill] sm:$0xff] %v6307_v14 }
 0x331   : > { %1742 = vmax.xlane.f32.xlu1 %v6301_v7 }
 0x333   : > { %1776 = vmax.xlane.f32.xlu0 %v6297_v6  ;;  %v4583_v8 = vpop.f32.mrb[22].mxu0 }
 0x334   : > { %v6311_v15 = vsel %vm1602_vm1, %v4583_v8, -2.3819763e+38  ;;  %v1323_v16 = vpop.f32.mrb[23].mxu0 }
 0x335   : > { %v4615_v11 = vpop.f32.mrb[22].mxu1  ;;  %7591 = vst [vmem:[#allocation67_spill] sm:$0xff] %v6311_v15  ;;  %1748 = vmax.xlane.f32.xlu1 %v6311_v15  ;;  %v6321_v27 = vsel %vm1602_vm1, %v1323_v16, -2.3819763e+38 }
 0x336   : > { %v1548_v21 = vpop.f32.mrb[23].mxu1  ;;  %v6317_v25 = vsel %vm1602_vm1, %v4615_v11, -2.3819763e+38  ;;  %7593 = vst [vmem:[#allocation69_spill] sm:$0xff] %v6321_v27 }
 0x337   : > { %1774 = vmax.xlane.f32.xlu0 %v6307_v14  ;;  %7592 = vst [vmem:[#allocation68_spill] sm:$0xff] %v6317_v25  ;;  %v6327_v40 = vsel %vm1602_vm1, %v1548_v21, -2.3819763e+38 }
 0x338   : > { %7594 = vst [vmem:[#allocation70_spill] sm:$0xff] %v6327_v40 }
 0x339   : > { %1746 = vmax.xlane.f32.xlu1 %v6321_v27 }
 0x33b   : > { %1780 = vmax.xlane.f32.xlu0 %v6317_v25  ;;  %v4586_v30 = vpop.f32.mrb[24].mxu0 }
 0x33c   : > { %v6331_v43 = vsel %vm1602_vm1, %v4586_v30, -2.3819763e+38  ;;  %v1333_v48 = vpop.f32.mrb[25].mxu0 }
 0x33d   : > { %v4618_v35 = vpop.f32.mrb[24].mxu1  ;;  %7595 = vst [vmem:[#allocation71_spill] sm:$0xff] %v6331_v43  ;;  %1752 = vmax.xlane.f32.xlu1 %v6331_v43  ;;  %v6341_v59 = vsel %vm1602_vm1, %v1333_v48, -2.3819763e+38 }
 0x33e   : > { %v1558_v51 = vpop.f32.mrb[25].mxu1  ;;  %v6337_v56 = vsel %vm1602_vm1, %v4618_v35, -2.3819763e+38  ;;  %7597 = vst [vmem:[#allocation73_spill] sm:$0xff] %v6341_v59 }
 0x33f   : > { %1778 = vmax.xlane.f32.xlu0 %v6327_v40  ;;  %7596 = vst [vmem:[#allocation72_spill] sm:$0xff] %v6337_v56  ;;  %v6347_v8 = vsel %vm1602_vm1, %v1558_v51, -2.3819763e+38 }
 0x340   : > { %7598 = vst [vmem:[#allocation74_spill] sm:$0xff] %v6347_v8 }
 0x341   : > { %1750 = vmax.xlane.f32.xlu1 %v6341_v59 }
 0x343   : > { %1784 = vmax.xlane.f32.xlu0 %v6337_v56  ;;  %v4589_v0 = vpop.f32.mrb[26].mxu0 }
 0x344   : > { %v6351_v11 = vsel %vm1602_vm1, %v4589_v0, -2.3819763e+38  ;;  %v1343_v16 = vpop.f32.mrb[27].mxu0 }
 0x345   : > { %v4621_v3 = vpop.f32.mrb[26].mxu1  ;;  %7599 = vst [vmem:[#allocation75_spill] sm:$0xff] %v6351_v11  ;;  %1756 = vmax.xlane.f32.xlu1 %v6351_v11  ;;  %v6361_v35 = vsel %vm1602_vm1, %v1343_v16, -2.3819763e+38 }
 0x346   : > { %v1568_v21 = vpop.f32.mrb[27].mxu1  ;;  %v6357_v30 = vsel %vm1602_vm1, %v4621_v3, -2.3819763e+38  ;;  %7601 = vst [vmem:[#allocation77_spill] sm:$0xff] %v6361_v35 }
 0x347   : > { %1782 = vmax.xlane.f32.xlu0 %v6347_v8  ;;  %7600 = vst [vmem:[#allocation76_spill] sm:$0xff] %v6357_v30  ;;  %v6367_v0 = vsel %vm1602_vm1, %v1568_v21, -2.3819763e+38 }
 0x348   : > { %7602 = vst [vmem:[#allocation78_spill] sm:$0xff] %v6367_v0 }
 0x349   : > { %1754 = vmax.xlane.f32.xlu1 %v6361_v35 }
 0x34b   : > { %1788 = vmax.xlane.f32.xlu0 %v6357_v30  ;;  %v4592_v48 = vpop.f32.mrb[28].mxu0 }
 0x34c   : > { %v6371_v19 = vsel %vm1602_vm1, %v4592_v48, -2.3819763e+38  ;;  %v1353_v3 = vpop.f32.mrb[29].mxu0 }
 0x34d   : > { %v4624_v51 = vpop.f32.mrb[28].mxu1  ;;  %7603 = vst [vmem:[#allocation79_spill] sm:$0xff] %v6371_v19  ;;  %1760 = vmax.xlane.f32.xlu1 %v6371_v19  ;;  %v6381_v30 = vsel %vm1602_vm1, %v1353_v3, -2.3819763e+38 }
 0x34e   : > { %v1578_v11 = vpop.f32.mrb[29].mxu1  ;;  %v6377_v16 = vsel %vm1602_vm1, %v4624_v51, -2.3819763e+38  ;;  %7605 = vst [vmem:[#allocation81_spill] sm:$0xff] %v6381_v30 }
 0x34f   : > { %1786 = vmax.xlane.f32.xlu0 %v6367_v0  ;;  %7604 = vst [vmem:[#allocation80_spill] sm:$0xff] %v6377_v16  ;;  %v6387_v35 = vsel %vm1602_vm1, %v1578_v11, -2.3819763e+38 }
 0x350   : > { %7606 = vst [vmem:[#allocation82_spill] sm:$0xff] %v6387_v35 }
 0x351   : > { %1758 = vmax.xlane.f32.xlu1 %v6381_v30 }
 0x353   : > { %1792 = vmax.xlane.f32.xlu0 %v6377_v16  ;;  %v4595_v21 = vpop.f32.mrb[30].mxu0 }
 0x354   : > { %v6391_v19 = vsel %vm1602_vm1, %v4595_v21, -2.3819763e+38  ;;  %v1363_v51 = vpop.f32.mrb[31].mxu0 }
 0x355   : > { %v4627_v48 = vpop.f32.mrb[30].mxu1  ;;  %7607 = vst [vmem:[#allocation83_spill] sm:$0xff] %v6391_v19  ;;  %1764 = vmax.xlane.f32.xlu1 %v6391_v19  ;;  %v6401_v16 = vsel %vm1602_vm1, %v1363_v51, -2.3819763e+38 }
 0x356   : > { %v1588_v0 = vpop.f32.mrb[31].mxu1  ;;  %7609 = vst [vmem:[#allocation85_spill] sm:$0xff] %v6401_v16  ;;  %v6407_v11 = vsel %vm1602_vm1, %v4627_v48, -2.3819763e+38 }
 0x357   : > { %1790 = vmax.xlane.f32.xlu0 %v6387_v35  ;;  %v6397_v3 = vsel %vm1602_vm1, %v1588_v0, -2.3819763e+38  ;;  %7610 = vst [vmem:[#allocation86_spill] sm:$0xff] %v6407_v11  ;;  %vm2208_vm1 = vcmask 1041409  }
 0x358   : > { %7608 = vst [vmem:[#allocation84_spill] sm:$0xff] %v6397_v3 }
 0x359   : > { %1762 = vmax.xlane.f32.xlu1 %v6401_v16 }
 0x35b   : > { %1794 = vmax.xlane.f32.xlu0 %v6397_v3 }
 0x35d   : > { %1796 = vmax.xlane.f32.xlu1 %v6407_v11 }
 0x36a   : > { %v6410_v21 = vpop.xlane.xlu1 %1672 }
 0x36b   : > { %v6412_v19 = vpop.xlane.xlu0 %1670 }
 0x36c   : > { %v1865_v58 = vrot.slane %v6412_v19, %v6514_v45 }
 0x36e   : > { %v6414_v0 = vpop.xlane.xlu1 %1704 }
 0x372   : > { %v6416_v35 = vpop.xlane.xlu1 %1702  ;;  %v6418_v51 = vpop.xlane.xlu0 %1676 }
 0x373   : > { %v1974_v44 = vrot.slane %v6416_v35, %v6514_v45  ;;  %v6567_v35 = vsub.s32 %v1936_v2, %v6497_v60 }
 0x375   : > { %7621 = vst [vmem:[#allocation96_spill] sm:$0xff] %v6567_v35 }
 0x376   : > { %v6420_v30 = vpop.xlane.xlu1 %1708  ;;  %v6422_v3 = vpop.xlane.xlu0 %1674 }
 0x37a   : > { %v6424_v16 = vpop.xlane.xlu1 %1706 }
 0x37b   : > { %v1983_v19 = vrot.slane %v6424_v16, %v6520_v36 }
 0x37c   : > { %v6426_v22 = vpop.xlane.xlu0 %1712 }
 0x37e   : > { %v6430_v11 = vpop.xlane.xlu1 %1680 }
 0x380   : > { %v6428_v48 = vpop.xlane.xlu0 %1710 }
 0x382   : > { %v6434_v8 = vpop.xlane.xlu1 %1678 }
 0x384   : > { %v6432_v56 = vpop.xlane.xlu0 %1716 }
 0x386   : > { %v6438_v59 = vpop.xlane.xlu1 %1684 }
 0x388   : > { %v6436_v43 = vpop.xlane.xlu0 %1714 }
 0x38a   : > { %v6442_v40 = vpop.xlane.xlu1 %1682 }
 0x38c   : > { %v6440_v25 = vpop.xlane.xlu0 %1720 }
 0x38e   : > { %v6446_v27 = vpop.xlane.xlu1 %1688 }
 0x390   : > { %v6444_v15 = vpop.xlane.xlu0 %1718 }
 0x392   : > { %v6450_v14 = vpop.xlane.xlu1 %1686 }
 0x394   : > { %v6448_v6 = vpop.xlane.xlu0 %1724 }
 0x395   : > { %7611 = vst [vmem:[#allocation87_spill] sm:$0xff] %v6448_v6 }
 0x396   : > { %v6454_v7 = vpop.xlane.xlu1 %1692 }
 0x397   : > { %7612 = vst [vmem:[#allocation88_spill] sm:$0xff] %v6454_v7 }
 0x398   : > { %v6452_v63 = vpop.xlane.xlu0 %1722 }
 0x39a   : > { %v6458_v62 = vpop.xlane.xlu1 %1690 }
 0x39c   : > { %v6456_v47 = vpop.xlane.xlu0 %1728 }
 0x39d   : > { %7613 = vst [vmem:[#allocation89_spill] sm:$0xff] %v6456_v47  ;;  %v1943_v47 = vadd.s32 4294967200, %v6084_v20 }
 0x39e   : > { %v6462_v55 = vpop.xlane.xlu1 %1696 }
 0x39f   : > { %7615 = vst [vmem:[#allocation91_spill] sm:$0xff] %v6462_v55  ;;  %v1877_v55 = vrot.slane %v6422_v3, %v6520_v36  ;;  %v6570_v3 = vsub.s32 %v1929_v49, %v6497_v60  ;;  %v6583_v2 = vsub.s32 %v1943_v47, %v6497_v60 }
 0x3a0   : > { %v6460_v54 = vpop.xlane.xlu0 %1726 }
 0x3a1   : > { %7614 = vst [vmem:[#allocation90_spill] sm:$0xff] %v6460_v54  ;;  %v6564_v54 = vsub.s32 %v1915_v33, %v6497_v60 }
 0x3a2   : > { %v6466_v46 = vpop.xlane.xlu1 %1694 }
 0x3a4   : > { %v6464_v31 = vpop.xlane.xlu0 %1732 }
 0x3a5   : > { %7616 = vst [vmem:[#allocation92_spill] sm:$0xff] %v6464_v31  ;;  %v1950_v31 = vadd.s32 4294967192, %v6084_v20 }
 0x3a6   : > { %v6470_v39 = vpop.xlane.xlu1 %1700 }
 0x3a7   : > { %7618 = vst [vmem:[#allocation94_spill] sm:$0xff] %v6470_v39  ;;  %v1870_v39 = vrot.slane %v6410_v21, %v6508_v42  ;;  %v6575_v61 = vsub.s32 %v1950_v31, %v6497_v60 }
 0x3a8   : > { %v6468_v38 = vpop.xlane.xlu0 %1730 }
 0x3a9   : > { %7617 = vst [vmem:[#allocation93_spill] sm:$0xff] %v6468_v38  ;;  %v1964_v38 = vadd.s32 4294967176, %v6084_v20  ;;  %7622 = vst [vmem:[#allocation97_spill] sm:$0xff] %v6575_v61  ;;  %v1872_v7 = vsel %vm1871_vm2, %v1870_v39, %v1865_v58 }
 0x3aa   : > { %v6474_v23 = vpop.xlane.xlu1 %1698  ;;  %v1879_v61 = vsel %vm1878_vm3, %v1877_v55, %v1872_v7  ;;  %v1988_v7 = vrot.slane %v6420_v30, %v6517_v50 }
 0x3ab   : > { %7619 = vst [vmem:[#allocation95_spill] sm:$0xff] %v6474_v23  ;;  %v6555_v23 = vsub.s32 %v1922_v41, %v6497_v60  ;;  %v1978_v41 = vrot.slane %v6414_v0, %v6508_v42  ;;  %v6586_v49 = vsub.s32 %v1964_v38, %v6497_v60  ;;  %v1884_v38 = vrot.slane %v6418_v51, %v6517_v50 }
 0x3ac   : > { %v6472_v17 = vpop.xlane.xlu0 %1768 }
 0x3ad   : > { %v1979_v31 = vsel %vm1871_vm2, %v1978_v41, %v1974_v44  ;;  %v1886_v58 = vsel %vm1885_vm4, %v1884_v38, %v1879_v61 }
 0x3ae   : > { %v6476_v24 = vpop.xlane.xlu1 %1736  ;;  %v1984_v47 = vsel %vm1878_vm3, %v1983_v19, %v1979_v31 }
 0x3af   : > { %v2057_v16 = vrot.slane %v6476_v24, %v6508_v42  ;;  %v1891_v24 = vrot.slane %v6434_v8, %v6535_v28  ;;  %v1989_v30 = vsel %vm1885_vm4, %v1988_v7, %v1984_v47 }
 0x3b0   : > { %v6478_v32 = vpop.xlane.xlu0 %1734 }
 0x3b1   : > { %v2053_v33 = vrot.slane %v6478_v32, %v6514_v45  ;;  %v1957_v32 = vadd.s32 4294967184, %v6084_v20  ;;  %v1893_v19 = vsel %vm1892_vm5, %v1891_v24, %v1886_v58 }
 0x3b2   : > { %v6480_v9 = vpop.xlane.xlu1 %1766 }
 0x3b3   : > { %v2132_v55 = vrot.slane %v6480_v9, %v6514_v45  ;;  %v2058_v20 = vsel %vm1871_vm2, %v2057_v16, %v2053_v33  ;;  %v6624_v41 = vsub.s32 %v1957_v32, %v6497_v60  ;;  %v1898_v16 = vrot.slane %v6430_v11, %v6529_v29 }
 0x3b4   : > { %v6482_v12 = vpop.xlane.xlu0 %1772 }
 0x3b5   : > { %v1900_v32 = vsel %vm1899_vm6, %v1898_v16, %v1893_v19  ;;  %v2146_v11 = vrot.slane %v6482_v12, %v6517_v50 }
 0x3b6   : > { %v6484_v13 = vpop.xlane.xlu1 %1740 }
 0x3b7   : > { %v2067_v8 = vrot.slane %v6484_v13, %v6517_v50  ;;  %v1905_v13 = vrot.slane %v6442_v40, %v6552_v57  ;;  %v1998_v40 = vrot.slane %v6426_v22, %v6529_v29 }
 0x3b8   : > { %v6486_v18 = vpop.xlane.xlu0 %1738 }
 0x3b9   : > { %v2062_v0 = vrot.slane %v6486_v18, %v6520_v36  ;;  %v1993_v18 = vrot.slane %v6428_v48, %v6535_v28  ;;  %v2136_v48 = vrot.slane %v6472_v17, %v6508_v42  ;;  %v1907_v47 = vsel %vm1906_vm7, %v1905_v13, %v1900_v32 }
 0x3ba   : > { %v6490_v4 = vpop.xlane.xlu1 %1744 }
 0x3bb   : > { %v2063_v44 = vsel %vm1878_vm3, %v2062_v0, %v2058_v20  ;;  %v1994_v17 = vsel %vm1892_vm5, %v1993_v18, %v1989_v30  ;;  %v2137_v33 = vsel %vm1871_vm2, %v2136_v48, %v2132_v55  ;;  %v1919_v18 = vrot.slane %v6450_v14, %v6564_v54 }
 0x3bc   : > { %v6488_v1 = vpop.xlane.xlu0 %1770  ;;  %v2068_v31 = vsel %vm1885_vm4, %v2067_v8, %v2063_v44  ;;  %v1999_v22 = vsel %vm1899_vm6, %v1998_v40, %v1994_v17  ;;  %v1912_v20 = vrot.slane %v6438_v59, %v6538_v26  ;;  %v2008_v14 = vrot.slane %v6432_v56, %v6538_v26 }
 0x3bd   : > { %v2141_v51 = vrot.slane %v6488_v1, %v6520_v36  ;;  %v1933_v30 = vrot.slane %v6458_v62, %v6570_v3  ;;  %v1926_v17 = vrot.slane %v6446_v27, %v6555_v23  ;;  %v2018_v62 = vrot.slane %v6440_v25, %v6555_v23 }
 0x3be   : > { %v6494_v10 = vpop.xlane.xlu1 %1742  ;;  %v1914_v48 = vsel %vm1913_vm8, %v1912_v20, %v1907_v47  ;;  %v7625_v47 = vld [vmem:[#allocation90_spill] sm:$0xff] }
 0x3bf   : > { %v2072_v9 = vrot.slane %v6494_v10, %v6535_v28  ;;  %v2003_v10 = vrot.slane %v6436_v43, %v6552_v57  ;;  %v2142_v0 = vsel %vm1878_vm3, %v2141_v51, %v2137_v33 }
 0x3c0   : > { %v6492_v5 = vpop.xlane.xlu0 %1776  ;;  %v2147_v8 = vsel %vm1885_vm4, %v2146_v11, %v2142_v0 }
 0x3c1   : > { %v2073_v43 = vsel %vm1892_vm5, %v2072_v9, %v2068_v31  ;;  %v2004_v12 = vsel %vm1906_vm7, %v2003_v10, %v1999_v22  ;;  %v2156_v59 = vrot.slane %v6492_v5, %v6529_v29  ;;  %v1921_v9 = vsel %vm1920_vm9, %v1919_v18, %v1914_v48  ;;  %v7627_v48 = vld [vmem:[#allocation95_spill] sm:$0xff] }
 0x3c2   : > { %v6504_v53 = vpop.xlane.xlu1 %1748  ;;  %v2009_v56 = vsel %vm1913_vm8, %v2008_v14, %v2004_v12  ;;  %v1928_v40 = vsel %vm1927_vm10, %v1926_v17, %v1921_v9  ;;  %v2033_v18 = vrot.slane %v7625_v47, %v6583_v2 }
 0x3c3   : > { %v1935_v25 = vsel %vm1934_vm11, %v1933_v30, %v1928_v40  ;;  %v7628_v30 = vld [vmem:[#allocation97_spill] sm:$0xff] }
 0x3c4   : > { %v6502_v52 = vpop.xlane.xlu0 %1774 }
 0x3c5   : > { %v2151_v24 = vrot.slane %v6502_v52, %v6535_v28  ;;  %v2077_v52 = vrot.slane %v6490_v4, %v6529_v29 }
 0x3c6   : > { %v6526_v37 = vpop.xlane.xlu1 %1746 }
 0x3c7   : > { %v2082_v38 = vrot.slane %v6526_v37, %v6552_v57  ;;  %v2013_v37 = vrot.slane %v6444_v15, %v6564_v54  ;;  %v2152_v4 = vsel %vm1892_vm5, %v2151_v24, %v2147_v8  ;;  %v2078_v51 = vsel %vm1899_vm6, %v2077_v52, %v2073_v43 }
 0x3c8   : > { %v6524_v34 = vpop.xlane.xlu0 %1780  ;;  %v2157_v16 = vsel %vm1899_vm6, %v2156_v59, %v2152_v4  ;;  %v1947_v24 = vrot.slane %v6466_v46, %v6583_v2  ;;  %v1961_v59 = vrot.slane %v7627_v48, %v6624_v41  ;;  %v6768_v48 = vsub.s32 0, %v6497_v60 }
 0x3c9   : > { %v2083_v15 = vsel %vm1906_vm7, %v2082_v38, %v2078_v51  ;;  %v2014_v5 = vsel %vm1920_vm9, %v2013_v37, %v2009_v56  ;;  %v2166_v27 = vrot.slane %v6524_v34, %v6538_v26  ;;  %v7623_v38 = vld [vmem:[#allocation96_spill] sm:$0xff] }
 0x3ca   : > { %v6559_v6 = vpop.xlane.xlu1 %1752  ;;  %v2019_v31 = vsel %vm1927_vm10, %v2018_v62, %v2014_v5  ;;  %v7624_v34 = vld [vmem:[#allocation88_spill] sm:$0xff]  ;;  %7634 = vst [vmem:[#allocation96_spill] sm:$0xff] %v6768_v48 }
 0x3cb   : > { %v2097_v32 = vrot.slane %v6559_v6, %v6555_v23  ;;  %v1940_v22 = vrot.slane %v7624_v34, %v7623_v38 }
 0x3cc   : > { %v6557_v21 = vpop.xlane.xlu0 %1778 }
 0x3cd   : > { %v2161_v58 = vrot.slane %v6557_v21, %v6552_v57  ;;  %v2087_v21 = vrot.slane %v6504_v53, %v6538_v26  ;;  %v1942_v37 = vsel %vm7503_vm12, %v1940_v22, %v1935_v25 }
 0x3ce   : > { %v6597_v39 = vpop.xlane.xlu1 %1750 }
 0x3cf   : > { %v2092_v44 = vrot.slane %v6597_v39, %v6564_v54  ;;  %v2023_v39 = vrot.slane %v6452_v63, %v6570_v3  ;;  %v2162_v53 = vsel %vm1906_vm7, %v2161_v58, %v2157_v16  ;;  %v2088_v10 = vsel %vm1913_vm8, %v2087_v21, %v2083_v15 }
 0x3d0   : > { %v6595_v35 = vpop.xlane.xlu0 %1784  ;;  %v2167_v52 = vsel %vm1913_vm8, %v2166_v27, %v2162_v53  ;;  %v1949_v58 = vsel %vm7504_vm13, %v1947_v24, %v1942_v37 }
 0x3d1   : > { %v2093_v63 = vsel %vm1920_vm9, %v2092_v44, %v2088_v10  ;;  %v2024_v43 = vsel %vm1934_vm11, %v2023_v39, %v2019_v31  ;;  %v2176_v8 = vrot.slane %v6595_v35, %v6555_v23  ;;  %v7629_v35 = vld [vmem:[#allocation91_spill] sm:$0xff]  ;;  %v7631_v39 = vld [vmem:[#allocation89_spill] sm:$0xff] }
 0x3d2   : > { %v6628_v61 = vpop.xlane.xlu1 %1756  ;;  %v2098_v20 = vsel %vm1927_vm10, %v2097_v32, %v2093_v63  ;;  %v1954_v21 = vrot.slane %v7629_v35, %v7628_v30  ;;  %v2038_v16 = vrot.slane %v7631_v39, %v7628_v30  ;;  %v7632_v32 = vld [vmem:[#allocation94_spill] sm:$0xff] }
 0x3d3   : > { %v2107_v15 = vrot.slane %v6628_v61, %v7623_v38 }
 0x3d4   : > { %v6626_v1 = vpop.xlane.xlu0 %1782  ;;  %v1956_v10 = vsel %vm1955_vm14, %v1954_v21, %v1949_v58  ;;  %v1669_v58 = vld [vmem:[#allocation3] sm:$0xf] }
 0x3d5   : > { %v2171_v33 = vrot.slane %v6626_v1, %v6564_v54  ;;  %v1963_v63 = vsel %vm1962_vm15, %v1961_v59, %v1956_v10 }
 0x3d6   : > { %v1755_v7 = vpop.xlane.xlu1 %1754 }
 0x3d7   : > { %v2102_v0 = vrot.slane %v1755_v7, %v6570_v3  ;;  %v7626_v7 = vld [vmem:[#allocation87_spill] sm:$0xff]  ;;  %v2172_v46 = vsel %vm1920_vm9, %v2171_v33, %v2167_v52 }
 0x3d8   : > { %v6654_v55 = vpop.xlane.xlu0 %1788  ;;  %v2028_v12 = vrot.slane %v7626_v7, %v7623_v38  ;;  %v2177_v17 = vsel %vm1927_vm10, %v2176_v8, %v2172_v46 }
 0x3d9   : > { %v2103_v14 = vsel %vm1934_vm11, %v2102_v0, %v2098_v20  ;;  %v2186_v33 = vrot.slane %v6654_v55, %v7623_v38 }
 0x3da   : > { %v6680_v13 = vpop.xlane.xlu1 %1760  ;;  %v2029_v51 = vsel %vm7503_vm12, %v2028_v12, %v2024_v43  ;;  %v2108_v53 = vsel %vm7503_vm12, %v2107_v15, %v2103_v14 }
 0x3db   : > { %v2034_v9 = vsel %vm7504_vm13, %v2033_v18, %v2029_v51  ;;  %v2117_v0 = vrot.slane %v6680_v13, %v7628_v30  ;;  %v7633_v13 = vld [vmem:[#allocation92_spill] sm:$0xff] }
 0x3dc   : > { %v1787_v19 = vpop.xlane.xlu0 %1786  ;;  %v2039_v27 = vsel %vm1955_vm14, %v2038_v16, %v2034_v9  ;;  %v2048_v52 = vrot.slane %v7633_v13, %v6586_v49  ;;  %v7640_v13 = vld [vmem:[#allocation24_spill] sm:$0xff] }
 0x3dd   : > { %v2181_v6 = vrot.slane %v1787_v19, %v6570_v3  ;;  %v7630_v19 = vld [vmem:[#allocation93_spill] sm:$0xff] }
 0x3de   : > { %v1759_v11 = vpop.xlane.xlu1 %1758  ;;  %v2043_v5 = vrot.slane %v7630_v19, %v6624_v41  ;;  %v5578_v19 = vmov 1966171168  }
 0x3df   : > { %v2112_v4 = vrot.slane %v1759_v11, %v6583_v2  ;;  %v2182_v62 = vsel %vm1934_vm11, %v2181_v6, %v2177_v17  ;;  %v1968_v11 = vrot.slane %v7632_v32, %v6586_v49  ;;  %v2422_v32 = vsub.s32 3, %v6497_v60 }
 0x3e0   : > { %v1793_v1 = vpop.xlane.xlu0 %1792  ;;  %v2044_v24 = vsel %vm1962_vm15, %v2043_v5, %v2039_v27  ;;  %v2187_v43 = vsel %vm7503_vm12, %v2186_v33, %v2182_v62  ;;  %vm7506_vm12 = vcmask 1042434   ;;  %v3537_v5 = vunpack.c.l.s4 %v5578_v19 }
 0x3e1   : > { %v2113_v40 = vsel %vm7504_vm13, %v2112_v4, %v2108_v53  ;;  %v1970_v7 = vsel %vm1969_vm0, %v1968_v11, %v1963_v63  ;;  %v2196_v12 = vrot.slane %v1793_v1, %v7628_v30  ;;  %v2049_v37 = vsel %vm1969_vm0, %v2048_v52, %v2044_v24 }
 0x3e2   : > { %v1765_v56 = vpop.xlane.xlu1 %1764  ;;  %v2118_v18 = vsel %vm1955_vm14, %v2117_v0, %v2113_v40  ;;  %v2209_v4 = vsel %vm2208_vm1, %v2049_v37, %v1970_v7  ;;  %v3538_v39 = vunpack.c.0.s8 %v3537_v5  ;;  %v2355_v24 = vsub.s32 2, %v6497_v60  ;;  %v7645_v5 = vld [vmem:[#allocation30_spill] sm:$0xff] }
 0x3e3   : > { %v2127_v22 = vrot.slane %v1765_v56, %v6586_v49  ;;  %v2288_v56 = vsub.s32 1, %v6497_v60 }
 0x3e4   : > { %v1791_v44 = vpop.xlane.xlu0 %1790  ;;  %v6775_v16 = vsub.s32 %v3538_v39, %v6497_v60  ;;  %v7646_v39 = vld [vmem:[#allocation28_spill] sm:$0xff] }
 0x3e5   : > { %v2191_v61 = vrot.slane %v1791_v44, %v6583_v2 }
 0x3e6   : > { %v1763_v25 = vpop.xlane.xlu1 %1762  ;;  %7635 = vst [vmem:[#allocation88_spill] sm:$0xff] %v6775_v16 }
 0x3e7   : > { %v2122_v55 = vrot.slane %v1763_v25, %v6624_v41  ;;  %v2192_v34 = vsel %vm7504_vm13, %v2191_v61, %v2187_v43  ;;  %vm7505_vm13 = vcmask 1043459  }
 0x3e8   : > { %v1795_v31 = vpop.xlane.xlu0 %1794  ;;  %v2197_v8 = vsel %vm1955_vm14, %v2196_v12, %v2192_v34  ;;  %v668_v34 = vld [vmem:[%s5881_s13 + $0xa0] sm:$0xff] }
 0x3e9   : > { %v2201_v47 = vrot.slane %v1795_v31, %v6624_v41  ;;  %v2123_v46 = vsel %vm1962_vm15, %v2122_v55, %v2118_v18  ;;  %v664_v55 = vld [vmem:[%s5881_s13 + $0x80] sm:$0xff]  ;;  %4698 = vmatprep.mubr.f32.mxu1 %v668_v34 }
 0x3ea   : > { %v2128_v20 = vsel %vm1969_vm0, %v2127_v22, %v2123_v46  ;;  %v1797_v6 = vpop.xlane.xlu1 %1796  ;;  %4660 = vmatprep.mubr.f32.mxu0 %v664_v55 }
 0x3eb   : > { %v2206_v14 = vrot.slane %v1797_v6, %v6586_v49  ;;  %v2202_v51 = vsel %vm1962_vm15, %v2201_v47, %v2197_v8  ;;  %v2211_v1 = vsel %vm7506_vm12, %v2128_v20, %v2209_v4  ;;  %v7639_v47 = vld [vmem:[#allocation23_spill] sm:$0xff]  ;;  %v7641_v6 = vld [vmem:[#allocation26_spill] sm:$0xff]  ;;  %v7642_v8 = vld [vmem:[#allocation25_spill] sm:$0xff]  ;;  %vm7704_vm12 = vcmask 851712  }
 0x3ed   : > { %v2207_v59 = vsel %vm1969_vm0, %v2206_v14, %v2202_v51 }
 0x3ee   : > { %v2213_v15 = vsel %vm7505_vm13, %v2207_v59, %v2211_v1  ;;  %v7643_v59 = vld [vmem:[#allocation29_spill] sm:$0xff]  ;;  %vm7703_vm13 = vcmask 786112  }
 0x3ef   : > { %v2215_v44 = vmax.f32 %v1669_v58, %v2213_v15 }
 0x3f1   : > { %v2216_v9 = vsub.f32 %v1669_v58, %v2215_v44  ;;  %v2222_v35 = vrot.slane %v2215_v44, %v6768_v48  ;;  %3644 = vst [vmem:[#allocation3] sm:$0xf] %v2215_v44  ;;  %v2289_v17 = vrot.slane %v2215_v44, %v2288_v56  ;;  %v2356_v11 = vrot.slane %v2215_v44, %v2355_v24 }
 0x3f2   : > { %v2423_v43 = vrot.slane %v2215_v44, %v2422_v32  ;;  %v7644_v44 = vld [vmem:[#allocation27_spill] sm:$0xff] }
 0x3f3   : > { %v2217_v21 = vmul.f32 1.442695, %v2216_v9  ;;  %2228 = vbcast.lane.b32.xlu1 %v2222_v35, 264  ;;  %2224 = vbcast.lane.b32.xlu0 %v2222_v35, 256  ;;  %v7647_v32 = vld [vmem:[#allocation35_spill] sm:$0xff] }
 0x3f5   : > { %5231 = vpow2.f32 %v2217_v21 }
 0x3f7   : > { %2291 = vbcast.lane.b32.xlu1 %v2289_v17, 256  ;;  %2295 = vbcast.lane.b32.xlu0 %v2289_v17, 264 }
 0x3fb   : > { %2232 = vbcast.lane.b32.xlu1 %v2222_v35, 272  ;;  %2236 = vbcast.lane.b32.xlu0 %v2222_v35, 280 }
 0x3ff   : > { %v6777_v62 = vpop.eup %5231  ;;  %2299 = vbcast.lane.b32.xlu1 %v2289_v17, 272  ;;  %2303 = vbcast.lane.b32.xlu0 %v2289_v17, 280 }
 0x400   : > { %7636 = vst [vmem:[#allocation90_spill] sm:$0xff] %v6777_v62  ;;  %v3542_v53 = vrot.slane %v6777_v62, %v6775_v16  ;;  %v3566_v62 = vld [vmem:[#allocation5 + $0x30] sm:$0xff] }
 0x402   : > { %v3550_v61 = vrot.slane %v3542_v53, %v6775_v16  ;;  %v3543_v10 = vcombine.high %v3542_v53, %v3542_v53 }
 0x403   : > { %2240 = vbcast.lane.b32.xlu1 %v2222_v35, 288  ;;  %2244 = vbcast.lane.b32.xlu0 %v2222_v35, 296 }
 0x404   : > { %v6783_v33 = vrot.slane %v3550_v61, %v6768_v48  ;;  %v3557_v40 = vrot.slane %v3543_v10, %v6775_v16  ;;  %v3558_v27 = vcombine.high %v3550_v61, %v3550_v61 }
 0x406   : > { %v6787_v63 = vrot.slane %v3557_v40, %v6768_v48  ;;  %v6790_v0 = vrot.slane %v3558_v27, %v6768_v48  ;;  %v3559_v31 = vcombine.high %v3557_v40, %v3557_v40 }
 0x407   : > { %2307 = vbcast.lane.b32.xlu1 %v2289_v17, 288  ;;  %2311 = vbcast.lane.b32.xlu0 %v2289_v17, 296 }
 0x408   : > { %7637 = vst [vmem:[#allocation87_spill] sm:$0xff] %v6790_v0  ;;  %v6793_v25 = vrot.slane %v3559_v31, %v6768_v48  ;;  %v3567_v0 = vld [vmem:[#allocation5 + $0x38] sm:$0xff] }
 0x40a   : > { %7638 = vst [vmem:[#allocation95_spill] sm:$0xff] %v6793_v25  ;;  %v3564_v25 = vld [vmem:[#allocation5 + $0x20] sm:$0xff] }
 0x40b   : > { %2248 = vbcast.lane.b32.xlu1 %v2222_v35, 304  ;;  %2252 = vbcast.lane.b32.xlu0 %v2222_v35, 312 }
 0x40f   : > { %2315 = vbcast.lane.b32.xlu1 %v2289_v17, 304  ;;  %2319 = vbcast.lane.b32.xlu0 %v2289_v17, 312 }
 0x413   : > { %2256 = vbcast.lane.b32.xlu1 %v2222_v35, 320  ;;  %2260 = vbcast.lane.b32.xlu0 %v2222_v35, 328 }
 0x417   : > { %2323 = vbcast.lane.b32.xlu1 %v2289_v17, 320  ;;  %2327 = vbcast.lane.b32.xlu0 %v2289_v17, 328 }
 0x41b   : > { %2264 = vbcast.lane.b32.xlu1 %v2222_v35, 336  ;;  %2268 = vbcast.lane.b32.xlu0 %v2222_v35, 344 }
 0x41f   : > { %2331 = vbcast.lane.b32.xlu1 %v2289_v17, 336  ;;  %2335 = vbcast.lane.b32.xlu0 %v2289_v17, 344 }
 0x423   : > { %2272 = vbcast.lane.b32.xlu1 %v2222_v35, 352  ;;  %2276 = vbcast.lane.b32.xlu0 %v2222_v35, 360 }
 0x427   : > { %2339 = vbcast.lane.b32.xlu1 %v2289_v17, 352  ;;  %2343 = vbcast.lane.b32.xlu0 %v2289_v17, 360 }
 0x42b   : > { %2280 = vbcast.lane.b32.xlu1 %v2222_v35, 368  ;;  %2284 = vbcast.lane.b32.xlu0 %v2222_v35, 376 }
 0x42f   : > { %2347 = vbcast.lane.b32.xlu1 %v2289_v17, 368  ;;  %2351 = vbcast.lane.b32.xlu0 %v2289_v17, 376 }
 0x433   : > { %2358 = vbcast.lane.b32.xlu1 %v2356_v11, 256  ;;  %2362 = vbcast.lane.b32.xlu0 %v2356_v11, 264 }
 0x437   : > { %2425 = vbcast.lane.b32.xlu1 %v2423_v43, 256  ;;  %2429 = vbcast.lane.b32.xlu0 %v2423_v43, 264 }
 0x43b   : > { %2366 = vbcast.lane.b32.xlu1 %v2356_v11, 272  ;;  %2370 = vbcast.lane.b32.xlu0 %v2356_v11, 280 }
 0x43f   : > { %2433 = vbcast.lane.b32.xlu1 %v2423_v43, 272  ;;  %2437 = vbcast.lane.b32.xlu0 %v2423_v43, 280 }
 0x443   : > { %2374 = vbcast.lane.b32.xlu1 %v2356_v11, 288  ;;  %2378 = vbcast.lane.b32.xlu0 %v2356_v11, 296 }
 0x447   : > { %2441 = vbcast.lane.b32.xlu1 %v2423_v43, 288  ;;  %2445 = vbcast.lane.b32.xlu0 %v2423_v43, 296 }
 0x44b   : > { %2382 = vbcast.lane.b32.xlu1 %v2356_v11, 304  ;;  %2386 = vbcast.lane.b32.xlu0 %v2356_v11, 312 }
 0x44f   : > { %2449 = vbcast.lane.b32.xlu1 %v2423_v43, 304  ;;  %2453 = vbcast.lane.b32.xlu0 %v2423_v43, 312 }
 0x453   : > { %2390 = vbcast.lane.b32.xlu1 %v2356_v11, 320  ;;  %2394 = vbcast.lane.b32.xlu0 %v2356_v11, 328 }
 0x457   : > { %2457 = vbcast.lane.b32.xlu1 %v2423_v43, 320  ;;  %2461 = vbcast.lane.b32.xlu0 %v2423_v43, 328 }
 0x45b   : > { %2398 = vbcast.lane.b32.xlu1 %v2356_v11, 336  ;;  %2402 = vbcast.lane.b32.xlu0 %v2356_v11, 344 }
 0x45f   : > { %2465 = vbcast.lane.b32.xlu1 %v2423_v43, 336  ;;  %2469 = vbcast.lane.b32.xlu0 %v2423_v43, 344 }
 0x463   : > { %2406 = vbcast.lane.b32.xlu1 %v2356_v11, 352  ;;  %2410 = vbcast.lane.b32.xlu0 %v2356_v11, 360 }
 0x465   : > { %v2229_v60 = vpop.permute.xlu1 %2228  ;;  %v2225_v22 = vpop.permute.xlu0 %2224 }
 0x466   : > { %v2488_v18 = vsub.f32 %v7639_v47, %v2229_v60  ;;  %v2487_v52 = vsub.f32 %v7640_v13, %v2225_v22 }
 0x467   : > { %2473 = vbcast.lane.b32.xlu1 %v2423_v43, 352  ;;  %2477 = vbcast.lane.b32.xlu0 %v2423_v43, 360 }
 0x468   : > { %v2553_v7 = vmul.f32 1.442695, %v2488_v18  ;;  %v2551_v12 = vmul.f32 1.442695, %v2487_v52 }
 0x469   : > { %v2292_v46 = vpop.permute.xlu1 %2291  ;;  %v2296_v20 = vpop.permute.xlu0 %2295 }
 0x46a   : > { %5233 = vpow2.f32 %v2553_v7  ;;  %v2503_v37 = vsub.f32 %v7641_v6, %v2292_v46  ;;  %v2504_v14 = vsub.f32 %v7642_v8, %v2296_v20  ;;  %v7649_v7 = vld [vmem:[#allocation32_spill] sm:$0xff]  ;;  %v7650_v46 = vld [vmem:[#allocation31_spill] sm:$0xff] }
 0x46b   : > { %5235 = vpow2.f32 %v2551_v12  ;;  %2414 = vbcast.lane.b32.xlu1 %v2356_v11, 368  ;;  %2418 = vbcast.lane.b32.xlu0 %v2356_v11, 376 }
 0x46c   : > { %v2583_v4 = vmul.f32 1.442695, %v2503_v37  ;;  %v2585_v51 = vmul.f32 1.442695, %v2504_v14 }
 0x46d   : > { %v2233_v58 = vpop.permute.xlu1 %2232  ;;  %v2237_v1 = vpop.permute.xlu0 %2236 }
 0x46e   : > { %5237 = vpow2.f32 %v2583_v4  ;;  %v2489_v15 = vsub.f32 %v7643_v59, %v2233_v58  ;;  %v2490_v56 = vsub.f32 %v7644_v44, %v2237_v1  ;;  %v7651_v1 = vld [vmem:[#allocation39_spill] sm:$0xff] }
 0x46f   : > { %5239 = vpow2.f32 %v2585_v51  ;;  %2481 = vbcast.lane.b32.xlu1 %v2423_v43, 368  ;;  %2485 = vbcast.lane.b32.xlu0 %v2423_v43, 376  ;;  %v7648_v43 = vld [vmem:[#allocation33_spill] sm:$0xff] }
 0x470   : > { %v2555_v9 = vmul.f32 1.442695, %v2489_v15  ;;  %v2557_v35 = vmul.f32 1.442695, %v2490_v56  ;;  %v7652_v15 = vld [vmem:[#allocation37_spill] sm:$0xff] }
 0x471   : > { %v2300_v21 = vpop.permute.xlu1 %2299  ;;  %v2304_v19 = vpop.permute.xlu0 %2303 }
 0x472   : > { %5241 = vpow2.f32 %v2555_v9  ;;  %v2505_v17 = vsub.f32 %v7645_v5, %v2300_v21  ;;  %v2506_v53 = vsub.f32 %v7646_v39, %v2304_v19  ;;  %v7653_v39 = vld [vmem:[#allocation36_spill] sm:$0xff] }
 0x473   : > { %5243 = vpow2.f32 %v2557_v35 }
 0x474   : > { %v6807_v61 = vpop.eup %5233  ;;  %v2587_v10 = vmul.f32 1.442695, %v2505_v17  ;;  %v2589_v40 = vmul.f32 1.442695, %v2506_v53 }
 0x475   : > { %v6809_v27 = vpop.eup %5235  ;;  %v2241_v31 = vpop.permute.xlu1 %2240 }
 0x476   : > { %v2245_v24 = vpop.permute.xlu0 %2244  ;;  %5245 = vpow2.f32 %v2587_v10  ;;  %v2491_v11 = vsub.f32 %v7647_v32, %v2241_v31  ;;  %v4900_v34 = vpack.c.bf16 %v6807_v61, %v6809_v27  ;;  %v7654_v10 = vld [vmem:[#allocation34_spill] sm:$0xff] }
 0x477   : > { %v2492_v55 = vsub.f32 %v7648_v43, %v2245_v24  ;;  %5247 = vpow2.f32 %v2589_v40 }
 0x478   : > { %v6815_v60 = vpop.eup %5237  ;;  %v2559_v22 = vmul.f32 1.442695, %v2491_v11  ;;  %4901 = vmatprep.subr.bf16.mxu0 %v4900_v34 }
 0x479   : > { %v2561_v47 = vmul.f32 1.442695, %v2492_v55  ;;  %v6817_v18 = vpop.eup %5239  ;;  %4903 = vmatpush3.bf16.xpose.msra.mxu0 %v4900_v34  ;;  %v2308_v13 = vpop.permute.xlu1 %2307 }
 0x47a   : > { %v2312_v52 = vpop.permute.xlu0 %2311  ;;  %5249 = vpow2.f32 %v2559_v22  ;;  %v2507_v12 = vsub.f32 %v7649_v7, %v2308_v13  ;;  %v4932_v6 = vpack.c.bf16 %v6817_v18, %v6815_v60  ;;  %v7655_v22 = vld [vmem:[#allocation43_spill] sm:$0xff]  ;;  %v7656_v13 = vld [vmem:[#allocation41_spill] sm:$0xff] }
 0x47b   : > { %v2508_v20 = vsub.f32 %v7650_v46, %v2312_v52  ;;  %5251 = vpow2.f32 %v2561_v47 }
 0x47c   : > { %v6823_v37 = vpop.eup %5241  ;;  %v2591_v8 = vmul.f32 1.442695, %v2507_v12  ;;  %4933 = vmatprep.subr.bf16.mxu1 %v4932_v6 }
 0x47d   : > { %v2593_v14 = vmul.f32 1.442695, %v2508_v20  ;;  %v6825_v4 = vpop.eup %5243  ;;  %4935 = vmatpush3.bf16.xpose.msra.mxu1 %v4932_v6  ;;  %v2249_v51 = vpop.permute.xlu1 %2248 }
 0x47e   : > { %v2253_v58 = vpop.permute.xlu0 %2252  ;;  %5253 = vpow2.f32 %v2591_v8  ;;  %v2493_v59 = vsub.f32 %v7651_v1, %v2249_v51  ;;  %v4904_v56 = vpack.c.bf16 %v6825_v4, %v6823_v37  ;;  %v7657_v51 = vld [vmem:[#allocation40_spill] sm:$0xff]  ;;  %v7658_v1 = vld [vmem:[#allocation38_spill] sm:$0xff] }
 0x47f   : > { %v2494_v44 = vsub.f32 %v7652_v15, %v2253_v58  ;;  %5255 = vpow2.f32 %v2593_v14 }
 0x480   : > { %v6831_v9 = vpop.eup %5245  ;;  %v2563_v35 = vmul.f32 1.442695, %v2493_v59  ;;  %4905 = vmatprep.subr.bf16.mxu0 %v4904_v56 }
 0x481   : > { %v2565_v21 = vmul.f32 1.442695, %v2494_v44  ;;  %v6833_v19 = vpop.eup %5247  ;;  %4907 = vmatpush3.bf16.xpose.msra.mxu0 %v4904_v56  ;;  %v2316_v5 = vpop.permute.xlu1 %2315 }
 0x482   : > { %v2320_v17 = vpop.permute.xlu0 %2319  ;;  %5257 = vpow2.f32 %v2563_v35  ;;  %v2509_v53 = vsub.f32 %v7653_v39, %v2316_v5  ;;  %v4936_v31 = vpack.c.bf16 %v6833_v19, %v6831_v9  ;;  %v7659_v39 = vld [vmem:[#allocation47_spill] sm:$0xff] }
 0x483   : > { %v2510_v40 = vsub.f32 %v7654_v10, %v2320_v17  ;;  %5259 = vpow2.f32 %v2565_v21  ;;  %v7660_v10 = vld [vmem:[#allocation45_spill] sm:$0xff] }
 0x484   : > { %v6839_v24 = vpop.eup %5249  ;;  %v2595_v32 = vmul.f32 1.442695, %v2509_v53  ;;  %4937 = vmatprep.subr.bf16.mxu1 %v4936_v31 }
 0x485   : > { %v2597_v11 = vmul.f32 1.442695, %v2510_v40  ;;  %v6841_v43 = vpop.eup %5251  ;;  %4939 = vmatpush3.bf16.xpose.msra.mxu1 %v4936_v31  ;;  %v2257_v55 = vpop.permute.xlu1 %2256 }
 0x486   : > { %v2261_v34 = vpop.permute.xlu0 %2260  ;;  %5261 = vpow2.f32 %v2595_v32  ;;  %v2495_v47 = vsub.f32 %v7655_v22, %v2257_v55  ;;  %v4908_v7 = vpack.c.bf16 %v6841_v43, %v6839_v24 }
 0x487   : > { %v2496_v52 = vsub.f32 %v7656_v13, %v2261_v34  ;;  %5263 = vpow2.f32 %v2597_v11  ;;  %v7661_v13 = vld [vmem:[#allocation44_spill] sm:$0xff] }
 0x488   : > { %v6847_v12 = vpop.eup %5253  ;;  %v2567_v46 = vmul.f32 1.442695, %v2495_v47  ;;  %4909 = vmatprep.subr.bf16.mxu0 %v4908_v7 }
 0x489   : > { %v2569_v20 = vmul.f32 1.442695, %v2496_v52  ;;  %v6849_v6 = vpop.eup %5255  ;;  %4911 = vmatpush3.bf16.xpose.msra.mxu0 %v4908_v7  ;;  %v2324_v8 = vpop.permute.xlu1 %2323  ;;  %v7662_v7 = vld [vmem:[#allocation42_spill] sm:$0xff] }
 0x48a   : > { %v2328_v14 = vpop.permute.xlu0 %2327  ;;  %5265 = vpow2.f32 %v2567_v46  ;;  %v2511_v58 = vsub.f32 %v7657_v51, %v2324_v8  ;;  %v4940_v15 = vpack.c.bf16 %v6849_v6, %v6847_v12 }
 0x48b   : > { %v2512_v59 = vsub.f32 %v7658_v1, %v2328_v14  ;;  %5267 = vpow2.f32 %v2569_v20 }
 0x48c   : > { %v5258_v44 = vpop.eup %5257  ;;  %v2599_v56 = vmul.f32 1.442695, %v2511_v58  ;;  %4941 = vmatprep.subr.bf16.mxu1 %v4940_v15 }
 0x48d   : > { %v2601_v35 = vmul.f32 1.442695, %v2512_v59  ;;  %v6855_v21 = vpop.eup %5259  ;;  %4943 = vmatpush3.bf16.xpose.msra.mxu1 %v4940_v15  ;;  %v2265_v5 = vpop.permute.xlu1 %2264  ;;  %v7663_v59 = vld [vmem:[#allocation51_spill] sm:$0xff] }
 0x48e   : > { %v2269_v17 = vpop.permute.xlu0 %2268  ;;  %5269 = vpow2.f32 %v2599_v56  ;;  %v2497_v53 = vsub.f32 %v7659_v39, %v2265_v5  ;;  %2683 = vadd.xlane.f32.xlu0 %v6807_v61  ;;  %v4912_v31 = vpack.c.bf16 %v6855_v21, %v5258_v44  ;;  %v7664_v56 = vld [vmem:[#allocation49_spill] sm:$0xff] }
 0x48f   : > { %v2498_v40 = vsub.f32 %v7660_v10, %v2269_v17  ;;  %5271 = vpow2.f32 %v2601_v35 }
 0x490   : > { %v6861_v32 = vpop.eup %5261  ;;  %v2571_v11 = vmul.f32 1.442695, %v2497_v53  ;;  %4913 = vmatprep.subr.bf16.mxu0 %v4912_v31 }
 0x491   : > { %v2573_v55 = vmul.f32 1.442695, %v2498_v40  ;;  %v6863_v34 = vpop.eup %5263  ;;  %4915 = vmatpush3.bf16.xpose.msra.mxu0 %v4912_v31  ;;  %v2332_v22 = vpop.permute.xlu1 %2331  ;;  %v7665_v40 = vld [vmem:[#allocation48_spill] sm:$0xff] }
 0x492   : > { %v2336_v47 = vpop.permute.xlu0 %2335  ;;  %5273 = vpow2.f32 %v2571_v11  ;;  %v2513_v52 = vsub.f32 %v7661_v13, %v2332_v22  ;;  %2685 = vadd.xlane.f32.xlu0 %v6823_v37  ;;  %v4944_v61 = vpack.c.bf16 %v6863_v34, %v6861_v32  ;;  %v7666_v11 = vld [vmem:[#allocation46_spill] sm:$0xff] }
 0x493   : > { %v2514_v46 = vsub.f32 %v7662_v7, %v2336_v47  ;;  %5275 = vpow2.f32 %v2573_v55  ;;  %2681 = vadd.xlane.f32.xlu1 %v6809_v27 }
 0x494   : > { %v5266_v20 = vpop.eup %5265  ;;  %v2603_v8 = vmul.f32 1.442695, %v2513_v52  ;;  %4945 = vmatprep.subr.bf16.mxu1 %v4944_v61 }
 0x495   : > { %v2605_v14 = vmul.f32 1.442695, %v2514_v46  ;;  %v5268_v51 = vpop.eup %5267  ;;  %4947 = vmatpush3.bf16.xpose.msra.mxu1 %v4944_v61  ;;  %v2273_v58 = vpop.permute.xlu1 %2272  ;;  %v7667_v46 = vld [vmem:[#allocation55_spill] sm:$0xff] }
 0x496   : > { %v2277_v1 = vpop.permute.xlu0 %2276  ;;  %5277 = vpow2.f32 %v2603_v8  ;;  %v2499_v15 = vsub.f32 %v7663_v59, %v2273_v58  ;;  %2689 = vadd.xlane.f32.xlu0 %v6839_v24  ;;  %v4916_v37 = vpack.c.bf16 %v5268_v51, %v5266_v20  ;;  %v7668_v8 = vld [vmem:[#allocation53_spill] sm:$0xff] }
 0x497   : > { %v2500_v35 = vsub.f32 %v7664_v56, %v2277_v1  ;;  %5279 = vpow2.f32 %v2605_v14  ;;  %2687 = vadd.xlane.f32.xlu1 %v6825_v4 }
 0x498   : > { %v6875_v27 = vpop.eup %5269  ;;  %v2575_v5 = vmul.f32 1.442695, %v2499_v15  ;;  %4917 = vmatprep.subr.bf16.mxu0 %v4916_v37 }
 0x499   : > { %v2577_v17 = vmul.f32 1.442695, %v2500_v35  ;;  %v6877_v39 = vpop.eup %5271  ;;  %4919 = vmatpush3.bf16.xpose.msra.mxu0 %v4916_v37  ;;  %v2340_v53 = vpop.permute.xlu1 %2339  ;;  %v7669_v35 = vld [vmem:[#allocation52_spill] sm:$0xff] }
 0x49a   : > { %v2344_v10 = vpop.permute.xlu0 %2343  ;;  %5281 = vpow2.f32 %v2575_v5  ;;  %v2515_v31 = vsub.f32 %v7665_v40, %v2340_v53  ;;  %2693 = vadd.xlane.f32.xlu0 %v5258_v44  ;;  %v4948_v24 = vpack.c.bf16 %v6877_v39, %v6875_v27  ;;  %v7670_v5 = vld [vmem:[#allocation50_spill] sm:$0xff] }
 0x49b   : > { %v2516_v55 = vsub.f32 %v7666_v11, %v2344_v10  ;;  %5283 = vpow2.f32 %v2577_v17  ;;  %2691 = vadd.xlane.f32.xlu1 %v6841_v43 }
 0x49c   : > { %v5274_v4 = vpop.eup %5273  ;;  %v2607_v22 = vmul.f32 1.442695, %v2515_v31  ;;  %4949 = vmatprep.subr.bf16.mxu1 %v4948_v24 }
 0x49d   : > { %v2609_v47 = vmul.f32 1.442695, %v2516_v55  ;;  %v5276_v13 = vpop.eup %5275  ;;  %4951 = vmatpush3.bf16.xpose.msra.mxu1 %v4948_v24  ;;  %v2281_v52 = vpop.permute.xlu1 %2280  ;;  %v7671_v55 = vld [vmem:[#allocation57_spill] sm:$0xff] }
 0x49e   : > { %v2285_v7 = vpop.permute.xlu0 %2284  ;;  %5285 = vpow2.f32 %v2607_v22  ;;  %v2501_v61 = vsub.f32 %v7667_v46, %v2281_v52  ;;  %2697 = vadd.xlane.f32.xlu0 %v5266_v20  ;;  %v4920_v44 = vpack.c.bf16 %v5276_v13, %v5274_v4  ;;  %v7672_v22 = vld [vmem:[#allocation56_spill] sm:$0xff] }
 0x49f   : > { %v2502_v14 = vsub.f32 %v7668_v8, %v2285_v7  ;;  %5287 = vpow2.f32 %v2609_v47  ;;  %2695 = vadd.xlane.f32.xlu1 %v6855_v21 }
 0x4a0   : > { %v6887_v58 = vpop.eup %5277  ;;  %v2579_v43 = vmul.f32 1.442695, %v2501_v61  ;;  %4921 = vmatprep.subr.bf16.mxu0 %v4920_v44 }
 0x4a1   : > { %v2581_v1 = vmul.f32 1.442695, %v2502_v14  ;;  %v6889_v59 = vpop.eup %5279  ;;  %4923 = vmatpush3.bf16.xpose.msra.mxu0 %v4920_v44  ;;  %v2348_v15 = vpop.permute.xlu1 %2347  ;;  %v7673_v14 = vld [vmem:[#allocation58_spill] sm:$0xff] }
 0x4a2   : > { %v2352_v56 = vpop.permute.xlu0 %2351  ;;  %5289 = vpow2.f32 %v2579_v43  ;;  %v2517_v37 = vsub.f32 %v7669_v35, %v2348_v15  ;;  %2701 = vadd.xlane.f32.xlu0 %v5274_v4  ;;  %v4952_v20 = vpack.c.bf16 %v6889_v59, %v6887_v58  ;;  %v7674_v43 = vld [vmem:[#allocation54_spill] sm:$0xff] }
 0x4a3   : > { %v2518_v17 = vsub.f32 %v7670_v5, %v2352_v56  ;;  %5291 = vpow2.f32 %v2581_v1  ;;  %2699 = vadd.xlane.f32.xlu1 %v5268_v51 }
 0x4a4   : > { %v5282_v21 = vpop.eup %5281  ;;  %v2611_v53 = vmul.f32 1.442695, %v2517_v37  ;;  %4953 = vmatprep.subr.bf16.mxu1 %v4952_v20 }
 0x4a5   : > { %v2613_v10 = vmul.f32 1.442695, %v2518_v17  ;;  %v5284_v40 = vpop.eup %5283  ;;  %4955 = vmatpush3.bf16.xpose.msra.mxu1 %v4952_v20  ;;  %v2359_v31 = vpop.permute.xlu1 %2358  ;;  %v7675_v20 = vld [vmem:[#allocation61_spill] sm:$0xff] }
 0x4a6   : > { %v2363_v11 = vpop.permute.xlu0 %2362  ;;  %5293 = vpow2.f32 %v2611_v53  ;;  %v2519_v24 = vsub.f32 %v7671_v55, %v2359_v31  ;;  %2705 = vadd.xlane.f32.xlu0 %v5282_v21  ;;  %v4924_v4 = vpack.c.bf16 %v5284_v40, %v5282_v21  ;;  %v7676_v53 = vld [vmem:[#allocation60_spill] sm:$0xff] }
 0x4a7   : > { %v2520_v47 = vsub.f32 %v7672_v22, %v2363_v11  ;;  %5295 = vpow2.f32 %v2613_v10  ;;  %2703 = vadd.xlane.f32.xlu1 %v5276_v13 }
 0x4a8   : > { %v6897_v52 = vpop.eup %5285  ;;  %v2615_v51 = vmul.f32 1.442695, %v2519_v24  ;;  %4925 = vmatprep.subr.bf16.mxu0 %v4924_v4 }
 0x4a9   : > { %v2617_v7 = vmul.f32 1.442695, %v2520_v47  ;;  %v6899_v46 = vpop.eup %5287  ;;  %4927 = vmatpush3.bf16.xpose.msra.mxu0 %v4924_v4  ;;  %v2426_v61 = vpop.permute.xlu1 %2425  ;;  %v7677_v4 = vld [vmem:[#allocation62_spill] sm:$0xff] }
 0x4aa   : > { %v2430_v8 = vpop.permute.xlu0 %2429  ;;  %5297 = vpow2.f32 %v2615_v51  ;;  %v2535_v44 = vsub.f32 %v7673_v14, %v2426_v61  ;;  %v4956_v15 = vpack.c.bf16 %v6899_v46, %v6897_v52 }
 0x4ab   : > { %v2536_v1 = vsub.f32 %v7674_v43, %v2430_v8  ;;  %5299 = vpow2.f32 %v2617_v7  ;;  %2707 = vadd.xlane.f32.xlu1 %v5284_v40  ;;  %v7678_v7 = vld [vmem:[#allocation59_spill] sm:$0xff] }
 0x4ac   : > { %v5290_v13 = vpop.eup %5289  ;;  %v2647_v56 = vmul.f32 1.442695, %v2535_v44  ;;  %4957 = vmatprep.subr.bf16.mxu1 %v4956_v15 }
 0x4ad   : > { %v2649_v35 = vmul.f32 1.442695, %v2536_v1  ;;  %v5292_v37 = vpop.eup %5291  ;;  %4959 = vmatpush3.bf16.xpose.msra.mxu1 %v4956_v15  ;;  %v2367_v5 = vpop.permute.xlu1 %2366  ;;  %2709 = vadd.xlane.f32.xlu0 %v5290_v13 }
 0x4ae   : > { %v2371_v17 = vpop.permute.xlu0 %2370  ;;  %5301 = vpow2.f32 %v2647_v56  ;;  %v2521_v21 = vsub.f32 %v7675_v20, %v2367_v5  ;;  %v4928_v31 = vpack.c.bf16 %v5292_v37, %v5290_v13  ;;  %v665_v13 = vld [vmem:[%s5881_s13 + $0x88] sm:$0xff]  ;;  %v7679_v56 = vld [vmem:[#allocation65_spill] sm:$0xff] }
 0x4af   : > { %v2522_v10 = vsub.f32 %v7676_v53, %v2371_v17  ;;  %5303 = vpow2.f32 %v2649_v35  ;;  %2711 = vadd.xlane.f32.xlu1 %v5292_v37  ;;  %v7680_v37 = vld [vmem:[#allocation63_spill] sm:$0xff]  ;;  %v666_v17 = vld [vmem:[%s5881_s13 + $0x90] sm:$0xff] }
 0x4b0   : > { %v6907_v11 = vpop.eup %5293  ;;  %v2619_v40 = vmul.f32 1.442695, %v2521_v21  ;;  %4929 = vmatprep.subr.bf16.mxu0 %v4928_v31 }
 0x4b1   : > { %v2621_v55 = vmul.f32 1.442695, %v2522_v10  ;;  %v6909_v24 = vpop.eup %5295  ;;  %4931 = vmatpush3.bf16.xpose.msra.mxu0 %v4928_v31  ;;  %v2434_v22 = vpop.permute.xlu1 %2433  ;;  %2713 = vadd.xlane.f32.xlu0 %v6815_v60 }
 0x4b2   : > { %v2438_v47 = vpop.permute.xlu0 %2437  ;;  %5305 = vpow2.f32 %v2619_v40  ;;  %v2537_v51 = vsub.f32 %v7677_v4, %v2434_v22  ;;  %v4960_v8 = vpack.c.bf16 %v6909_v24, %v6907_v11  ;;  %v667_v40 = vld [vmem:[%s5881_s13 + $0x98] sm:$0xff]  ;;  %v7682_v4 = vld [vmem:[#allocation64_spill] sm:$0xff] }
 0x4b3   : > { %v2538_v61 = vsub.f32 %v7678_v7, %v2438_v47  ;;  %5307 = vpow2.f32 %v2621_v55  ;;  %2715 = vadd.xlane.f32.xlu1 %v6817_v18  ;;  %v669_v55 = vld [vmem:[%s5881_s13 + $0xa8] sm:$0xff]  ;;  %v7681_v22 = vld [vmem:[#allocation66_spill] sm:$0xff] }
 0x4b4   : > { %v5298_v14 = vpop.eup %5297  ;;  %v2651_v44 = vmul.f32 1.442695, %v2537_v51  ;;  %4961 = vmatprep.subr.bf16.mxu1 %v4960_v8 }
 0x4b5   : > { %v2653_v43 = vmul.f32 1.442695, %v2538_v61  ;;  %v5300_v1 = vpop.eup %5299  ;;  %4963 = vmatpush3.bf16.xpose.msra.mxu1 %v4960_v8  ;;  %v2375_v60 = vpop.permute.xlu1 %2374  ;;  %2717 = vadd.xlane.f32.xlu0 %v6831_v9  ;;  %v670_v61 = vld [vmem:[%s5881_s13 + $0xb0] sm:$0xff] }
 0x4b6   : > { %v2379_v15 = vpop.permute.xlu0 %2378  ;;  %5309 = vpow2.f32 %v2651_v44  ;;  %v2523_v35 = vsub.f32 %v7679_v56, %v2375_v60  ;;  %v4964_v18 = vpack.c.bf16 %v5300_v1, %v5298_v14  ;;  %v7683_v56 = vld [vmem:[#allocation69_spill] sm:$0xff] }
 0x4b7   : > { %v2524_v5 = vsub.f32 %v7680_v37, %v2379_v15  ;;  %5311 = vpow2.f32 %v2653_v43  ;;  %2745 = vadd.xlane.f32.xlu1 %v5298_v14  ;;  %v672_v43 = vld [vmem:[%s5881_s13 + $0xc0] sm:$0xff] }
 0x4b8   : > { %v5302_v20 = vpop.eup %5301  ;;  %v2623_v21 = vmul.f32 1.442695, %v2523_v35  ;;  %4661 = vmatmul.mubr.f32.vlgmr.msra.gmra.mrb[32].mxu0 %v665_v13  ;;  %4965 = vmatprep.subr.bf16.mxu0 %v4964_v18  ;;  %v671_v13 = vld [vmem:[%s5881_s13 + $0xb8] sm:$0xff]  ;;  %v7684_v37 = vld [vmem:[#allocation67_spill] sm:$0xff] }
 0x4b9   : > { %v2625_v53 = vmul.f32 1.442695, %v2524_v5  ;;  %v5304_v9 = vpop.eup %5303  ;;  %4967 = vmatpush3.bf16.xpose.msra.mxu0 %v4964_v18  ;;  %v2442_v10 = vpop.permute.xlu1 %2441  ;;  %2747 = vadd.xlane.f32.xlu0 %v5300_v1  ;;  %v676_v18 = vld [vmem:[%s5881_s13 + $0xe0] sm:$0xff] }
 0x4ba   : > { %v2446_v31 = vpop.permute.xlu0 %2445  ;;  %5313 = vpow2.f32 %v2623_v21  ;;  %v2539_v47 = vsub.f32 %v7681_v22, %v2442_v10  ;;  %4663 = vmatprep.mubr.f32.mxu0 %v666_v17  ;;  %v4996_v7 = vpack.c.bf16 %v5304_v9, %v5302_v20 }
 0x4bb   : > { %v2540_v51 = vsub.f32 %v7682_v4, %v2446_v31  ;;  %5315 = vpow2.f32 %v2625_v53  ;;  %2719 = vadd.xlane.f32.xlu1 %v6833_v19 }
 0x4bc   : > { %v5306_v8 = vpop.eup %5305  ;;  %v2655_v14 = vmul.f32 1.442695, %v2539_v47  ;;  %4664 = vmatmul.mubr.f32.gmra.mrb[34].mxu0 %v667_v40  ;;  %4699 = vmatmul.mubr.f32.vlgmr.msra.gmra.mrb[32].mxu1 %v669_v55  ;;  %v7685_v55 = vld [vmem:[#allocation70_spill] sm:$0xff]  ;;  %v7686_v47 = vld [vmem:[#allocation68_spill] sm:$0xff] }
 0x4bd   : > { %v2657_v44 = vmul.f32 1.442695, %v2540_v51  ;;  %v5308_v1 = vpop.eup %5307  ;;  %4997 = vmatprep.subr.bf16.mxu1 %v4996_v7  ;;  %v2383_v60 = vpop.permute.xlu1 %2382  ;;  %2749 = vadd.xlane.f32.xlu0 %v5306_v8 }
 0x4be   : > { %v2387_v15 = vpop.permute.xlu0 %2386  ;;  %5317 = vpow2.f32 %v2655_v14  ;;  %4999 = vmatpush3.bf16.xpose.msra.mxu1 %v4996_v7  ;;  %v2525_v35 = vsub.f32 %v7683_v56, %v2383_v60  ;;  %4701 = vmatprep.mubr.f32.mxu1 %v670_v61  ;;  %v4968_v5 = vpack.c.bf16 %v5308_v1, %v5306_v8  ;;  %v7688_v60 = vld [vmem:[#allocation71_spill] sm:$0xff] }
 0x4bf   : > { %v2526_v19 = vsub.f32 %v7684_v37, %v2387_v15  ;;  %5319 = vpow2.f32 %v2657_v44  ;;  %2777 = vadd.xlane.f32.xlu1 %v5302_v20  ;;  %4736 = vmatprep.mubr.f32.mxu0 %v672_v43 }
 0x4c0   : > { %v5310_v17 = vpop.eup %5309  ;;  %v2627_v21 = vmul.f32 1.442695, %v2525_v35  ;;  %4702 = vmatmul.mubr.f32.gmra.mrb[34].mxu1 %v671_v13  ;;  %4969 = vmatprep.subr.bf16.mxu0 %v4968_v5 }
 0x4c1   : > { %v2629_v53 = vmul.f32 1.442695, %v2526_v19  ;;  %v5312_v10 = vpop.eup %5311  ;;  %4971 = vmatpush3.bf16.xpose.msra.mxu0 %v4968_v5  ;;  %v2450_v31 = vpop.permute.xlu1 %2449  ;;  %2779 = vadd.xlane.f32.xlu0 %v5304_v9  ;;  %v7687_v9 = vld [vmem:[#allocation73_spill] sm:$0xff]  ;;  %v7689_v5 = vld [vmem:[#allocation74_spill] sm:$0xff] }
 0x4c2   : > { %v2454_v40 = vpop.permute.xlu0 %2453  ;;  %5321 = vpow2.f32 %v2627_v21  ;;  %v2541_v22 = vsub.f32 %v7685_v55, %v2450_v31  ;;  %v5000_v51 = vpack.c.bf16 %v5312_v10, %v5310_v17  ;;  %4774 = vmatprep.mubr.f32.mxu1 %v676_v18  ;;  %v7690_v21 = vld [vmem:[#allocation72_spill] sm:$0xff] }
 0x4c3   : > { %v2542_v4 = vsub.f32 %v7686_v47, %v2454_v40  ;;  %5323 = vpow2.f32 %v2629_v53  ;;  %2721 = vadd.xlane.f32.xlu1 %v6847_v12 }
 0x4c4   : > { %v5314_v20 = vpop.eup %5313  ;;  %v2659_v7 = vmul.f32 1.442695, %v2541_v22  ;;  %5001 = vmatprep.subr.bf16.mxu1 %v5000_v51 }
 0x4c5   : > { %v2661_v61 = vmul.f32 1.442695, %v2542_v4  ;;  %v5316_v8 = vpop.eup %5315  ;;  %v2391_v14 = vpop.permute.xlu1 %2390  ;;  %2751 = vadd.xlane.f32.xlu0 %v5308_v1 }
 0x4c6   : > { %v2395_v44 = vpop.permute.xlu0 %2394  ;;  %5325 = vpow2.f32 %v2659_v7  ;;  %5003 = vmatpush3.bf16.xpose.msra.mxu1 %v5000_v51  ;;  %v2527_v43 = vsub.f32 %v7687_v9, %v2391_v14  ;;  %v4972_v13 = vpack.c.bf16 %v5316_v8, %v5314_v20  ;;  %v7692_v7 = vld [vmem:[#allocation75_spill] sm:$0xff] }
 0x4c7   : > { %v2528_v15 = vsub.f32 %v7688_v60, %v2395_v44  ;;  %5327 = vpow2.f32 %v2661_v61  ;;  %2781 = vadd.xlane.f32.xlu1 %v5310_v17 }
 0x4c8   : > { %v5318_v56 = vpop.eup %5317  ;;  %v2631_v35 = vmul.f32 1.442695, %v2527_v43  ;;  %4973 = vmatprep.subr.bf16.mxu0 %v4972_v13 }
 0x4c9   : > { %v2633_v12 = vmul.f32 1.442695, %v2528_v15  ;;  %v5320_v37 = vpop.eup %5319  ;;  %4975 = vmatpush3.bf16.xpose.msra.mxu0 %v4972_v13  ;;  %v2458_v19 = vpop.permute.xlu1 %2457  ;;  %2723 = vadd.xlane.f32.xlu0 %v6849_v6  ;;  %v7691_v6 = vld [vmem:[#allocation77_spill] sm:$0xff]  ;;  %v7693_v15 = vld [vmem:[#allocation78_spill] sm:$0xff] }
 0x4ca   : > { %v2462_v1 = vpop.permute.xlu0 %2461  ;;  %5329 = vpow2.f32 %v2631_v35  ;;  %v2543_v18 = vsub.f32 %v7689_v5, %v2458_v19  ;;  %v5004_v31 = vpack.c.bf16 %v5320_v37, %v5318_v56  ;;  %v7694_v35 = vld [vmem:[#allocation76_spill] sm:$0xff] }
 0x4cb   : > { %v2544_v53 = vsub.f32 %v7690_v21, %v2462_v1  ;;  %5331 = vpow2.f32 %v2633_v12  ;;  %2753 = vadd.xlane.f32.xlu1 %v5314_v20 }
 0x4cc   : > { %v5322_v40 = vpop.eup %5321  ;;  %v2663_v17 = vmul.f32 1.442695, %v2543_v18  ;;  %5005 = vmatprep.subr.bf16.mxu1 %v5004_v31 }
 0x4cd   : > { %v2665_v55 = vmul.f32 1.442695, %v2544_v53  ;;  %v5324_v22 = vpop.eup %5323  ;;  %v2399_v47 = vpop.permute.xlu1 %2398  ;;  %2783 = vadd.xlane.f32.xlu0 %v5312_v10  ;;  %v7695_v53 = vld [vmem:[#allocation81_spill] sm:$0xff] }
 0x4ce   : > { %v2403_v4 = vpop.permute.xlu0 %2402  ;;  %5333 = vpow2.f32 %v2663_v17  ;;  %5007 = vmatpush3.bf16.xpose.msra.mxu1 %v5004_v31  ;;  %v2529_v51 = vsub.f32 %v7691_v6, %v2399_v47  ;;  %v4976_v14 = vpack.c.bf16 %v5324_v22, %v5322_v40  ;;  %v7696_v17 = vld [vmem:[#allocation79_spill] sm:$0xff] }
 0x4cf   : > { %v2530_v61 = vsub.f32 %v7692_v7, %v2403_v4  ;;  %5335 = vpow2.f32 %v2665_v55  ;;  %2725 = vadd.xlane.f32.xlu1 %v6861_v32 }
 0x4d0   : > { %v5326_v44 = vpop.eup %5325  ;;  %v2635_v20 = vmul.f32 1.442695, %v2529_v51  ;;  %4977 = vmatprep.subr.bf16.mxu0 %v4976_v14 }
 0x4d1   : > { %v2637_v9 = vmul.f32 1.442695, %v2530_v61  ;;  %v6944_v43 = vpop.eup %5327  ;;  %4979 = vmatpush3.bf16.xpose.msra.mxu0 %v4976_v14  ;;  %v2466_v60 = vpop.permute.xlu1 %2465  ;;  %2755 = vadd.xlane.f32.xlu0 %v5316_v8  ;;  %v7697_v61 = vld [vmem:[#allocation82_spill] sm:$0xff] }
 0x4d2   : > { %v2470_v10 = vpop.permute.xlu0 %2469  ;;  %5337 = vpow2.f32 %v2635_v20  ;;  %v2545_v13 = vsub.f32 %v7693_v15, %v2466_v60  ;;  %v5008_v19 = vpack.c.bf16 %v6944_v43, %v5326_v44  ;;  %v7698_v20 = vld [vmem:[#allocation80_spill] sm:$0xff] }
 0x4d3   : > { %v2546_v12 = vsub.f32 %v7694_v35, %v2470_v10  ;;  %5339 = vpow2.f32 %v2637_v9  ;;  %2785 = vadd.xlane.f32.xlu1 %v5318_v56 }
 0x4d4   : > { %v5330_v32 = vpop.eup %5329  ;;  %v2667_v1 = vmul.f32 1.442695, %v2545_v13  ;;  %5009 = vmatprep.subr.bf16.mxu1 %v5008_v19 }
 0x4d5   : > { %v2669_v5 = vmul.f32 1.442695, %v2546_v12  ;;  %v6949_v18 = vpop.eup %5331  ;;  %v2407_v21 = vpop.permute.xlu1 %2406  ;;  %2727 = vadd.xlane.f32.xlu0 %v6863_v34 }
 0x4d6   : > { %v2411_v8 = vpop.permute.xlu0 %2410  ;;  %5341 = vpow2.f32 %v2667_v1  ;;  %5011 = vmatpush3.bf16.xpose.msra.mxu1 %v5008_v19  ;;  %v2531_v31 = vsub.f32 %v7695_v53, %v2407_v21  ;;  %v4980_v47 = vpack.c.bf16 %v6949_v18, %v5330_v32  ;;  %v7700_v1 = vld [vmem:[#allocation83_spill] sm:$0xff] }
 0x4d7   : > { %v2532_v55 = vsub.f32 %v7696_v17, %v2411_v8  ;;  %5343 = vpow2.f32 %v2669_v5  ;;  %2757 = vadd.xlane.f32.xlu1 %v5322_v40 }
 0x4d8   : > { %v5334_v56 = vpop.eup %5333  ;;  %v2639_v4 = vmul.f32 1.442695, %v2531_v31  ;;  %4981 = vmatprep.subr.bf16.mxu0 %v4980_v47 }
 0x4d9   : > { %v2641_v6 = vmul.f32 1.442695, %v2532_v55  ;;  %v6955_v51 = vpop.eup %5335  ;;  %4983 = vmatpush3.bf16.xpose.msra.mxu0 %v4980_v47  ;;  %v2474_v7 = vpop.permute.xlu1 %2473  ;;  %2787 = vadd.xlane.f32.xlu0 %v5320_v37  ;;  %v7699_v37 = vld [vmem:[#allocation85_spill] sm:$0xff]  ;;  %v7701_v55 = vld [vmem:[#allocation84_spill] sm:$0xff] }
 0x4da   : > { %v2478_v34 = vpop.permute.xlu0 %2477  ;;  %5345 = vpow2.f32 %v2639_v4  ;;  %v2547_v14 = vsub.f32 %v7697_v61, %v2474_v7  ;;  %v5012_v60 = vpack.c.bf16 %v6955_v51, %v5334_v56  ;;  %v7702_v4 = vld [vmem:[#allocation86_spill] sm:$0xff] }
 0x4db   : > { %v2548_v9 = vsub.f32 %v7698_v20, %v2478_v34  ;;  %5347 = vpow2.f32 %v2641_v6  ;;  %2729 = vadd.xlane.f32.xlu1 %v6875_v27 }
 0x4dc   : > { %v5338_v40 = vpop.eup %5337  ;;  %v2671_v10 = vmul.f32 1.442695, %v2547_v14  ;;  %5013 = vmatprep.subr.bf16.mxu1 %v5012_v60 }
 0x4dd   : > { %v2673_v15 = vmul.f32 1.442695, %v2548_v9  ;;  %v5340_v13 = vpop.eup %5339  ;;  %v2415_v35 = vpop.permute.xlu1 %2414  ;;  %2759 = vadd.xlane.f32.xlu0 %v5324_v22 }
 0x4de   : > { %v2419_v12 = vpop.permute.xlu0 %2418  ;;  %5349 = vpow2.f32 %v2671_v10  ;;  %5015 = vmatpush3.bf16.xpose.msra.mxu1 %v5012_v60  ;;  %v2533_v19 = vsub.f32 %v7699_v37, %v2415_v35  ;;  %v4984_v21 = vpack.c.bf16 %v5340_v13, %v5338_v40  ;;  %v677_v35 = vld [vmem:[%s5881_s13 + $0xe8] sm:$0xff] }
 0x4df   : > { %v2534_v5 = vsub.f32 %v7700_v1, %v2419_v12  ;;  %5351 = vpow2.f32 %v2673_v15  ;;  %2789 = vadd.xlane.f32.xlu1 %v5326_v44  ;;  %v678_v12 = vld [vmem:[%s5881_s13 + $0xf0] sm:$0xff] }
 0x4e0   : > { %v5342_v8 = vpop.eup %5341  ;;  %v2643_v53 = vmul.f32 1.442695, %v2533_v19  ;;  %4985 = vmatprep.subr.bf16.mxu0 %v4984_v21 }
 0x4e1   : > { %v2645_v27 = vmul.f32 1.442695, %v2534_v5  ;;  %v5344_v31 = vpop.eup %5343  ;;  %4987 = vmatpush3.bf16.xpose.msra.mxu0 %v4984_v21  ;;  %v2482_v17 = vpop.permute.xlu1 %2481  ;;  %2731 = vadd.xlane.f32.xlu0 %v6877_v39 }
 0x4e2   : > { %v2486_v22 = vpop.permute.xlu0 %2485  ;;  %5353 = vpow2.f32 %v2643_v53  ;;  %v2549_v47 = vsub.f32 %v7701_v55, %v2482_v17  ;;  %v5016_v7 = vpack.c.bf16 %v5344_v31, %v5342_v8 }
 0x4e3   : > { %v2550_v6 = vsub.f32 %v7702_v4, %v2486_v22  ;;  %5355 = vpow2.f32 %v2645_v27  ;;  %2761 = vadd.xlane.f32.xlu1 %v5330_v32 }
 0x4e4   : > { %v5346_v34 = vpop.eup %5345  ;;  %v2675_v44 = vmul.f32 1.442695, %v2549_v47  ;;  %5017 = vmatprep.subr.bf16.mxu1 %v5016_v7 }
 0x4e5   : > { %v2677_v61 = vmul.f32 1.442695, %v2550_v6  ;;  %v5348_v14 = vpop.eup %5347  ;;  %2791 = vadd.xlane.f32.xlu0 %v6944_v43 }
 0x4e6   : > { %5357 = vpow2.f32 %v2675_v44  ;;  %5019 = vmatpush3.bf16.xpose.msra.mxu1 %v5016_v7  ;;  %v4988_v20 = vpack.c.bf16 %v5348_v14, %v5346_v34 }
 0x4e7   : > { %5359 = vpow2.f32 %v2677_v61  ;;  %2733 = vadd.xlane.f32.xlu1 %v6887_v58 }
 0x4e8   : > { %v5350_v39 = vpop.eup %5349  ;;  %4989 = vmatprep.subr.bf16.mxu0 %v4988_v20 }
 0x4e9   : > { %v5352_v9 = vpop.eup %5351  ;;  %4991 = vmatpush3.bf16.xpose.msra.mxu0 %v4988_v20  ;;  %2763 = vadd.xlane.f32.xlu0 %v6949_v18 }
 0x4ea   : > { %v5020_v32 = vpack.c.bf16 %v5352_v9, %v5350_v39 }
 0x4eb   : > { %2793 = vadd.xlane.f32.xlu1 %v5334_v56  ;;  %v673_v56 = vld [vmem:[%s5881_s13 + $0xc8] sm:$0xff] }
 0x4ec   : > { %v5354_v60 = vpop.eup %5353  ;;  %5021 = vmatprep.subr.bf16.mxu1 %v5020_v32 }
 0x4ed   : > { %v5356_v10 = vpop.eup %5355  ;;  %2735 = vadd.xlane.f32.xlu0 %v6889_v59  ;;  %v674_v59 = vld [vmem:[%s5881_s13 + $0xd0] sm:$0xff] }
 0x4ee   : > { %5023 = vmatpush3.bf16.xpose.msra.mxu1 %v5020_v32  ;;  %v4992_v43 = vpack.c.bf16 %v5356_v10, %v5354_v60 }
 0x4ef   : > { %2765 = vadd.xlane.f32.xlu1 %v5338_v40  ;;  %v675_v40 = vld [vmem:[%s5881_s13 + $0xd8] sm:$0xff] }
 0x4f0   : > { %v5358_v15 = vpop.eup %5357  ;;  %4993 = vmatprep.subr.bf16.mxu0 %v4992_v43 }
 0x4f1   : > { %v5360_v58 = vpop.eup %5359  ;;  %4995 = vmatpush3.bf16.xpose.msra.mxu0 %v4992_v43  ;;  %2795 = vadd.xlane.f32.xlu0 %v6955_v51 }
 0x4f2   : > { %v5024_v18 = vpack.c.bf16 %v5360_v58, %v5358_v15 }
 0x4f3   : > { %2737 = vadd.xlane.f32.xlu1 %v6897_v52  ;;  %v679_v52 = vld [vmem:[%s5881_s13 + $0xf8] sm:$0xff] }
 0x4f4   : > { %5025 = vmatprep.subr.bf16.mxu1 %v5024_v18 }
 0x4f5   : > { %2767 = vadd.xlane.f32.xlu0 %v5340_v13 }
 0x4f6   : > { %5027 = vmatpush3.bf16.xpose.msra.mxu1 %v5024_v18 }
 0x4f7   : > { %2797 = vadd.xlane.f32.xlu1 %v5342_v8 }
 0x4f8   : > { %4737 = vmatmul.mubr.f32.vlgmr.msra.gmra.mrb[36].mxu0 %v673_v56 }
 0x4f9   : > { %2739 = vadd.xlane.f32.xlu0 %v6899_v46  ;;  %4739 = vmatprep.mubr.f32.mxu0 %v674_v59 }
 0x4fb   : > { %2769 = vadd.xlane.f32.xlu1 %v5346_v34 }
 0x4fc   : > { %4740 = vmatmul.mubr.f32.gmra.mrb[38].mxu0 %v675_v40 }
 0x4fd   : > { %4775 = vmatmul.mubr.f32.vlgmr.msra.gmra.mrb[36].mxu1 %v677_v35  ;;  %2799 = vadd.xlane.f32.xlu0 %v5344_v31 }
 0x4fe   : > { %4777 = vmatprep.mubr.f32.mxu1 %v678_v12 }
 0x4ff   : > { %2741 = vadd.xlane.f32.xlu1 %v6907_v11 }
 0x501   : > { %4778 = vmatmul.mubr.f32.gmra.mrb[38].mxu1 %v679_v52  ;;  %2771 = vadd.xlane.f32.xlu0 %v5348_v14 }
 0x503   : > { %2801 = vadd.xlane.f32.xlu1 %v5350_v39 }
 0x505   : > { %2743 = vadd.xlane.f32.xlu0 %v6909_v24 }
 0x507   : > { %2773 = vadd.xlane.f32.xlu1 %v5354_v60 }
 0x509   : > { %2803 = vadd.xlane.f32.xlu0 %v5352_v9 }
 0x50b   : > { %2775 = vadd.xlane.f32.xlu1 %v5356_v10 }
 0x50d   : > { %2805 = vadd.xlane.f32.xlu0 %v5358_v15 }
 0x50f   : > { %2807 = vadd.xlane.f32.xlu1 %v5360_v58 }
 0x51b   : > { %v2684_v46 = vpop.xlane.xlu0 %2683 }
 0x51c   : > { %v2880_v37 = vrot.slane %v2684_v46, %v6508_v42 }
 0x51f   : > { %v2686_v51 = vpop.xlane.xlu0 %2685 }
 0x520   : > { %v2682_v13 = vpop.xlane.xlu1 %2681  ;;  %v2885_v1 = vrot.slane %v2686_v51, %v6520_v36 }
 0x521   : > { %v2876_v19 = vrot.slane %v2682_v13, %v6514_v45 }
 0x523   : > { %v2881_v11 = vsel %vm1871_vm2, %v2880_v37, %v2876_v19  ;;  %v2690_v5 = vpop.xlane.xlu0 %2689 }
 0x524   : > { %v2688_v21 = vpop.xlane.xlu1 %2687  ;;  %v2886_v24 = vsel %vm1878_vm3, %v2885_v1, %v2881_v11  ;;  %v2895_v53 = vrot.slane %v2690_v5, %v6535_v28 }
 0x525   : > { %v2890_v8 = vrot.slane %v2688_v21, %v6517_v50 }
 0x527   : > { %v2891_v27 = vsel %vm1885_vm4, %v2890_v8, %v2886_v24  ;;  %v2694_v31 = vpop.xlane.xlu0 %2693 }
 0x528   : > { %v2692_v17 = vpop.xlane.xlu1 %2691  ;;  %v2896_v22 = vsel %vm1892_vm5, %v2895_v53, %v2891_v27  ;;  %v2905_v47 = vrot.slane %v2694_v31, %v6552_v57 }
 0x529   : > { %v2900_v55 = vrot.slane %v2692_v17, %v6529_v29 }
 0x52b   : > { %v2901_v4 = vsel %vm1899_vm6, %v2900_v55, %v2896_v22  ;;  %v2698_v6 = vpop.xlane.xlu0 %2697 }
 0x52c   : > { %v2696_v7 = vpop.xlane.xlu1 %2695  ;;  %v2906_v34 = vsel %vm1906_vm7, %v2905_v47, %v2901_v4  ;;  %v2915_v61 = vrot.slane %v2698_v6, %v6564_v54 }
 0x52d   : > { %v2910_v44 = vrot.slane %v2696_v7, %v6538_v26 }
 0x52f   : > { %v2911_v14 = vsel %vm1913_vm8, %v2910_v44, %v2906_v34  ;;  %v2702_v20 = vpop.xlane.xlu0 %2701 }
 0x530   : > { %v2700_v39 = vpop.xlane.xlu1 %2699  ;;  %v2916_v9 = vsel %vm1920_vm9, %v2915_v61, %v2911_v14  ;;  %v2925_v60 = vrot.slane %v2702_v20, %v6570_v3 }
 0x531   : > { %v2920_v32 = vrot.slane %v2700_v39, %v6555_v23 }
 0x533   : > { %v2921_v10 = vsel %vm1927_vm10, %v2920_v32, %v2916_v9  ;;  %v2706_v43 = vpop.xlane.xlu0 %2705 }
 0x534   : > { %v2704_v15 = vpop.xlane.xlu1 %2703  ;;  %v2926_v58 = vsel %vm1934_vm11, %v2925_v60, %v2921_v10  ;;  %v2935_v56 = vrot.slane %v2706_v43, %v6583_v2 }
 0x535   : > { %v2930_v18 = vrot.slane %v2704_v15, %v7623_v38 }
 0x537   : > { %v2931_v59 = vsel %vm7703_vm13, %v2930_v18, %v2926_v58 }
 0x538   : > { %v2708_v40 = vpop.xlane.xlu1 %2707  ;;  %v2936_v35 = vsel %vm7704_vm12, %v2935_v56, %v2931_v59 }
 0x539   : > { %v2940_v12 = vrot.slane %v2708_v40, %v7628_v30 }
 0x53a   : > { %v2710_v52 = vpop.xlane.xlu0 %2709 }
 0x53b   : > { %v2941_v46 = vsel %vm1955_vm14, %v2940_v12, %v2936_v35  ;;  %v2945_v51 = vrot.slane %v2710_v52, %v6624_v41 }
 0x53c   : > { %v2712_v13 = vpop.xlane.xlu1 %2711 }
 0x53d   : > { %v2946_v37 = vsel %vm1962_vm15, %v2945_v51, %v2941_v46  ;;  %v2950_v19 = vrot.slane %v2712_v13, %v6586_v49 }
 0x53e   : > { %v2714_v1 = vpop.xlane.xlu0 %2713 }
 0x53f   : > { %v7012_v11 = vsel %vm1969_vm0, %v2950_v19, %v2946_v37  ;;  %v2955_v21 = vrot.slane %v2714_v1, %v6514_v45 }
 0x540   : > { %7705 = vst [vmem:[#allocation97_spill] sm:$0xff] %v7012_v11  ;;  %v2716_v5 = vpop.xlane.xlu1 %2715 }
 0x541   : > { %v2959_v24 = vrot.slane %v2716_v5, %v6508_v42 }
 0x542   : > { %v2718_v8 = vpop.xlane.xlu0 %2717 }
 0x543   : > { %v2960_v53 = vsel %vm1871_vm2, %v2959_v24, %v2955_v21  ;;  %v2964_v27 = vrot.slane %v2718_v8, %v6520_v36 }
 0x544   : > { %v2746_v31 = vpop.xlane.xlu1 %2745 }
 0x545   : > { %v2965_v17 = vsel %vm1878_vm3, %v2964_v27, %v2960_v53  ;;  %v3034_v55 = vrot.slane %v2746_v31, %v6514_v45  ;;  %v3561_v27 = vld [vmem:[#allocation5 + $0x8] sm:$0xff]  ;;  %v3560_v31 = vld [vmem:[#allocation5] sm:$0xff] }
 0x546   : > { %v2748_v22 = vpop.xlane.xlu0 %2747 }
 0x547   : > { %v3038_v47 = vrot.slane %v2748_v22, %v6508_v42  ;;  %v3562_v22 = vld [vmem:[#allocation5 + $0x10] sm:$0xff] }
 0x548   : > { %v2720_v4 = vpop.xlane.xlu1 %2719  ;;  %v7072_v16 = vmul.f32 %v6783_v33, %v3562_v22 }
 0x549   : > { %v3039_v6 = vsel %vm1871_vm2, %v3038_v47, %v3034_v55  ;;  %v2969_v7 = vrot.slane %v2720_v4, %v6517_v50  ;;  %v3565_v47 = vld [vmem:[#allocation5 + $0x28] sm:$0xff]  ;;  %v3597_v4 = vmul.f32 %v6783_v33, %v3561_v27 }
 0x54a   : > { %v2750_v34 = vpop.xlane.xlu0 %2749 }
 0x54b   : > { %v2970_v44 = vsel %vm1885_vm4, %v2969_v7, %v2965_v17  ;;  %v3043_v61 = vrot.slane %v2750_v34, %v6520_v36  ;;  %v3563_v17 = vld [vmem:[#allocation5 + $0x18] sm:$0xff] }
 0x54c   : > { %v2778_v14 = vpop.xlane.xlu1 %2777  ;;  %v3599_v48 = vmul.f32 %v6783_v33, %v3563_v17 }
 0x54d   : > { %v3044_v20 = vsel %vm1878_vm3, %v3043_v61, %v3039_v6  ;;  %v3596_v6 = vmul.f32 %v6783_v33, %v3560_v31 }
 0x54e   : > { %v2780_v39 = vpop.xlane.xlu0 %2779 }
 0x54f   : > { %v3117_v7 = vrot.slane %v2780_v39, %v6508_v42  ;;  %v3601_v42 = vmul.f32 %v6787_v63, %v3565_v47  ;;  %v3113_v39 = vrot.slane %v2778_v14, %v6514_v45 }
 0x550   : > { %v2722_v9 = vpop.xlane.xlu1 %2721 }
 0x551   : > { %v2974_v34 = vrot.slane %v2722_v9, %v6535_v28  ;;  %v3118_v45 = vsel %vm1871_vm2, %v3117_v7, %v3113_v39  ;;  %vm7707_vm2 = vmmov %vm7703_vm13 }
 0x552   : > { %v2752_v32 = vpop.xlane.xlu0 %2751 }
 0x553   : > { %v3048_v11 = vrot.slane %v2752_v32, %v6517_v50  ;;  %v3600_v32 = vmul.f32 %v6787_v63, %v3564_v25  ;;  %v2975_v14 = vsel %vm1892_vm5, %v2974_v34, %v2970_v44 }
 0x554   : > { %v2782_v60 = vpop.xlane.xlu1 %2781 }
 0x555   : > { %v3122_v27 = vrot.slane %v2782_v60, %v6520_v36  ;;  %v7088_v36 = vmul.f32 %v6787_v63, %v3567_v0  ;;  %v7091_v60 = vmul.f32 %v6787_v63, %v3566_v62  ;;  %v3049_v25 = vsel %vm1885_vm4, %v3048_v11, %v3044_v20 }
 0x556   : > { %v2724_v10 = vpop.xlane.xlu0 %2723 }
 0x557   : > { %v2979_v31 = vrot.slane %v2724_v10, %v6529_v29  ;;  %v3123_v0 = vsel %vm1878_vm3, %v3122_v27, %v3118_v45  ;;  %vm7708_vm3 = vmmov %vm7704_vm12 }
 0x558   : > { %v2754_v43 = vpop.xlane.xlu1 %2753 }
 0x559   : > { %v3053_v9 = vrot.slane %v2754_v43, %v6535_v28 }
 0x55a   : > { %v2784_v15 = vpop.xlane.xlu0 %2783 }
 0x55b   : > { %v3127_v17 = vrot.slane %v2784_v15, %v6517_v50  ;;  %v2980_v15 = vsel %vm1899_vm6, %v2979_v31, %v2975_v14  ;;  %v3054_v63 = vsel %vm1892_vm5, %v3053_v9, %v3049_v25 }
 0x55c   : > { %v2726_v58 = vpop.xlane.xlu1 %2725 }
 0x55d   : > { %v2984_v33 = vrot.slane %v2726_v58, %v6552_v57  ;;  %v3128_v44 = vsel %vm1885_vm4, %v3127_v17, %v3123_v0  ;;  %vm7711_vm4 = vmmov %vm7707_vm2 }
 0x55e   : > { %v7026_v18 = vpop.xlane.xlu0 %2755 }
 0x560   : > { %v7028_v56 = vpop.xlane.xlu1 %2785 }
 0x561   : > { %v3132_v50 = vrot.slane %v7028_v56, %v6535_v28  ;;  %v2985_v28 = vsel %vm1906_vm7, %v2984_v33, %v2980_v15 }
 0x562   : > { %v7030_v59 = vpop.xlane.xlu0 %2727 }
 0x563   : > { %v2989_v10 = vrot.slane %v7030_v59, %v6538_v26  ;;  %v3133_v47 = vsel %vm1892_vm5, %v3132_v50, %v3128_v44  ;;  %vm7712_vm5 = vmmov %vm7708_vm3 }
 0x564   : > { %v7032_v40 = vpop.xlane.xlu1 %2757 }
 0x565   : > { %v3063_v62 = vrot.slane %v7032_v40, %v6552_v57  ;;  %v2990_v7 = vsel %vm1913_vm8, %v2989_v10, %v2985_v28 }
 0x566   : > { %v7034_v35 = vpop.xlane.xlu0 %2787 }
 0x567   : > { %v3137_v20 = vrot.slane %v7034_v35, %v6529_v29 }
 0x568   : > { %v7036_v12 = vpop.xlane.xlu1 %2729 }
 0x569   : > { %v2994_v58 = vrot.slane %v7036_v12, %v6564_v54 }
 0x56a   : > { %v7038_v52 = vpop.xlane.xlu0 %2759 }
 0x56b   : > { %v3068_v56 = vrot.slane %v7038_v52, %v6538_v26 }
 0x56c   : > { %v7040_v46 = vpop.xlane.xlu1 %2789 }
 0x56e   : > { %v7042_v51 = vpop.xlane.xlu0 %2731 }
 0x56f   : > { %v2999_v59 = vrot.slane %v7042_v51, %v6555_v23  ;;  %v2995_v51 = vsel %vm1920_vm9, %v2994_v58, %v2990_v7 }
 0x570   : > { %v7044_v13 = vpop.xlane.xlu1 %2761 }
 0x571   : > { %v3073_v39 = vrot.slane %v7044_v13, %v6564_v54 }
 0x572   : > { %v7046_v37 = vpop.xlane.xlu0 %2791 }
 0x574   : > { %v7048_v19 = vpop.xlane.xlu1 %2733 }
 0x575   : > { %v3004_v12 = vrot.slane %v7048_v19, %v6570_v3  ;;  %v3147_v19 = vrot.slane %v7046_v37, %v6538_v26 }
 0x576   : > { %v7050_v1 = vpop.xlane.xlu0 %2763 }
 0x578   : > { %v7052_v5 = vpop.xlane.xlu1 %2793 }
 0x579   : > { %v3152_v44 = vrot.slane %v7052_v5, %v6564_v54 }
 0x57a   : > { %v7054_v21 = vpop.xlane.xlu0 %2735 }
 0x57b   : > { %v3009_v35 = vrot.slane %v7054_v21, %v7623_v38  ;;  %v3000_v21 = vsel %vm1927_vm10, %v2999_v59, %v2995_v51 }
 0x57c   : > { %v7056_v24 = vpop.xlane.xlu1 %2765  ;;  %v3005_v26 = vsel %vm1934_vm11, %v3004_v12, %v3000_v21 }
 0x57d   : > { %v3010_v10 = vsel %vm7707_vm2, %v3009_v35, %v3005_v26  ;;  %v7716_v26 = vld [vmem:[#allocation90_spill] sm:$0xff] }
 0x57e   : > { %v7058_v8 = vpop.xlane.xlu0 %2795 }
 0x580   : > { %v7060_v53 = vpop.xlane.xlu1 %2737 }
 0x582   : > { %v7062_v55 = vpop.xlane.xlu0 %2767 }
 0x584   : > { %v7068_v61 = vpop.xlane.xlu1 %2797 }
 0x585   : > { %7706 = vst [vmem:[#allocation91_spill] sm:$0xff] %v7068_v61  ;;  %v3058_v61 = vrot.slane %v7026_v18, %v6529_v29  ;;  %v3142_v29 = vrot.slane %v7040_v46, %v6552_v57  ;;  %v3138_v57 = vsel %vm1899_vm6, %v3137_v20, %v3133_v47 }
 0x586   : > { %v7082_v22 = vpop.xlane.xlu0 %2739 }
 0x587   : > { %v3059_v11 = vsel %vm1899_vm6, %v3058_v61, %v3054_v63  ;;  %v3143_v50 = vsel %vm1906_vm7, %v3142_v29, %v3138_v57  ;;  %v3078_v63 = vrot.slane %v7050_v1, %v6555_v23  ;;  %v3157_v1 = vrot.slane %v7058_v8, %v6555_v23  ;;  %vm7713_vm6 = vmmov %vm7707_vm2 }
 0x588   : > { %v7099_v43 = vpop.xlane.xlu1 %2769  ;;  %v3064_v31 = vsel %vm1906_vm7, %v3063_v62, %v3059_v11  ;;  %v3148_v62 = vsel %vm1913_vm8, %v3147_v19, %v3143_v50  ;;  %v3088_v11 = vrot.slane %v7062_v55, %v7623_v38  ;;  %vm7714_vm7 = vmmov %vm7708_vm3  ;;  %v7718_v50 = vld [vmem:[#allocation87_spill] sm:$0xff] }
 0x589   : > { %v3069_v46 = vsel %vm1913_vm8, %v3068_v56, %v3064_v31  ;;  %v3093_v59 = vrot.slane %v7099_v43, %v6583_v2  ;;  %v3153_v43 = vsel %vm1920_vm9, %v3152_v44, %v3148_v62  ;;  %vm7715_vm8 = vcmask 1042434  }
 0x58a   : > { %v7111_v18 = vpop.xlane.xlu0 %2799 }
 0x58b   : > { %v4662_v40 = vpop.f32.mrb[32].mxu0  ;;  %v3167_v8 = vrot.slane %v7111_v18, %v7623_v38 }
 0x58c   : > { %v3613_v34 = vadd.f32 %v4662_v40, %v3597_v4  ;;  %v3261_v27 = vpop.f32.mrb[33].mxu0  ;;  %v2742_v61 = vpop.xlane.xlu1 %2741  ;;  %v3014_v4 = vrot.slane %v7060_v53, %v6583_v2 }
 0x58d   : > { %v3612_v52 = vadd.f32 %v3596_v6, %v3261_v27  ;;  %v3019_v6 = vrot.slane %v7082_v22, %v7628_v30  ;;  %v3024_v37 = vrot.slane %v2742_v61, %v6624_v41  ;;  %v3074_v22 = vsel %vm1920_vm9, %v3073_v39, %v3069_v46 }
 0x58e   : > { %3629 = vst [vmem:[#allocation5 + $0x8] sm:$0xff] %v3613_v34  ;;  %v7136_v9 = vpop.xlane.xlu0 %2771  ;;  %v3079_v23 = vsel %vm1927_vm10, %v3078_v63, %v3074_v22  ;;  %v3158_v61 = vsel %vm1927_vm10, %v3157_v1, %v3153_v43  ;;  %vm7717_vm9 = vcmask 1043459   ;;  %v3573_v63 = vld [vmem:[#allocation5 + $0x68] sm:$0xff]  ;;  %v5579_v43 = vmov (!%p4214_p10), 0  }
 0x58f   : > { %3628 = vst [vmem:[#allocation5] sm:$0xff] %v3612_v52  ;;  %v4665_v13 = vpop.f32.mrb[34].mxu0  ;;  %v4700_v17 = vpop.f32.mrb[32].mxu1  ;;  %v3098_v55 = vrot.slane %v7136_v9, %v7628_v30  ;;  %5362 = vset.pattern.permute.xlu1 (!%p4214_p10), %v5579_v43  ;;  %5361 = vset.pattern.permute.xlu0 (!%p4214_p10), %v5579_v43 }
 0x590   : > { %v3615_v53 = vadd.f32 %v4665_v13, %v3599_v48  ;;  %v3617_v33 = vadd.f32 %v4700_v17, %v3601_v42  ;;  %v3271_v45 = vpop.f32.mrb[35].mxu0  ;;  %v3346_v14 = vpop.f32.mrb[33].mxu1  ;;  %v3015_v48 = vsel %vm7708_vm3, %v3014_v4, %v3010_v10 }
 0x591   : > { %v3614_v25 = vadd.f32 %v7072_v16, %v3271_v45  ;;  %v3616_v0 = vadd.f32 %v3600_v32, %v3346_v14  ;;  %v2802_v15 = vpop.xlane.xlu1 %2801  ;;  %v3083_v16 = vrot.slane %v7056_v24, %v6570_v3  ;;  %v3020_v32 = vsel %vm1955_vm14, %v3019_v6, %v3015_v48  ;;  %v7709_v24 = vld [vmem:[#allocation91_spill] sm:$0xff]  ;;  %v2679_v6 = vld [vmem:[#allocation4] sm:$0xf] }
 0x592   : > { %3631 = vst [vmem:[#allocation5 + $0x18] sm:$0xff] %v3615_v53  ;;  %3633 = vst [vmem:[#allocation5 + $0x28] sm:$0xff] %v3617_v33  ;;  %v2744_v42 = vpop.xlane.xlu0 %2743  ;;  %v3025_v20 = vsel %vm1962_vm15, %v3024_v37, %v3020_v32  ;;  %v3162_v56 = vrot.slane %v7709_v24, %v6570_v3  ;;  %v2680_v37 = vmul.f32 %v7716_v26, %v2679_v6  ;;  %v3568_v14 = vld [vmem:[#allocation5 + $0x40] sm:$0xff] }
 0x593   : > { %3630 = vst [vmem:[#allocation5 + $0x10] sm:$0xff] %v3614_v25  ;;  %3632 = vst [vmem:[#allocation5 + $0x20] sm:$0xff] %v3616_v0  ;;  %v4703_v28 = vpop.f32.mrb[34].mxu1  ;;  %v3029_v58 = vrot.slane %v2744_v42, %v6586_v49  ;;  %v3084_v34 = vsel %vm1934_vm11, %v3083_v16, %v3079_v23  ;;  %v3604_v0 = vmul.f32 %v7718_v50, %v3568_v14  ;;  %v3572_v42 = vld [vmem:[#allocation5 + $0x60] sm:$0xff] }
 0x594   : > { %v3619_v54 = vadd.f32 %v4703_v28, %v7088_v36  ;;  %v3356_v5 = vpop.f32.mrb[35].mxu1  ;;  %v7710_v36 = vld [vmem:[#allocation97_spill] sm:$0xff]  ;;  %v3089_v38 = vsel %vm7711_vm4, %v3088_v11, %v3084_v34  ;;  %v3163_v31 = vsel %vm1934_vm11, %v3162_v56, %v3158_v61  ;;  %v7719_v32 = vld [vmem:[#allocation95_spill] sm:$0xff]  ;;  %v3728_v34 = vld [vmem:[%s7720_s12] sm:$0xff] (!%p4214_p10) }
 0x595   : > { %v3030_v40 = vsel %vm1969_vm0, %v3029_v58, %v3025_v20  ;;  %v3618_v47 = vadd.f32 %v7091_v60, %v3356_v5  ;;  %v2774_v7 = vpop.xlane.xlu1 %2773  ;;  %v3172_v60 = vrot.slane %v2802_v15, %v6583_v2  ;;  %v3094_v29 = vsel %vm7712_vm5, %v3093_v59, %v3089_v38  ;;  %v3571_v15 = vld [vmem:[#allocation5 + $0x58] sm:$0xff]  ;;  %4812 = vmatprep.mubr.f32.mxu0 (!%p4214_p10), %v3728_v34  ;;  %v3746_v61 = vld [vmem:[%s7721_s27 + $0x10] sm:$0xff] (!%p4214_p10) }
 0x596   : > { %3635 = vst [vmem:[#allocation5 + $0x38] sm:$0xff] %v3619_v54  ;;  %v3189_v3 = vsel %vm2208_vm1, %v3030_v40, %v7710_v36  ;;  %v2804_v12 = vpop.xlane.xlu0 %2803  ;;  %v3103_v27 = vrot.slane %v2774_v7, %v6624_v41  ;;  %v3168_v52 = vsel %vm7713_vm6, %v3167_v8, %v3163_v31  ;;  %v3099_v51 = vsel %vm1955_vm14, %v3098_v55, %v3094_v29  ;;  %v3575_v5 = vld [vmem:[#allocation5 + $0x78] sm:$0xff]  ;;  %v3574_v40 = vld [vmem:[#allocation5 + $0x70] sm:$0xff] }
 0x597   : > { %3634 = vst [vmem:[#allocation5 + $0x30] sm:$0xff] %v3618_v47  ;;  %v3177_v18 = vrot.slane %v2804_v12, %v7628_v30  ;;  %v3173_v19 = vsel %vm7714_vm7, %v3172_v60, %v3168_v52  ;;  %v3607_v44 = vmul.f32 %v7718_v50, %v3571_v15  ;;  %v3609_v28 = vmul.f32 %v7719_v32, %v3573_v63  ;;  %v3736_v60 = vld [vmem:[%s7720_s12 + $0x40] sm:$0xff] (!%p4214_p10)  ;;  %v3747_v29 = vld [vmem:[%s7722_s14 + $0x18] sm:$0xff] (!%p4214_p10)  ;;  %v3651_v52 = vld [vmem:[#allocation5] sm:$0xff] (!%p4214_p10) }
 0x598   : > { %v3104_v4 = vsel %vm1962_vm15, %v3103_v27, %v3099_v51  ;;  %v3608_v54 = vmul.f32 %v7719_v32, %v3572_v42  ;;  %v3611_v7 = vmul.f32 %v7719_v32, %v3575_v5  ;;  %v3610_v8 = vmul.f32 %v7719_v32, %v3574_v40  ;;  %4824 = vmatprep.mubr.f32.mxu1 (!%p4214_p10), %v3736_v60  ;;  %v3744_v38 = vld [vmem:[%s7722_s14] sm:$0xff] (!%p4214_p10)  ;;  %v3751_v15 = vld [vmem:[%s7722_s14 + $0x38] sm:$0xff] (!%p4214_p10) }
 0x599   : > { %v2776_v35 = vpop.xlane.xlu1 %2775  ;;  %v3178_v30 = vsel %vm1955_vm14, %v3177_v18, %v3173_v19  ;;  %v7723_v18 = vld [vmem:[#allocation88_spill] sm:$0xff] (!%p4214_p10)  ;;  %3772 = vperm.xlu1 (!%p4214_p10), %5362, %v3746_v61   ;;  %3762 = vperm.xlu0 (!%p4214_p10), %5361, %v3744_v38   ;;  %v3752_v32 = vld [vmem:[%s7722_s14 + $0x40] sm:$0xff] (!%p4214_p10)  ;;  %v3755_v5 = vld [vmem:[%s7722_s14 + $0x58] sm:$0xff] (!%p4214_p10) }
 0x59a   : > { %v3108_v2 = vrot.slane %v2776_v35, %v6586_v49  ;;  %v2806_v39 = vpop.xlane.xlu0 %2805  ;;  %v3745_v35 = vld [vmem:[%s7722_s14 + $0x8] sm:$0xff] (!%p4214_p10)  ;;  %v3653_v19 = vld [vmem:[#allocation5 + $0x10] sm:$0xff] (!%p4214_p10) }
 0x59b   : > { %v3182_v9 = vrot.slane %v2806_v39, %v6624_v41  ;;  %v3569_v41 = vld [vmem:[#allocation5 + $0x48] sm:$0xff]  ;;  %v3759_v60 = vld [vmem:[%s7722_s14 + $0x78] sm:$0xff] (!%p4214_p10) }
 0x59c   : > { %v3109_v57 = vsel %vm1969_vm0, %v3108_v2, %v3104_v4  ;;  %v3605_v10 = vmul.f32 %v7718_v50, %v3569_v41  ;;  %v3652_v39 = vld [vmem:[#allocation5 + $0x8] sm:$0xff] (!%p4214_p10)  ;;  %v3654_v4 = vld [vmem:[#allocation5 + $0x18] sm:$0xff] (!%p4214_p10) }
 0x59d   : > { %v3190_v46 = vsel %vm7715_vm8, %v3109_v57, %v3189_v3  ;;  %v3183_v21 = vsel %vm1962_vm15, %v3182_v9, %v3178_v30  ;;  %v2808_v13 = vpop.xlane.xlu1 %2807  ;;  %v7724_v9 = vld [vmem:[#allocation96_spill] sm:$0xff] (!%p4214_p10)  ;;  %3777 = vperm.xlu1 (!%p4214_p10), %5362, %v3747_v29   ;;  %3767 = vperm.xlu0 (!%p4214_p10), %5361, %v3745_v35   ;;  %v3729_v29 = vld [vmem:[%s7720_s12 + $0x8] sm:$0xff] (!%p4214_p10) }
 0x59e   : > { %v3187_v17 = vrot.slane %v2808_v13, %v6586_v49  ;;  %v3570_v49 = vld [vmem:[#allocation5 + $0x50] sm:$0xff]  ;;  %v3737_v35 = vld [vmem:[%s7720_s12 + $0x48] sm:$0xff] (!%p4214_p10) }
 0x59f   : > { %v3606_v58 = vmul.f32 %v7718_v50, %v3570_v49 }
 0x5a0   : > { %v3188_v53 = vsel %vm1969_vm0, %v3187_v17, %v3183_v21  ;;  %v3748_v21 = vld [vmem:[%s7722_s14 + $0x20] sm:$0xff] (!%p4214_p10) }
 0x5a1   : > { %v3191_v33 = vsel %vm7717_vm9, %v3188_v53, %v3190_v46  ;;  %v3749_v46 = vld [vmem:[%s7722_s14 + $0x28] sm:$0xff] (!%p4214_p10)  ;;  %v3656_v53 = vld [vmem:[#allocation5 + $0x28] sm:$0xff] (!%p4214_p10)  ;;  %3782 = vperm.xlu0 (!%p4214_p10), %5361, %v3748_v21   ;;  %v3735_v21 = vld [vmem:[%s7720_s12 + $0x38] sm:$0xff] (!%p4214_p10) }
 0x5a2   : > { %v3193_v45 = vadd.f32 %v3191_v33, %v2680_v37  ;;  %v3655_v37 = vld [vmem:[#allocation5 + $0x20] sm:$0xff] (!%p4214_p10)  ;;  %3787 = vperm.xlu1 (!%p4214_p10), %5362, %v3749_v46   ;;  %v3742_v46 = vld [vmem:[%s7720_s12 + $0x70] sm:$0xff] (!%p4214_p10) }
 0x5a4   : > { %3194 = vst [vmem:[#allocation4] sm:$0xf] %v3193_v45 }
 0x5a6   : > { %3797 = vperm.xlu1 (!%p4214_p10), %5362, %v3751_v15  }
 0x5ab   : > { %v3649_v12 = vld [vmem:[#allocation4] sm:$0xf] (!%p4214_p10) }
 0x5ac   : > { %5363 = vrcp.f32 (!%p4214_p10), %v3649_v12 }
 0x5b6   : > { %v5364_v27 = vpop.eup (!%p4214_p10), %5363 }
 0x5b7   : > { %v3674_v31 = vrot.slane (!%p4214_p10), %v5364_v27, %v7723_v18  ;;  %v3758_v27 = vld [vmem:[%s7722_s14 + $0x70] sm:$0xff] (!%p4214_p10) }
 0x5b9   : > { %v3682_v51 = vrot.slane (!%p4214_p10), %v3674_v31, %v7723_v18  ;;  %v3675_v2 = vcombine.high (!%p4214_p10), %v3674_v31, %v3674_v31 }
 0x5bb   : > { %v3695_v30 = vrot.slane (!%p4214_p10), %v3682_v51, %v7724_v9  ;;  %v3689_v57 = vrot.slane (!%p4214_p10), %v3675_v2, %v7723_v18  ;;  %v3690_v45 = vcombine.high (!%p4214_p10), %v3682_v51, %v3682_v51  ;;  %v3738_v51 = vld [vmem:[%s7720_s12 + $0x50] sm:$0xff] (!%p4214_p10)  ;;  %v3731_v2 = vld [vmem:[%s7720_s12 + $0x18] sm:$0xff] (!%p4214_p10) }
 0x5bd   : > { %v3712_v6 = vmul.f32 (!%p4214_p10), %v3695_v30, %v3651_v52  ;;  %v3713_v13 = vmul.f32 (!%p4214_p10), %v3695_v30, %v3652_v39  ;;  %v3714_v17 = vmul.f32 (!%p4214_p10), %v3695_v30, %v3653_v19  ;;  %v3715_v26 = vmul.f32 (!%p4214_p10), %v3695_v30, %v3654_v4  ;;  %v3730_v52 = vld [vmem:[%s7720_s12 + $0x10] sm:$0xff] (!%p4214_p10)  ;;  %v3739_v39 = vld [vmem:[%s7720_s12 + $0x58] sm:$0xff] (!%p4214_p10)  ;;  %v3732_v19 = vld [vmem:[%s7720_s12 + $0x20] sm:$0xff] (!%p4214_p10) }
 0x5be   : > { %v3699_v33 = vrot.slane (!%p4214_p10), %v3689_v57, %v7724_v9  ;;  %v3740_v4 = vld [vmem:[%s7720_s12 + $0x60] sm:$0xff] (!%p4214_p10)  ;;  %v3741_v30 = vld [vmem:[%s7720_s12 + $0x68] sm:$0xff] (!%p4214_p10) }
 0x5bf   : > { %v5028_v41 = vpack.c.bf16 (!%p4214_p10), %v3713_v13, %v3712_v6  ;;  %v5032_v14 = vpack.c.bf16 (!%p4214_p10), %v3715_v26, %v3714_v17  ;;  %v3743_v6 = vld [vmem:[%s7720_s12 + $0x78] sm:$0xff] (!%p4214_p10) }
 0x5c0   : > { %v3716_v50 = vmul.f32 (!%p4214_p10), %v3699_v33, %v3655_v37 }
 0x5c1   : > { %5029 = vmatprep.subr.bf16.mxu0 (!%p4214_p10), %v5028_v41  ;;  %5076 = vmatprep.subr.bf16.mxu1 (!%p4214_p10), %v5028_v41 }
 0x5c2   : > { %5031 = vmatpush3.bf16.msra.mxu0 (!%p4214_p10), %v5028_v41  ;;  %5084 = vmatpush3.bf16.msra.mxu1 (!%p4214_p10), %v5028_v41 }
 0x5c3   : > { %5033 = vmatprep.subr.bf16.mxu0 (!%p4214_p10), %v5032_v14  ;;  %5077 = vmatprep.subr.bf16.mxu1 (!%p4214_p10), %v5032_v14 }
 0x5c6   : > { %5035 = vmatpush3.bf16.msra.mxu0 (!%p4214_p10), %v5032_v14  ;;  %5085 = vmatpush3.bf16.msra.mxu1 (!%p4214_p10), %v5032_v14 }
 0x5cb   : > { %v4738_v25 = vpop.f32.mrb[36].mxu0 }
 0x5cc   : > { %v3621_v22 = vadd.f32 %v4738_v25, %v3605_v10  ;;  %v3431_v62 = vpop.f32.mrb[37].mxu0  ;;  %v3717_v10 = vmul.f32 (!%p4214_p10), %v3699_v33, %v3656_v53  ;;  %v3657_v25 = vld [vmem:[#allocation5 + $0x30] sm:$0xff] (!%p4214_p10) }
 0x5cd   : > { %v3620_v48 = vadd.f32 %v3604_v0, %v3431_v62  ;;  %v3658_v0 = vld [vmem:[#allocation5 + $0x38] sm:$0xff] (!%p4214_p10)  ;;  %v3703_v62 = vrot.slane (!%p4214_p10), %v3690_v45, %v7724_v9  ;;  %v3718_v49 = vmul.f32 (!%p4214_p10), %v3699_v33, %v3657_v25 }
 0x5ce   : > { %3637 = vst [vmem:[#allocation5 + $0x48] sm:$0xff] %v3621_v22  ;;  %v3750_v22 = vld [vmem:[%s7722_s14 + $0x30] sm:$0xff] (!%p4214_p10)  ;;  %v5036_v63 = vpack.c.bf16 (!%p4214_p10), %v3717_v10, %v3716_v50 }
 0x5cf   : > { %3636 = vst [vmem:[#allocation5 + $0x40] sm:$0xff] %v3620_v48  ;;  %v4741_v16 = vpop.f32.mrb[38].mxu0  ;;  %v3719_v48 = vmul.f32 (!%p4214_p10), %v3699_v33, %v3658_v0  ;;  %3792 = vperm.xlu0 (!%p4214_p10), %5361, %v3750_v22  }
 0x5d0   : > { %v3623_v1 = vadd.f32 %v4741_v16, %v3607_v44  ;;  %v4776_v11 = vpop.f32.mrb[36].mxu1  ;;  %v3441_v20 = vpop.f32.mrb[39].mxu0  ;;  %v3753_v16 = vld [vmem:[%s7722_s14 + $0x48] sm:$0xff] (!%p4214_p10)  ;;  %5037 = vmatprep.subr.bf16.mxu0 (!%p4214_p10), %v5036_v63  ;;  %5078 = vmatprep.subr.bf16.mxu1 (!%p4214_p10), %v5036_v63 }
 0x5d1   : > { %v3625_v24 = vadd.f32 %v4776_v11, %v3609_v28  ;;  %v3622_v56 = vadd.f32 %v3606_v58, %v3441_v20  ;;  %v3516_v59 = vpop.f32.mrb[37].mxu1  ;;  %v3691_v28 = vcombine.high (!%p4214_p10), %v3689_v57, %v3689_v57  ;;  %v5040_v58 = vpack.c.bf16 (!%p4214_p10), %v3719_v48, %v3718_v49  ;;  %3807 = vperm.xlu1 (!%p4214_p10), %5362, %v3753_v16   ;;  %v3734_v57 = vld [vmem:[%s7720_s12 + $0x30] sm:$0xff] (!%p4214_p10) }
 0x5d2   : > { %3639 = vst [vmem:[#allocation5 + $0x58] sm:$0xff] %v3623_v1  ;;  %v3624_v47 = vadd.f32 %v3608_v54, %v3516_v59  ;;  %3648 = sbr.rel (%p4214_p10) target bundleno = 1744 (0x6d0), region = 60  ;;  %5039 = vmatpush3.bf16.msra.mxu0 (!%p4214_p10), %v5036_v63  ;;  %5086 = vmatpush3.bf16.msra.mxu1 (!%p4214_p10), %v5036_v63 }
 0x5d3   : > { %3641 = vst [vmem:[#allocation5 + $0x68] sm:$0xff] %v3625_v24  ;;  %3638 = vst [vmem:[#allocation5 + $0x50] sm:$0xff] %v3622_v56  ;;  %3802 = vperm.xlu0 (!%p4214_p10), %5361, %v3752_v32   ;;  %v3754_v24 = vld [vmem:[%s7722_s14 + $0x50] sm:$0xff] (!%p4214_p10)  ;;  %5041 = vmatprep.subr.bf16.mxu0 (!%p4214_p10), %v5040_v58 }
 0x5d4   : > { %3640 = vst [vmem:[#allocation5 + $0x60] sm:$0xff] %v3624_v47  ;;  %v4779_v23 = vpop.f32.mrb[38].mxu1  ;;  %5079 = vmatprep.subr.bf16.mxu1 (!%p4214_p10), %v5040_v58  ;;  %v3707_v47 = vrot.slane (!%p4214_p10), %v3691_v28, %v7724_v9  ;;  %v3733_v9 = vld [vmem:[%s7720_s12 + $0x28] sm:$0xff] (!%p4214_p10) }
 0x5d5   : > { %v3627_v55 = vadd.f32 %v4779_v23, %v3611_v7  ;;  %v3526_v36 = vpop.f32.mrb[39].mxu1  ;;  %v3660_v44 = vld [vmem:[#allocation5 + $0x48] sm:$0xff] (!%p4214_p10)  ;;  %3817 = vperm.xlu1 (!%p4214_p10), %5362, %v3755_v5  }
 0x5d6   : > { %v3626_v3 = vadd.f32 %v3610_v8, %v3526_v36  ;;  %v3659_v42 = vld [vmem:[#allocation5 + $0x40] sm:$0xff] (!%p4214_p10)  ;;  %v3721_v11 = vmul.f32 (!%p4214_p10), %v3703_v62, %v3660_v44  ;;  %5043 = vmatpush3.bf16.msra.mxu0 (!%p4214_p10), %v5040_v58  ;;  %5087 = vmatpush3.bf16.msra.mxu1 (!%p4214_p10), %v5040_v58 }
 0x5d7   : > { %3643 = vst [vmem:[#allocation5 + $0x78] sm:$0xff] %v3627_v55  ;;  %v3720_v1 = vmul.f32 (!%p4214_p10), %v3703_v62, %v3659_v42  ;;  %3812 = vperm.xlu0 (!%p4214_p10), %5361, %v3754_v24   ;;  %v3757_v8 = vld [vmem:[%s7722_s14 + $0x68] sm:$0xff] (!%p4214_p10)  ;;  %v3756_v55 = vld [vmem:[%s7722_s14 + $0x60] sm:$0xff] (!%p4214_p10) }
 0x5d8   : > { %3642 = vst [vmem:[#allocation5 + $0x70] sm:$0xff] %v3626_v3 }
 0x5d9   : > { %v3662_v54 = vld [vmem:[#allocation5 + $0x58] sm:$0xff]  ;;  %v5044_v59 = vpack.c.bf16 %v3721_v11, %v3720_v1  ;;  %3827 = vperm.xlu1 %5362, %v3757_v8  }
 0x5da   : > { %v3661_v20 = vld [vmem:[#allocation5 + $0x50] sm:$0xff]  ;;  %v3723_v40 = vmul.f32 %v3703_v62, %v3662_v54  ;;  %v3664_v23 = vld [vmem:[#allocation5 + $0x68] sm:$0xff] }
 0x5db   : > { %v3722_v56 = vmul.f32 %v3703_v62, %v3661_v20  ;;  %v3663_v7 = vld [vmem:[#allocation5 + $0x60] sm:$0xff]  ;;  %5045 = vmatprep.subr.bf16.mxu0 %v5044_v59  ;;  %5080 = vmatprep.subr.bf16.mxu1 %v5044_v59  ;;  %v3725_v12 = vmul.f32 %v3707_v47, %v3664_v23 }
 0x5dc   : > { %v3724_v3 = vmul.f32 %v3707_v47, %v3663_v7  ;;  %3822 = vperm.xlu0 %5361, %v3756_v55   ;;  %5047 = vmatpush3.bf16.msra.mxu0 %v5044_v59 }
 0x5dd   : > { %v5048_v36 = vpack.c.bf16 %v3723_v40, %v3722_v56  ;;  %5088 = vmatpush3.bf16.msra.mxu1 %v5044_v59  ;;  %3837 = vperm.xlu1 %5362, %v3759_v60  }
 0x5de   : > { %v3666_v34 = vld [vmem:[#allocation5 + $0x78] sm:$0xff]  ;;  %v5052_v61 = vpack.c.bf16 %v3725_v12, %v3724_v3 }
 0x5df   : > { %v3665_v43 = vld [vmem:[#allocation5 + $0x70] sm:$0xff]  ;;  %5049 = vmatprep.subr.bf16.mxu0 %v5048_v36  ;;  %5081 = vmatprep.subr.bf16.mxu1 %v5048_v36  ;;  %v3727_v18 = vmul.f32 %v3707_v47, %v3666_v34 }
 0x5e0   : > { %v3726_v38 = vmul.f32 %v3707_v47, %v3665_v43  ;;  %3832 = vperm.xlu0 %5361, %v3758_v27   ;;  %5051 = vmatpush3.bf16.msra.mxu0 %v5048_v36 }
 0x5e1   : > { %5089 = vmatpush3.bf16.msra.mxu1 %v5048_v36  ;;  %5053 = vmatprep.subr.bf16.mxu0 %v5052_v61 }
 0x5e2   : > { %5082 = vmatprep.subr.bf16.mxu1 %v5052_v61  ;;  %v5056_v31 = vpack.c.bf16 %v3727_v18, %v3726_v38 }
 0x5e4   : > { %5055 = vmatpush3.bf16.msra.mxu0 %v5052_v61 }
 0x5e5   : > { %5090 = vmatpush3.bf16.msra.mxu1 %v5052_v61  ;;  %5057 = vmatprep.subr.bf16.mxu0 %v5056_v31 }
 0x5e6   : > { %5083 = vmatprep.subr.bf16.mxu1 %v5056_v31 }
 0x5e8   : > { %5059 = vmatpush3.bf16.msra.mxu0 %v5056_v31 }
 0x5e9   : > { %5091 = vmatpush3.bf16.msra.mxu1 %v5056_v31 }
 0x5eb   : > { %4813 = vmatmul.mubr.f32.vlgmr.msra.gmra.mrb[0].mxu0 %v3729_v29 }
 0x5ec   : > { %4825 = vmatmul.mubr.f32.vlgmr.msra.gmra.mrb[0].mxu1 %v3737_v35  ;;  %4815 = vmatprep.mubr.f32.mxu0 %v3730_v52 }
 0x5ed   : > { %4827 = vmatprep.mubr.f32.mxu1 %v3738_v51 }
 0x5ef   : > { %4816 = vmatmul.mubr.f32.gmra.mrb[2].mxu0 %v3731_v2 }
 0x5f0   : > { %4828 = vmatmul.mubr.f32.gmra.mrb[2].mxu1 %v3739_v39  ;;  %4818 = vmatprep.mubr.f32.mxu0 %v3732_v19 }
 0x5f1   : > { %4830 = vmatprep.mubr.f32.mxu1 %v3740_v4 }
 0x5f3   : > { %4819 = vmatmul.mubr.f32.gmra.mrb[4].mxu0 %v3733_v9 }
 0x5f4   : > { %4831 = vmatmul.mubr.f32.gmra.mrb[4].mxu1 %v3741_v30  ;;  %4821 = vmatprep.mubr.f32.mxu0 %v3734_v57 }
 0x5f5   : > { %4833 = vmatprep.mubr.f32.mxu1 %v3742_v46 }
 0x5f7   : > { %4822 = vmatmul.mubr.f32.gmra.mrb[6].mxu0 %v3735_v21 }
 0x5f8   : > { %4834 = vmatmul.mubr.f32.gmra.mrb[6].mxu1 %v3743_v6 }
 0x618   : > { %v3773_v13 = vpop.permute.xlu1 %3772  ;;  %v3763_v17 = vpop.permute.xlu0 %3762 }
 0x61c   : > { %v3778_v26 = vpop.permute.xlu1 %3777  ;;  %v3768_v37 = vpop.permute.xlu0 %3767 }
 0x620   : > { %v3783_v33 = vpop.permute.xlu0 %3782 }
 0x621   : > { %v3788_v53 = vpop.permute.xlu1 %3787 }
 0x625   : > { %v3798_v45 = vpop.permute.xlu1 %3797 }
 0x64e   : > { %v3793_v41 = vpop.permute.xlu0 %3792 }
 0x650   : > { %v3808_v14 = vpop.permute.xlu1 %3807 }
 0x652   : > { %v3803_v50 = vpop.permute.xlu0 %3802 }
 0x654   : > { %v3818_v10 = vpop.permute.xlu1 %3817 }
 0x656   : > { %v3813_v25 = vpop.permute.xlu0 %3812 }
 0x658   : > { %v3828_v44 = vpop.permute.xlu1 %3827 }
 0x65b   : > { %v3823_v16 = vpop.permute.xlu0 %3822 }
 0x65c   : > { %v3838_v55 = vpop.permute.xlu1 %3837 }
 0x65f   : > { %v3833_v36 = vpop.permute.xlu0 %3832 }
 0x6be   : > { %v4814_v0 = vpop.f32.mrb[0].mxu0 }
 0x6bf   : > { %v4826_v15 = vpop.f32.mrb[0].mxu1  ;;  %v3912_v22 = vadd.f32 %v4814_v0, %v3768_v37  ;;  %v3906_v63 = vpop.f32.mrb[1].mxu0 }
 0x6c0   : > { %v3952_v62 = vadd.f32 %v4826_v15, %v3808_v14  ;;  %v3946_v49 = vpop.f32.mrb[1].mxu1  ;;  %v3907_v48 = vadd.f32 %v3906_v63, %v3763_v17 }
 0x6c1   : > { %v3947_v42 = vadd.f32 %v3946_v49, %v3803_v50  ;;  %3986 = vst [vmem:[%s5887_s19 + $0x8] sm:$0xff] %v3912_v22 }
 0x6c2   : > { %3994 = vst [vmem:[%s5887_s19 + $0x48] sm:$0xff] %v3952_v62  ;;  %3985 = vst [vmem:[%s5887_s19] sm:$0xff] %v3907_v48  ;;  %v4817_v32 = vpop.f32.mrb[2].mxu0 }
 0x6c3   : > { %3993 = vst [vmem:[%s5887_s19 + $0x40] sm:$0xff] %v3947_v42  ;;  %v4829_v28 = vpop.f32.mrb[2].mxu1  ;;  %v3922_v58 = vadd.f32 %v4817_v32, %v3778_v26  ;;  %v3916_v11 = vpop.f32.mrb[3].mxu0 }
 0x6c4   : > { %v3962_v1 = vadd.f32 %v4829_v28, %v3818_v10  ;;  %v3956_v20 = vpop.f32.mrb[3].mxu1  ;;  %v3917_v54 = vadd.f32 %v3916_v11, %v3773_v13 }
 0x6c5   : > { %v3957_v5 = vadd.f32 %v3956_v20, %v3813_v25  ;;  %3988 = vst [vmem:[%s5887_s19 + $0x18] sm:$0xff] %v3922_v58 }
 0x6c6   : > { %3996 = vst [vmem:[%s5887_s19 + $0x58] sm:$0xff] %v3962_v1  ;;  %3987 = vst [vmem:[%s5887_s19 + $0x10] sm:$0xff] %v3917_v54  ;;  %v4820_v24 = vpop.f32.mrb[4].mxu0 }
 0x6c7   : > { %3995 = vst [vmem:[%s5887_s19 + $0x50] sm:$0xff] %v3957_v5  ;;  %v4832_v56 = vpop.f32.mrb[4].mxu1  ;;  %v3932_v59 = vadd.f32 %v4820_v24, %v3788_v53  ;;  %v3926_v47 = vpop.f32.mrb[5].mxu0 }
 0x6c8   : > { %v3972_v40 = vadd.f32 %v4832_v56, %v3828_v44  ;;  %v3966_v7 = vpop.f32.mrb[5].mxu1  ;;  %v3927_v23 = vadd.f32 %v3926_v47, %v3783_v33 }
 0x6c9   : > { %v3967_v8 = vadd.f32 %v3966_v7, %v3823_v16  ;;  %3990 = vst [vmem:[%s5887_s19 + $0x28] sm:$0xff] %v3932_v59 }
 0x6ca   : > { %3998 = vst [vmem:[%s5887_s19 + $0x68] sm:$0xff] %v3972_v40  ;;  %3989 = vst [vmem:[%s5887_s19 + $0x20] sm:$0xff] %v3927_v23  ;;  %v4823_v3 = vpop.f32.mrb[6].mxu0 }
 0x6cb   : > { %3997 = vst [vmem:[%s5887_s19 + $0x60] sm:$0xff] %v3967_v8  ;;  %v4835_v12 = vpop.f32.mrb[6].mxu1  ;;  %v3942_v43 = vadd.f32 %v4823_v3, %v3798_v45  ;;  %v3936_v60 = vpop.f32.mrb[7].mxu0 }
 0x6cc   : > { %v3982_v34 = vadd.f32 %v4835_v12, %v3838_v55  ;;  %v3976_v27 = vpop.f32.mrb[7].mxu1  ;;  %v3937_v61 = vadd.f32 %v3936_v60, %v3793_v41 }
 0x6cd   : > { %v3977_v38 = vadd.f32 %v3976_v27, %v3833_v36  ;;  %3992 = vst [vmem:[%s5887_s19 + $0x38] sm:$0xff] %v3942_v43 }
 0x6ce   : > { %4000 = vst [vmem:[%s5887_s19 + $0x78] sm:$0xff] %v3982_v34  ;;  %3991 = vst [vmem:[%s5887_s19 + $0x30] sm:$0xff] %v3937_v61 }
 0x6cf   : > { %3999 = vst [vmem:[%s5887_s19 + $0x70] sm:$0xff] %v3977_v38 }
 0x6d0 PF: > { %s7725_s18 = sld [smem:[#allocation17_spill]]  ;;  %s7726_s7 = sld [smem:[#allocation16_spill]] }
 0x6d1   : > { %s7727_s6 = sld [smem:[#allocation19_spill]]  ;;  %s4016_s13 = sshll.u32 %s5887_s19, 4  ;;  %s7332_s13 = int_to_ptr.vmem [resolvable:$true] %s4016_s13 }
 0x6d2   : > { %s7728_s16 = sld [smem:[#allocation101_spill]]  ;;  %s4002_s27 = scalar_lea.sflag [#allocation8], %s5870_s11 }
 0x6d3   : > { %s5425_s29 = scalar_lea.vmem %s7332_s13, 2048  ;;  %s5580_s17 = smov [#allocation11]  }
 0x6d4   : > { %p5426_p0 = scmp.ne.s32.totalorder %s7332_s13, %s5425_s29 }
 0x6d6   : > { %s4216_s21 = sshll.u32 %s7725_s18, 5  ;;  %s5429_s18 = sshll.u32 %s5580_s17, 4  ;;  %s5430_s18 = int_to_ptr.vmem [resolvable:$false] %s5429_s18 }
 0x6d7   : > { %s4013_s28 = sadd.s32 %s7726_s7, %s4216_s21  ;;  %p7729_p4 = scmp.ne.s32.totalorder %s7727_s6, 0 }
 0x6d8   : > { %s4217_s0 = sshll.u32 %s4013_s28, 7  ;;  %s5431_s19 = scalar_lea.vmem %s5430_s18, 4096 }
 0x6d9   : > { %s7337_s24 = scalar_lea.hbm %s7728_s16, %s4217_s0  ;;  %p5427_p3 = pnand %p5426_p0, %p7729_p4 }
 0x6da   : > { %p5432_p1 = scmp.lt.s32.totalorder %s7332_s13, %s5430_s18  ;;  %p5433_p8 = scmp.lt.s32.totalorder %s5431_s19, %s5425_s29 }
 0x6db   : > { %p5428_p7 = pneg %p5427_p3 }
 0x6dc   : > { %p5434_p12 = por %p5433_p8, %p5432_p1 }
 0x6de   : > { %p5435_p11 = pnand %p5434_p12, %p5428_p7 }
 0x6e0   : > { %5438 = shalt.err (!%p5435_p11)
}
 0x6e1   : > { %s5439_s7 = scalar_lea.hbm %s7337_s24, 2048  ;;  %s5443_s0 = scalar_lea.hbm %s7728_s16, 8192 }
 0x6e2   : > { %p5440_p5 = scmp.ne.s32.totalorder %s7337_s24, %s5439_s7  ;;  %p5444_p9 = scmp.lt.u32.totalorder %s7337_s24, %s7728_s16 }
 0x6e3   : > { %p5445_p6 = scmp.lt.u32.totalorder %s5443_s0, %s5439_s7  ;;  %p5447_p0 = scmp.lt.u32.totalorder %s5439_s7, %s7337_s24 }
 0x6e4   : > { %p5441_p13 = pnand %p5440_p5, %p7729_p4 }
 0x6e5   : > { %p5446_p10 = por %p5445_p6, %p5444_p9 }
 0x6e6   : > { %p5442_p2 = pneg %p5441_p13 }
 0x6e7   : > { %p5448_p3 = por %p5447_p0, %p5446_p10 }
 0x6e9   : > { %p5449_p7 = pnand %p5448_p3, %p5442_p2 }
 0x6eb   : > { %5452 = shalt.err (!%p5449_p7)
}
 0x6ec   : > { %s5581_s29 = smov 128   ;;  %s5582_s17 = smov 256  }
 0x6ed   : > { %s5583_s18 = smov 8  }
 0x6ee   : > { %5097 = dma.vmem_to_hbm [thread:$0]  (%p7729_p4), %s7332_s13, 2048, %s7337_s24, %s4002_s27, %s5581_s29, %s5582_s17, %s5583_s18  }
 0x6ef PF: > { %s7730_s19 = sld [smem:[#allocation15_spill]]  ;;  %s7731_s21 = sld [smem:[#allocation20_spill]] }
 0x6f0   : > { %p5111_p1 = scmp.ge.s32.totalorder %s5567_s9, 2 }
 0x6f5   : > { %s4031_s28 = sand.u32 1, %s7730_s19   ;;  %p7732_p8 = scmp.ne.s32.totalorder %s7731_s21, 0 }
 0x6f6   : > { %s4032_s7 = scalar_lea.sflag [#allocation8], %s4031_s28 }
 0x6f7   : > { %p5107_p12 = pnand %p5111_p1, %p7732_p8 }
 0x6f9   : > { %5514 = dma.done.wait (!%p5107_p12), %s4032_s7, 2048  }
 0x6fa   : > { %5516 = vsyncadd (!%p5107_p12), %s4032_s7, 4294965248  ;;  %s25_s9 = sadd.s32 1, %s5567_s9   ;;  %s7734_s28 = sld [smem:[#allocation18_spill]] }
 0x6fb   : > { %p7368_p11 = scmp.ge.s32.totalorder %s25_s9, 14   ;;  %s7735_s11 = sld [smem:[#allocation21_spill]] }
 0x6fc   : > { %s7736_s7 = sld [smem:[#allocation22_spill]]  ;;  %s7737_s21 = smov %s5523_s22 }
 0x6fd   : > { %s7738_s22 = smov %s5527_s23  ;;  %s7739_s23 = smov %s5835_s15 }
 0x6fe   : > { %s7740_s24 = smov %s5535_s25  ;;  %s7741_s25 = smov %s5539_s26 }
 0x6ff   : > { %s7742_s26 = smov %s5830_s5  ;;  %s7743_s27 = smov %s5555_s30 }
 0x700   : > { %s7744_s29 = smov %s5563_s8  ;;  %s7746_s8 = smov %s7756_s10 }
 0x701   : > { %s7745_s30 = smov %s7735_s11  ;;  %24 = sbr.rel (!%p7368_p11) target bundleno = 17 (0x11), region = 110 }
 0x708   :  { %4037 = vsyncpa [#allocation7], 1 }
 0x709   :  { %4039 = vsyncpa [#allocation7 + $0x1], 1 }
 0x70a   :  { %4040 = vsyncpa [#allocation10], 1 }
 0x70b   :  { %4042 = vsyncpa [#allocation10 + $0x1], 1 }
 0x70c   :  { %4043 = vsyncpa [#allocation8], 1 }
 0x70d   :  { %4045 = vsyncpa [#allocation8 + $0x1], 1 }

</bundles_post_ra>
